<compile_context>
chip_gen: v5e
topology: v5e:2x2
jax: 0.10.0
libtpu: 0.0.40
codegen_flags: <defaults>
</compile_context>

<pallas_src>
import jax
import jax.numpy as jnp
from jax import lax
from jax.experimental import pallas as pl
from jax.experimental.pallas import tpu as pltpu

NULL, START, END = 0, 1, 2


# ---------------------------------------------------------------------------
# Fused kernel factory
# ---------------------------------------------------------------------------
def _make_seq2seq_kernel(L, T_in, T_out, NP, D, H, Vp):
    G = 4 * H
    n_in = T_in * NP
    n_out = T_out * NP
    CE_T = max(1, min(T_out, 512 // NP))      # timesteps per CE chunk (bounds logits temp)

    def _recurrence(T, whh_bf16, gates_ref, h_act_ref):
        """Serial LSTM recurrence; gates_ref already holds x@Wih + b (+ctx) for all t."""
        h0 = jnp.zeros((NP, H), jnp.float32)
        c0 = jnp.zeros((NP, H), jnp.float32)

        def step(t, carry):
            h, c = carry
            r = pl.multiple_of(t * NP, NP)                       # sublane-aligned row offset
            g = gates_ref[pl.ds(r, NP), :] + jnp.dot(
                h.astype(jnp.bfloat16), whh_bf16,
                preferred_element_type=jnp.float32)               # (NP, 4H), f32 accum
            # Full-tile transcendentals: 1 sigmoid pass + 1 tanh pass over (NP, 4H),
            # then slice — instead of 5 narrow per-gate EUP pushes.
            sig = 0.5 * jnp.tanh(0.5 * g) + 0.5                   # tanh-based sigmoid (EUP)
            tng = jnp.tanh(g)
            i = sig[:, 0 * H:1 * H]
            f = sig[:, 1 * H:2 * H]
            o = sig[:, 3 * H:4 * H]
            gg = tng[:, 2 * H:3 * H]
            c_new = f * c + i * gg                                # f32 cell state
            h_new = o * jnp.tanh(c_new)
            h_act_ref[pl.ds(r, NP), :] = h_new
            return (h_new, c_new)

        # T is static & small -> fully unroll for LLO cross-iteration scheduling.
        lax.fori_loop(0, T, step, (h0, c0), unroll=True)

    def kernel(*refs):
        # ---- unpack refs: inputs, output, scratch ----
        x_ref, y_ref, rowsel_ref, tgt_ref, mask_ref = refs[:5]
        pos = 5
        enc_layers = [refs[pos + 3 * l: pos + 3 * l + 3] for l in range(L)]
        pos += 3 * L
        d_wih_ctx_ref, d_wih_emb_ref, d_whh0_ref, d_b0_ref = refs[pos:pos + 4]
        pos += 4
        dec_rest = [refs[pos + 3 * l: pos + 3 * l + 3] for l in range(L - 1)]
        pos += 3 * (L - 1)
        lin_w_ref, lin_b_ref = refs[pos:pos + 2]
        pos += 2
        loss_ref = refs[pos]
        h_act_ref, gates_ref = refs[pos + 1: pos + 3]

        # ---------------- encoder LSTM stack ----------------
        wih0, whh0, b0 = enc_layers[0]
        gates_ref[0:n_in, :] = (
            jnp.dot(x_ref[...], wih0[...], preferred_element_type=jnp.float32)
            + b0[...])
        _recurrence(T_in, whh0[...], gates_ref, h_act_ref)

        for l in range(1, L):
            wih, whh, b = enc_layers[l]
            gates_ref[0:n_in, :] = (
                jnp.dot(h_act_ref[0:n_in, :].astype(jnp.bfloat16), wih[...],
                        preferred_element_type=jnp.float32) + b[...])
            _recurrence(T_in, whh[...], gates_ref, h_act_ref)

        # gather final-layer output at idx: one-hot built in-kernel (no HBM selT)
        sel = (lax.broadcasted_iota(jnp.int32, (NP, n_in), 1)
               == rowsel_ref[...]).astype(jnp.bfloat16)              # (NP, n_in)
        encoded = jnp.dot(sel, h_act_ref[0:n_in, :].astype(jnp.bfloat16),
                          preferred_element_type=jnp.float32)        # (NP, H)

        # ---------------- decoder LSTM stack ----------------
        # time-invariant context contribution to layer-0 gates, computed once and
        # pre-added into the gates buffer (off the per-step critical path)
        ctx = jnp.dot(encoded.astype(jnp.bfloat16), d_wih_ctx_ref[...],
                      preferred_element_type=jnp.float32)            # (NP, 4H)
        g0 = (jnp.dot(y_ref[...], d_wih_emb_ref[...],
                      preferred_element_type=jnp.float32) + d_b0_ref[...])
        g0 = (g0.reshape(T_out, NP, G) + ctx[None, :, :]).reshape(n_out, G)
        gates_ref[0:n_out, :] = g0
        _recurrence(T_out, d_whh0_ref[...], gates_ref, h_act_ref)

        for l in range(L - 1):
            wih, whh, b = dec_rest[l]
            gates_ref[0:n_out, :] = (
                jnp.dot(h_act_ref[0:n_out, :].astype(jnp.bfloat16), wih[...],
                        preferred_element_type=jnp.float32) + b[...])
            _recurrence(T_out, whh[...], gates_ref, h_act_ref)

        # ---- decoder_linear + masked cross-entropy, streamed over time chunks ----
        total_per = jnp.zeros((), jnp.float32)
        t = 0
        while t < T_out:                                              # static python loop
            ct = min(CE_T, T_out - t)
            rs, rows = t * NP, ct * NP
            h_chunk = h_act_ref[rs:rs + rows, :].astype(jnp.bfloat16)
            logits = (jnp.dot(h_chunk, lin_w_ref[...],
                              preferred_element_type=jnp.float32)
                      + lin_b_ref[...])                               # f32, pad bias -1e30
            m = jnp.max(logits, axis=-1, keepdims=True)
            lse = m + jnp.log(jnp.sum(jnp.exp(logits - m), axis=-1, keepdims=True))
            col = lax.broadcasted_iota(jnp.int32, (rows, Vp), 1)
            tgt_logit = jnp.sum(
                jnp.where(col == tgt_ref[rs:rs + rows, :], logits, 0.0),
                axis=-1, keepdims=True)                               # no one-hot temp
            total_per += jnp.sum((lse - tgt_logit) * mask_ref[rs:rs + rows, :])
            t += ct

        denom = jnp.maximum(jnp.sum(mask_ref[...]), 1.0)              # 0/0 guard
        loss_ref[0, 0] = total_per / denom

    return kernel


# ---------------------------------------------------------------------------
# Parameter init (PyTorch convention) + one-time preprocessing
# ---------------------------------------------------------------------------
def init_params(key, V_in, V_out, D, H, L):
    keys = list(jax.random.split(key, 64))
    it = iter(keys)
    s = 1.0 / (H ** 0.5)

    def u(shape):
        return jax.random.uniform(next(it), shape, jnp.float32, -s, s)

    p = {
        'enc_embed': jax.random.normal(next(it), (V_in, D), jnp.float32) * 0.1,
        'dec_embed': jax.random.normal(next(it), (V_out, D), jnp.float32) * 0.1,
    }
    enc_layers, din = [], D
    for _ in range(L):
        enc_layers.append(dict(w_ih=u((4 * H, din)), w_hh=u((4 * H, H)),
                               b_ih=u((4 * H,)), b_hh=u((4 * H,))))
        din = H
    p['enc_rnn'] = enc_layers

    dec_layers, din = [], H + D        # decoder input = concat([encoded(H), y_embed(D)])
    for _ in range(L):
        dec_layers.append(dict(w_ih=u((4 * H, din)), w_hh=u((4 * H, H)),
                               b_ih=u((4 * H,)), b_hh=u((4 * H,))))
        din = H
    p['dec_rnn'] = dec_layers

    p['w_lin'] = u((V_out, H))
    p['b_lin'] = u((V_out,))
    return p


def preprocess_params(raw):
    """One-time: transpose weights for (rows, Din)@(Din,4H) matmuls, cast matmul
    weights to bf16 (f32 biases, pre-added), split decoder layer-0 W_ih into
    context/embedding halves, pad vocab to 128 lanes (pad bias = -1e30)."""
    H = raw['enc_rnn'][0]['w_hh'].shape[1]
    V_out = raw['w_lin'].shape[0]
    Vp = ((V_out + 127) // 128) * 128

    def layer_t(l):
        return (jnp.transpose(l['w_ih']).astype(jnp.bfloat16),      # (Din, 4H) bf16
                jnp.transpose(l['w_hh']).astype(jnp.bfloat16),      # (H, 4H) bf16
                (l['b_ih'] + l['b_hh']).reshape(1, -1).astype(jnp.float32))  # (1, 4H) f32

    pp = {'enc_embed': raw['enc_embed'], 'dec_embed': raw['dec_embed']}
    pp['enc_layers'] = [layer_t(l) for l in raw['enc_rnn']]

    d0 = raw['dec_rnn'][0]
    # decoder layer-0 input order is [encoded (H), y_embed (D)]
    pp['dec_wih_ctx'] = jnp.transpose(d0['w_ih'][:, :H]).astype(jnp.bfloat16)   # (H, 4H)
    pp['dec_wih_emb'] = jnp.transpose(d0['w_ih'][:, H:]).astype(jnp.bfloat16)   # (D, 4H)
    pp['dec_whh0'] = jnp.transpose(d0['w_hh']).astype(jnp.bfloat16)             # (H, 4H)
    pp['dec_b0'] = (d0['b_ih'] + d0['b_hh']).reshape(1, -1).astype(jnp.float32)  # (1, 4H)
    pp['dec_layers_rest'] = [layer_t(l) for l in raw['dec_rnn'][1:]]

    w = jnp.transpose(raw['w_lin'])                                  # (H, V_out)
    pp['lin_w'] = jnp.pad(w, ((0, 0), (0, Vp - V_out))).astype(jnp.bfloat16)    # (H, Vp)
    pp['lin_b'] = jnp.pad(raw['b_lin'], (0, Vp - V_out),
                          constant_values=-1e30).reshape(1, Vp).astype(jnp.float32)
    pp['V_out'] = V_out
    return pp


# ---------------------------------------------------------------------------
# Forward pass (matches Seq2Seq.forward: encoder -> decoder -> compute_loss)
# ---------------------------------------------------------------------------
def compute_idx(x):
    # before_rnn: idx[i] = first t with x[i,t] != NULL and x[i,t+1] == NULL, else T-1
    N, T = x.shape
    cond = (x[:, :-1] != NULL) & (x[:, 1:] == NULL)
    has = jnp.any(cond, axis=1)
    first = jnp.argmax(cond, axis=1)
    return jnp.where(has, first, T - 1)


def seq2seq_forward(pp, x, y):
    N, T_in = x.shape
    _, T_out = y.shape
    D = pp['enc_embed'].shape[1]
    H = pp['enc_layers'][0][1].shape[0]
    L = len(pp['enc_layers'])
    Vp = pp['lin_w'].shape[1]
    NP = max(8, ((N + 7) // 8) * 8)       # sublane-padded batch
    T_max = max(T_in, T_out)

    # ---------------- plain-JAX glue ----------------
    idx = compute_idx(x).astype(jnp.int32)
    x_rep = jnp.where(x == NULL, 0, x)
    y_rep = jnp.where(y == NULL, 0, y)
    x_emb = jnp.take(pp['enc_embed'], x_rep, axis=0)            # (N, T_in, D)
    y_emb = jnp.take(pp['dec_embed'], y_rep, axis=0)            # (N, T_out, D)

    def to_time_major_padded(e, T):
        e = jnp.transpose(e, (1, 0, 2))                         # (T, N, D)
        e = jnp.pad(e, ((0, 0), (0, NP - N), (0, 0)))
        return e.reshape(T * NP, D).astype(jnp.bfloat16)        # bf16 matmul operand

    x_tm = to_time_major_padded(x_emb, T_in)                    # (T_in*NP, D)
    y_tm = to_time_major_padded(y_emb, T_out)                   # (T_out*NP, D)

    # encoder "gather at idx": tiny int32 row-selector, one-hot built in-kernel
    idx_p = jnp.concatenate([idx, jnp.zeros((NP - N,), jnp.int32)])
    rowsel = (idx_p * NP + jnp.arange(NP, dtype=jnp.int32)).reshape(NP, 1)

    # targets / mask: predict y[t+1] at position t; time-major, batch-padded
    mask = (y != NULL)
    out_mask = jnp.zeros_like(mask).at[:, :-1].set(mask[:, 1:])           # (N, T_out)
    targets = jnp.concatenate([y[:, 1:], jnp.zeros((N, 1), y.dtype)], 1)  # (N, T_out)

    def flat_tm(a, dtype):
        a = jnp.transpose(a)                                    # (T_out, N)
        a = jnp.pad(a, ((0, 0), (0, NP - N)))
        return a.reshape(T_out * NP, 1).astype(dtype)

    tgt_tm = flat_tm(targets, jnp.int32)
    mask_tm = flat_tm(out_mask, jnp.float32)

    # ---------------- single fused Pallas kernel ----------------
    kernel = _make_seq2seq_kernel(L, T_in, T_out, NP, D, H, Vp)

    inputs = [x_tm, y_tm, rowsel, tgt_tm, mask_tm]
    for (wih_t, whh_t, b) in pp['enc_layers']:
        inputs += [wih_t, whh_t, b]
    inputs += [pp['dec_wih_ctx'], pp['dec_wih_emb'], pp['dec_whh0'], pp['dec_b0']]
    for (wih_t, whh_t, b) in pp['dec_layers_rest']:
        inputs += [wih_t, whh_t, b]
    inputs += [pp['lin_w'], pp['lin_b']]

    vmem = pl.BlockSpec(memory_space=pltpu.MemorySpace.VMEM)
    smem = pl.BlockSpec(memory_space=pltpu.MemorySpace.SMEM)

    loss = pl.pallas_call(
        kernel,
        out_shape=jax.ShapeDtypeStruct((1, 1), jnp.float32),
        in_specs=[vmem] * len(inputs),
        out_specs=smem,
        scratch_shapes=[
            pltpu.VMEM((T_max * NP, H), jnp.float32),        # inter-layer activations
            pltpu.VMEM((T_max * NP, 4 * H), jnp.float32),    # hoisted input-proj gates
        ],
        # everything is resident (no pipelining); 48 MiB stays under v7x's 64 MiB/TC
        compiler_params=pltpu.CompilerParams(vmem_limit_bytes=48 * 1024 * 1024),
    )(*inputs)
    # TODO(synk): on v7x (2 TensorCores) add a batch-blocked grid axis with
    #   dimension_semantics=("parallel",) and per-block (sum_per, sum_mask) partial
    #   outputs reduced in JAX — only pays off once N >= 16.
    # TODO(synk): with H=32 (<128 lanes) h_act stores are masked vst.msk into a
    #   4x-padded tile; pack 4 timesteps per 128-lane tile if T*L*NP grows.
    return loss[0, 0]


if __name__ == "__main__":
    # Small shapes consistent with the module: vocab=50, wordvec=32, hidden=32,
    # 2 LSTM layers, batch=2, seq lengths 8.
    V_IN, V_OUT, D, H, L = 50, 50, 32, 32, 2
    N, T_IN, T_OUT = 2, 8, 8

    key = jax.random.PRNGKey(0)
    kp, kx, ky = jax.random.split(key, 3)
    raw_params = init_params(kp, V_IN, V_OUT, D, H, L)
    params = preprocess_params(raw_params)      # one-time transposes / bf16 cast / padding

    x = jax.random.randint(kx, (N, T_IN), 3, V_IN, dtype=jnp.int32)
    x = x.at[:, 5:].set(NULL)                                   # right-pad with NULL
    y = jax.random.randint(ky, (N, T_OUT), 3, V_OUT, dtype=jnp.int32)
    y = y.at[:, 0].set(START)
    y = y.at[:, 5].set(END)
    y = y.at[:, 6:].set(NULL)

    loss = jax.jit(seq2seq_forward)(params, x, y)
    jax.block_until_ready(loss)
    print("KERNEL_OK")
</pallas_src>

<mosaic_0001>
module attributes {stable_mosaic.version = 11 : i64} {
  func.func @kernel(%arg0: memref<64x32xbf16, #tpu.memory_space<vmem>>, %arg1: memref<64x32xbf16, #tpu.memory_space<vmem>>, %arg2: memref<8x1xi32, #tpu.memory_space<vmem>>, %arg3: memref<64x1xi32, #tpu.memory_space<vmem>>, %arg4: memref<64x1xf32, #tpu.memory_space<vmem>>, %arg5: memref<32x128xbf16, #tpu.memory_space<vmem>>, %arg6: memref<32x128xbf16, #tpu.memory_space<vmem>>, %arg7: memref<1x128xf32, #tpu.memory_space<vmem>>, %arg8: memref<32x128xbf16, #tpu.memory_space<vmem>>, %arg9: memref<32x128xbf16, #tpu.memory_space<vmem>>, %arg10: memref<1x128xf32, #tpu.memory_space<vmem>>, %arg11: memref<32x128xbf16, #tpu.memory_space<vmem>>, %arg12: memref<32x128xbf16, #tpu.memory_space<vmem>>, %arg13: memref<32x128xbf16, #tpu.memory_space<vmem>>, %arg14: memref<1x128xf32, #tpu.memory_space<vmem>>, %arg15: memref<32x128xbf16, #tpu.memory_space<vmem>>, %arg16: memref<32x128xbf16, #tpu.memory_space<vmem>>, %arg17: memref<1x128xf32, #tpu.memory_space<vmem>>, %arg18: memref<32x128xbf16, #tpu.memory_space<vmem>>, %arg19: memref<1x128xf32, #tpu.memory_space<vmem>>, %arg20: memref<1x1xf32, #tpu.memory_space<smem>>, %arg21: memref<64x32xf32, #tpu.memory_space<vmem>>, %arg22: memref<64x128xf32, #tpu.memory_space<vmem>>) attributes {dimension_semantics = [], scalar_prefetch = 0 : i64, scratch_operands = 2 : i64, tpu.core_type = #tpu.core_type<tc>} {
    %c0 = arith.constant 0 : index
    %c0_0 = arith.constant 0 : index
    %0 = vector.load %arg0[%c0, %c0_0] : memref<64x32xbf16, #tpu.memory_space<vmem>>, vector<64x32xbf16>
    %c0_1 = arith.constant 0 : index
    %c0_2 = arith.constant 0 : index
    %1 = vector.load %arg5[%c0_1, %c0_2] : memref<32x128xbf16, #tpu.memory_space<vmem>>, vector<32x128xbf16>
    %cst = arith.constant dense<0.000000e+00> : vector<64x128xf32>
    %2 = tpu.matmul %0, %1, %cst {dimension_numbers = #tpu.dot_dimension_numbers<[1], [0], [0], [1], [0, 0, 1, 1], [], []>} : vector<64x32xbf16>, vector<32x128xbf16>, vector<64x128xf32> -> vector<64x128xf32>
    %c0_3 = arith.constant 0 : index
    %c0_4 = arith.constant 0 : index
    %3 = vector.load %arg7[%c0_3, %c0_4] : memref<1x128xf32, #tpu.memory_space<vmem>>, vector<1x128xf32>
    %4 = vector.broadcast %3 : vector<1x128xf32> to vector<64x128xf32>
    %5 = arith.addf %2, %4 : vector<64x128xf32>
    %c0_5 = arith.constant 0 : index
    %c0_6 = arith.constant 0 : index
    %6 = vector.load %arg22[%c0_5, %c0_6] : memref<64x128xf32, #tpu.memory_space<vmem>>, vector<64x128xf32>
    tpu.vector_store %arg22[%c0_5, %c0_6], %5 {strides = array<i32>} : memref<64x128xf32, #tpu.memory_space<vmem>>, vector<64x128xf32>,
    %c0_7 = arith.constant 0 : index
    %c0_8 = arith.constant 0 : index
    %7 = vector.load %arg6[%c0_7, %c0_8] : memref<32x128xbf16, #tpu.memory_space<vmem>>, vector<32x128xbf16>
    %cst_9 = arith.constant 0.000000e+00 : f32
    %8 = vector.broadcast %cst_9 : f32 to vector<8x32xf32>
    %cst_10 = arith.constant 0.000000e+00 : f32
    %9 = vector.broadcast %cst_10 : f32 to vector<8x32xf32>
    %c0_i32 = arith.constant 0 : i32
    %c8_i32 = arith.constant 8 : i32
    %10 = arith.muli %c0_i32, %c8_i32 : i32
    %11 = tpu.assume_multiple %10, 8 : i32
    %12 = arith.index_cast %11 : i32 to index
    %c0_11 = arith.constant 0 : index
    %13 = vector.load %arg22[%12, %c0_11] : memref<64x128xf32, #tpu.memory_space<vmem>>, vector<8x128xf32>
    %14 = arith.truncf %8 : vector<8x32xf32> to vector<8x32xbf16>
    %cst_12 = arith.constant dense<0.000000e+00> : vector<8x128xf32>
    %15 = tpu.matmul %14, %7, %cst_12 {dimension_numbers = #tpu.dot_dimension_numbers<[1], [0], [0], [1], [0, 0, 1, 1], [], []>} : vector<8x32xbf16>, vector<32x128xbf16>, vector<8x128xf32> -> vector<8x128xf32>
    %16 = arith.addf %13, %15 : vector<8x128xf32>
    %cst_13 = arith.constant 5.000000e-01 : f32
    %17 = vector.broadcast %cst_13 : f32 to vector<8x128xf32>
    %18 = arith.mulf %17, %16 : vector<8x128xf32>
    %19 = math.tanh %18 : vector<8x128xf32>
    %cst_14 = arith.constant 5.000000e-01 : f32
    %20 = vector.broadcast %cst_14 : f32 to vector<8x128xf32>
    %21 = arith.mulf %20, %19 : vector<8x128xf32>
    %cst_15 = arith.constant 5.000000e-01 : f32
    %22 = vector.broadcast %cst_15 : f32 to vector<8x128xf32>
    %23 = arith.addf %21, %22 : vector<8x128xf32>
    %24 = math.tanh %16 : vector<8x128xf32>
    %25 = vector.extract_strided_slice %23 {offsets = [0, 0], sizes = [8, 32], strides = [1, 1]} : vector<8x128xf32> to vector<8x32xf32>
    %26 = vector.extract_strided_slice %23 {offsets = [0, 32], sizes = [8, 32], strides = [1, 1]} : vector<8x128xf32> to vector<8x32xf32>
    %27 = vector.extract_strided_slice %23 {offsets = [0, 96], sizes = [8, 32], strides = [1, 1]} : vector<8x128xf32> to vector<8x32xf32>
    %28 = vector.extract_strided_slice %24 {offsets = [0, 64], sizes = [8, 32], strides = [1, 1]} : vector<8x128xf32> to vector<8x32xf32>
    %29 = arith.mulf %26, %9 : vector<8x32xf32>
    %30 = arith.mulf %25, %28 : vector<8x32xf32>
    %31 = arith.addf %29, %30 : vector<8x32xf32>
    %32 = math.tanh %31 : vector<8x32xf32>
    %33 = arith.mulf %27, %32 : vector<8x32xf32>
    %34 = arith.index_cast %11 : i32 to index
    %c0_16 = arith.constant 0 : index
    %35 = vector.load %arg21[%34, %c0_16] : memref<64x32xf32, #tpu.memory_space<vmem>>, vector<8x32xf32>
    tpu.vector_store %arg21[%34, %c0_16], %33 {strides = array<i32>} : memref<64x32xf32, #tpu.memory_space<vmem>>, vector<8x32xf32>,
    %c1_i32 = arith.constant 1 : i32
    %c8_i32_17 = arith.constant 8 : i32
    %36 = arith.muli %c1_i32, %c8_i32_17 : i32
    %37 = tpu.assume_multiple %36, 8 : i32
    %38 = arith.index_cast %37 : i32 to index
    %c0_18 = arith.constant 0 : index
    %39 = vector.load %arg22[%38, %c0_18] : memref<64x128xf32, #tpu.memory_space<vmem>>, vector<8x128xf32>
    %40 = arith.truncf %33 : vector<8x32xf32> to vector<8x32xbf16>
    %cst_19 = arith.constant dense<0.000000e+00> : vector<8x128xf32>
    %41 = tpu.matmul %40, %7, %cst_19 {dimension_numbers = #tpu.dot_dimension_numbers<[1], [0], [0], [1], [0, 0, 1, 1], [], []>} : vector<8x32xbf16>, vector<32x128xbf16>, vector<8x128xf32> -> vector<8x128xf32>
    %42 = arith.addf %39, %41 : vector<8x128xf32>
    %cst_20 = arith.constant 5.000000e-01 : f32
    %43 = vector.broadcast %cst_20 : f32 to vector<8x128xf32>
    %44 = arith.mulf %43, %42 : vector<8x128xf32>
    %45 = math.tanh %44 : vector<8x128xf32>
    %cst_21 = arith.constant 5.000000e-01 : f32
    %46 = vector.broadcast %cst_21 : f32 to vector<8x128xf32>
    %47 = arith.mulf %46, %45 : vector<8x128xf32>
    %cst_22 = arith.constant 5.000000e-01 : f32
    %48 = vector.broadcast %cst_22 : f32 to vector<8x128xf32>
    %49 = arith.addf %47, %48 : vector<8x128xf32>
    %50 = math.tanh %42 : vector<8x128xf32>
    %51 = vector.extract_strided_slice %49 {offsets = [0, 0], sizes = [8, 32], strides = [1, 1]} : vector<8x128xf32> to vector<8x32xf32>
    %52 = vector.extract_strided_slice %49 {offsets = [0, 32], sizes = [8, 32], strides = [1, 1]} : vector<8x128xf32> to vector<8x32xf32>
    %53 = vector.extract_strided_slice %49 {offsets = [0, 96], sizes = [8, 32], strides = [1, 1]} : vector<8x128xf32> to vector<8x32xf32>
    %54 = vector.extract_strided_slice %50 {offsets = [0, 64], sizes = [8, 32], strides = [1, 1]} : vector<8x128xf32> to vector<8x32xf32>
    %55 = arith.mulf %52, %31 : vector<8x32xf32>
    %56 = arith.mulf %51, %54 : vector<8x32xf32>
    %57 = arith.addf %55, %56 : vector<8x32xf32>
    %58 = math.tanh %57 : vector<8x32xf32>
    %59 = arith.mulf %53, %58 : vector<8x32xf32>
    %60 = arith.index_cast %37 : i32 to index
    %c0_23 = arith.constant 0 : index
    %61 = vector.load %arg21[%60, %c0_23] : memref<64x32xf32, #tpu.memory_space<vmem>>, vector<8x32xf32>
    tpu.vector_store %arg21[%60, %c0_23], %59 {strides = array<i32>} : memref<64x32xf32, #tpu.memory_space<vmem>>, vector<8x32xf32>,
    %c2_i32 = arith.constant 2 : i32
    %c8_i32_24 = arith.constant 8 : i32
    %62 = arith.muli %c2_i32, %c8_i32_24 : i32
    %63 = tpu.assume_multiple %62, 8 : i32
    %64 = arith.index_cast %63 : i32 to index
    %c0_25 = arith.constant 0 : index
    %65 = vector.load %arg22[%64, %c0_25] : memref<64x128xf32, #tpu.memory_space<vmem>>, vector<8x128xf32>
    %66 = arith.truncf %59 : vector<8x32xf32> to vector<8x32xbf16>
    %cst_26 = arith.constant dense<0.000000e+00> : vector<8x128xf32>
    %67 = tpu.matmul %66, %7, %cst_26 {dimension_numbers = #tpu.dot_dimension_numbers<[1], [0], [0], [1], [0, 0, 1, 1], [], []>} : vector<8x32xbf16>, vector<32x128xbf16>, vector<8x128xf32> -> vector<8x128xf32>
    %68 = arith.addf %65, %67 : vector<8x128xf32>
    %cst_27 = arith.constant 5.000000e-01 : f32
    %69 = vector.broadcast %cst_27 : f32 to vector<8x128xf32>
    %70 = arith.mulf %69, %68 : vector<8x128xf32>
    %71 = math.tanh %70 : vector<8x128xf32>
    %cst_28 = arith.constant 5.000000e-01 : f32
    %72 = vector.broadcast %cst_28 : f32 to vector<8x128xf32>
    %73 = arith.mulf %72, %71 : vector<8x128xf32>
    %cst_29 = arith.constant 5.000000e-01 : f32
    %74 = vector.broadcast %cst_29 : f32 to vector<8x128xf32>
    %75 = arith.addf %73, %74 : vector<8x128xf32>
    %76 = math.tanh %68 : vector<8x128xf32>
    %77 = vector.extract_strided_slice %75 {offsets = [0, 0], sizes = [8, 32], strides = [1, 1]} : vector<8x128xf32> to vector<8x32xf32>
    %78 = vector.extract_strided_slice %75 {offsets = [0, 32], sizes = [8, 32], strides = [1, 1]} : vector<8x128xf32> to vector<8x32xf32>
    %79 = vector.extract_strided_slice %75 {offsets = [0, 96], sizes = [8, 32], strides = [1, 1]} : vector<8x128xf32> to vector<8x32xf32>
    %80 = vector.extract_strided_slice %76 {offsets = [0, 64], sizes = [8, 32], strides = [1, 1]} : vector<8x128xf32> to vector<8x32xf32>
    %81 = arith.mulf %78, %57 : vector<8x32xf32>
    %82 = arith.mulf %77, %80 : vector<8x32xf32>
    %83 = arith.addf %81, %82 : vector<8x32xf32>
    %84 = math.tanh %83 : vector<8x32xf32>
    %85 = arith.mulf %79, %84 : vector<8x32xf32>
    %86 = arith.index_cast %63 : i32 to index
    %c0_30 = arith.constant 0 : index
    %87 = vector.load %arg21[%86, %c0_30] : memref<64x32xf32, #tpu.memory_space<vmem>>, vector<8x32xf32>
    tpu.vector_store %arg21[%86, %c0_30], %85 {strides = array<i32>} : memref<64x32xf32, #tpu.memory_space<vmem>>, vector<8x32xf32>,
    %c3_i32 = arith.constant 3 : i32
    %c8_i32_31 = arith.constant 8 : i32
    %88 = arith.muli %c3_i32, %c8_i32_31 : i32
    %89 = tpu.assume_multiple %88, 8 : i32
    %90 = arith.index_cast %89 : i32 to index
    %c0_32 = arith.constant 0 : index
    %91 = vector.load %arg22[%90, %c0_32] : memref<64x128xf32, #tpu.memory_space<vmem>>, vector<8x128xf32>
    %92 = arith.truncf %85 : vector<8x32xf32> to vector<8x32xbf16>
    %cst_33 = arith.constant dense<0.000000e+00> : vector<8x128xf32>
    %93 = tpu.matmul %92, %7, %cst_33 {dimension_numbers = #tpu.dot_dimension_numbers<[1], [0], [0], [1], [0, 0, 1, 1], [], []>} : vector<8x32xbf16>, vector<32x128xbf16>, vector<8x128xf32> -> vector<8x128xf32>
    %94 = arith.addf %91, %93 : vector<8x128xf32>
    %cst_34 = arith.constant 5.000000e-01 : f32
    %95 = vector.broadcast %cst_34 : f32 to vector<8x128xf32>
    %96 = arith.mulf %95, %94 : vector<8x128xf32>
    %97 = math.tanh %96 : vector<8x128xf32>
    %cst_35 = arith.constant 5.000000e-01 : f32
    %98 = vector.broadcast %cst_35 : f32 to vector<8x128xf32>
    %99 = arith.mulf %98, %97 : vector<8x128xf32>
    %cst_36 = arith.constant 5.000000e-01 : f32
    %100 = vector.broadcast %cst_36 : f32 to vector<8x128xf32>
    %101 = arith.addf %99, %100 : vector<8x128xf32>
    %102 = math.tanh %94 : vector<8x128xf32>
    %103 = vector.extract_strided_slice %101 {offsets = [0, 0], sizes = [8, 32], strides = [1, 1]} : vector<8x128xf32> to vector<8x32xf32>
    %104 = vector.extract_strided_slice %101 {offsets = [0, 32], sizes = [8, 32], strides = [1, 1]} : vector<8x128xf32> to vector<8x32xf32>
    %105 = vector.extract_strided_slice %101 {offsets = [0, 96], sizes = [8, 32], strides = [1, 1]} : vector<8x128xf32> to vector<8x32xf32>
    %106 = vector.extract_strided_slice %102 {offsets = [0, 64], sizes = [8, 32], strides = [1, 1]} : vector<8x128xf32> to vector<8x32xf32>
    %107 = arith.mulf %104, %83 : vector<8x32xf32>
    %108 = arith.mulf %103, %106 : vector<8x32xf32>
    %109 = arith.addf %107, %108 : vector<8x32xf32>
    %110 = math.tanh %109 : vector<8x32xf32>
    %111 = arith.mulf %105, %110 : vector<8x32xf32>
    %112 = arith.index_cast %89 : i32 to index
    %c0_37 = arith.constant 0 : index
    %113 = vector.load %arg21[%112, %c0_37] : memref<64x32xf32, #tpu.memory_space<vmem>>, vector<8x32xf32>
    tpu.vector_store %arg21[%112, %c0_37], %111 {strides = array<i32>} : memref<64x32xf32, #tpu.memory_space<vmem>>, vector<8x32xf32>,
    %c4_i32 = arith.constant 4 : i32
    %c8_i32_38 = arith.constant 8 : i32
    %114 = arith.muli %c4_i32, %c8_i32_38 : i32
    %115 = tpu.assume_multiple %114, 8 : i32
    %116 = arith.index_cast %115 : i32 to index
    %c0_39 = arith.constant 0 : index
    %117 = vector.load %arg22[%116, %c0_39] : memref<64x128xf32, #tpu.memory_space<vmem>>, vector<8x128xf32>
    %118 = arith.truncf %111 : vector<8x32xf32> to vector<8x32xbf16>
    %cst_40 = arith.constant dense<0.000000e+00> : vector<8x128xf32>
    %119 = tpu.matmul %118, %7, %cst_40 {dimension_numbers = #tpu.dot_dimension_numbers<[1], [0], [0], [1], [0, 0, 1, 1], [], []>} : vector<8x32xbf16>, vector<32x128xbf16>, vector<8x128xf32> -> vector<8x128xf32>
    %120 = arith.addf %117, %119 : vector<8x128xf32>
    %cst_41 = arith.constant 5.000000e-01 : f32
    %121 = vector.broadcast %cst_41 : f32 to vector<8x128xf32>
    %122 = arith.mulf %121, %120 : vector<8x128xf32>
    %123 = math.tanh %122 : vector<8x128xf32>
    %cst_42 = arith.constant 5.000000e-01 : f32
    %124 = vector.broadcast %cst_42 : f32 to vector<8x128xf32>
    %125 = arith.mulf %124, %123 : vector<8x128xf32>
    %cst_43 = arith.constant 5.000000e-01 : f32
    %126 = vector.broadcast %cst_43 : f32 to vector<8x128xf32>
    %127 = arith.addf %125, %126 : vector<8x128xf32>
    %128 = math.tanh %120 : vector<8x128xf32>
    %129 = vector.extract_strided_slice %127 {offsets = [0, 0], sizes = [8, 32], strides = [1, 1]} : vector<8x128xf32> to vector<8x32xf32>
    %130 = vector.extract_strided_slice %127 {offsets = [0, 32], sizes = [8, 32], strides = [1, 1]} : vector<8x128xf32> to vector<8x32xf32>
    %131 = vector.extract_strided_slice %127 {offsets = [0, 96], sizes = [8, 32], strides = [1, 1]} : vector<8x128xf32> to vector<8x32xf32>
    %132 = vector.extract_strided_slice %128 {offsets = [0, 64], sizes = [8, 32], strides = [1, 1]} : vector<8x128xf32> to vector<8x32xf32>
    %133 = arith.mulf %130, %109 : vector<8x32xf32>
    %134 = arith.mulf %129, %132 : vector<8x32xf32>
    %135 = arith.addf %133, %134 : vector<8x32xf32>
    %136 = math.tanh %135 : vector<8x32xf32>
    %137 = arith.mulf %131, %136 : vector<8x32xf32>
    %138 = arith.index_cast %115 : i32 to index
    %c0_44 = arith.constant 0 : index
    %139 = vector.load %arg21[%138, %c0_44] : memref<64x32xf32, #tpu.memory_space<vmem>>, vector<8x32xf32>
    tpu.vector_store %arg21[%138, %c0_44], %137 {strides = array<i32>} : memref<64x32xf32, #tpu.memory_space<vmem>>, vector<8x32xf32>,
    %c5_i32 = arith.constant 5 : i32
    %c8_i32_45 = arith.constant 8 : i32
    %140 = arith.muli %c5_i32, %c8_i32_45 : i32
    %141 = tpu.assume_multiple %140, 8 : i32
    %142 = arith.index_cast %141 : i32 to index
    %c0_46 = arith.constant 0 : index
    %143 = vector.load %arg22[%142, %c0_46] : memref<64x128xf32, #tpu.memory_space<vmem>>, vector<8x128xf32>
    %144 = arith.truncf %137 : vector<8x32xf32> to vector<8x32xbf16>
    %cst_47 = arith.constant dense<0.000000e+00> : vector<8x128xf32>
    %145 = tpu.matmul %144, %7, %cst_47 {dimension_numbers = #tpu.dot_dimension_numbers<[1], [0], [0], [1], [0, 0, 1, 1], [], []>} : vector<8x32xbf16>, vector<32x128xbf16>, vector<8x128xf32> -> vector<8x128xf32>
    %146 = arith.addf %143, %145 : vector<8x128xf32>
    %cst_48 = arith.constant 5.000000e-01 : f32
    %147 = vector.broadcast %cst_48 : f32 to vector<8x128xf32>
    %148 = arith.mulf %147, %146 : vector<8x128xf32>
    %149 = math.tanh %148 : vector<8x128xf32>
    %cst_49 = arith.constant 5.000000e-01 : f32
    %150 = vector.broadcast %cst_49 : f32 to vector<8x128xf32>
    %151 = arith.mulf %150, %149 : vector<8x128xf32>
    %cst_50 = arith.constant 5.000000e-01 : f32
    %152 = vector.broadcast %cst_50 : f32 to vector<8x128xf32>
    %153 = arith.addf %151, %152 : vector<8x128xf32>
    %154 = math.tanh %146 : vector<8x128xf32>
    %155 = vector.extract_strided_slice %153 {offsets = [0, 0], sizes = [8, 32], strides = [1, 1]} : vector<8x128xf32> to vector<8x32xf32>
    %156 = vector.extract_strided_slice %153 {offsets = [0, 32], sizes = [8, 32], strides = [1, 1]} : vector<8x128xf32> to vector<8x32xf32>
    %157 = vector.extract_strided_slice %153 {offsets = [0, 96], sizes = [8, 32], strides = [1, 1]} : vector<8x128xf32> to vector<8x32xf32>
    %158 = vector.extract_strided_slice %154 {offsets = [0, 64], sizes = [8, 32], strides = [1, 1]} : vector<8x128xf32> to vector<8x32xf32>
    %159 = arith.mulf %156, %135 : vector<8x32xf32>
    %160 = arith.mulf %155, %158 : vector<8x32xf32>
    %161 = arith.addf %159, %160 : vector<8x32xf32>
    %162 = math.tanh %161 : vector<8x32xf32>
    %163 = arith.mulf %157, %162 : vector<8x32xf32>
    %164 = arith.index_cast %141 : i32 to index
    %c0_51 = arith.constant 0 : index
    %165 = vector.load %arg21[%164, %c0_51] : memref<64x32xf32, #tpu.memory_space<vmem>>, vector<8x32xf32>
    tpu.vector_store %arg21[%164, %c0_51], %163 {strides = array<i32>} : memref<64x32xf32, #tpu.memory_space<vmem>>, vector<8x32xf32>,
    %c6_i32 = arith.constant 6 : i32
    %c8_i32_52 = arith.constant 8 : i32
    %166 = arith.muli %c6_i32, %c8_i32_52 : i32
    %167 = tpu.assume_multiple %166, 8 : i32
    %168 = arith.index_cast %167 : i32 to index
    %c0_53 = arith.constant 0 : index
    %169 = vector.load %arg22[%168, %c0_53] : memref<64x128xf32, #tpu.memory_space<vmem>>, vector<8x128xf32>
    %170 = arith.truncf %163 : vector<8x32xf32> to vector<8x32xbf16>
    %cst_54 = arith.constant dense<0.000000e+00> : vector<8x128xf32>
    %171 = tpu.matmul %170, %7, %cst_54 {dimension_numbers = #tpu.dot_dimension_numbers<[1], [0], [0], [1], [0, 0, 1, 1], [], []>} : vector<8x32xbf16>, vector<32x128xbf16>, vector<8x128xf32> -> vector<8x128xf32>
    %172 = arith.addf %169, %171 : vector<8x128xf32>
    %cst_55 = arith.constant 5.000000e-01 : f32
    %173 = vector.broadcast %cst_55 : f32 to vector<8x128xf32>
    %174 = arith.mulf %173, %172 : vector<8x128xf32>
    %175 = math.tanh %174 : vector<8x128xf32>
    %cst_56 = arith.constant 5.000000e-01 : f32
    %176 = vector.broadcast %cst_56 : f32 to vector<8x128xf32>
    %177 = arith.mulf %176, %175 : vector<8x128xf32>
    %cst_57 = arith.constant 5.000000e-01 : f32
    %178 = vector.broadcast %cst_57 : f32 to vector<8x128xf32>
    %179 = arith.addf %177, %178 : vector<8x128xf32>
    %180 = math.tanh %172 : vector<8x128xf32>
    %181 = vector.extract_strided_slice %179 {offsets = [0, 0], sizes = [8, 32], strides = [1, 1]} : vector<8x128xf32> to vector<8x32xf32>
    %182 = vector.extract_strided_slice %179 {offsets = [0, 32], sizes = [8, 32], strides = [1, 1]} : vector<8x128xf32> to vector<8x32xf32>
    %183 = vector.extract_strided_slice %179 {offsets = [0, 96], sizes = [8, 32], strides = [1, 1]} : vector<8x128xf32> to vector<8x32xf32>
    %184 = vector.extract_strided_slice %180 {offsets = [0, 64], sizes = [8, 32], strides = [1, 1]} : vector<8x128xf32> to vector<8x32xf32>
    %185 = arith.mulf %182, %161 : vector<8x32xf32>
    %186 = arith.mulf %181, %184 : vector<8x32xf32>
    %187 = arith.addf %185, %186 : vector<8x32xf32>
    %188 = math.tanh %187 : vector<8x32xf32>
    %189 = arith.mulf %183, %188 : vector<8x32xf32>
    %190 = arith.index_cast %167 : i32 to index
    %c0_58 = arith.constant 0 : index
    %191 = vector.load %arg21[%190, %c0_58] : memref<64x32xf32, #tpu.memory_space<vmem>>, vector<8x32xf32>
    tpu.vector_store %arg21[%190, %c0_58], %189 {strides = array<i32>} : memref<64x32xf32, #tpu.memory_space<vmem>>, vector<8x32xf32>,
    %c7_i32 = arith.constant 7 : i32
    %c8_i32_59 = arith.constant 8 : i32
    %192 = arith.muli %c7_i32, %c8_i32_59 : i32
    %193 = tpu.assume_multiple %192, 8 : i32
    %194 = arith.index_cast %193 : i32 to index
    %c0_60 = arith.constant 0 : index
    %195 = vector.load %arg22[%194, %c0_60] : memref<64x128xf32, #tpu.memory_space<vmem>>, vector<8x128xf32>
    %196 = arith.truncf %189 : vector<8x32xf32> to vector<8x32xbf16>
    %cst_61 = arith.constant dense<0.000000e+00> : vector<8x128xf32>
    %197 = tpu.matmul %196, %7, %cst_61 {dimension_numbers = #tpu.dot_dimension_numbers<[1], [0], [0], [1], [0, 0, 1, 1], [], []>} : vector<8x32xbf16>, vector<32x128xbf16>, vector<8x128xf32> -> vector<8x128xf32>
    %198 = arith.addf %195, %197 : vector<8x128xf32>
    %cst_62 = arith.constant 5.000000e-01 : f32
    %199 = vector.broadcast %cst_62 : f32 to vector<8x128xf32>
    %200 = arith.mulf %199, %198 : vector<8x128xf32>
    %201 = math.tanh %200 : vector<8x128xf32>
    %cst_63 = arith.constant 5.000000e-01 : f32
    %202 = vector.broadcast %cst_63 : f32 to vector<8x128xf32>
    %203 = arith.mulf %202, %201 : vector<8x128xf32>
    %cst_64 = arith.constant 5.000000e-01 : f32
    %204 = vector.broadcast %cst_64 : f32 to vector<8x128xf32>
    %205 = arith.addf %203, %204 : vector<8x128xf32>
    %206 = math.tanh %198 : vector<8x128xf32>
    %207 = vector.extract_strided_slice %205 {offsets = [0, 0], sizes = [8, 32], strides = [1, 1]} : vector<8x128xf32> to vector<8x32xf32>
    %208 = vector.extract_strided_slice %205 {offsets = [0, 32], sizes = [8, 32], strides = [1, 1]} : vector<8x128xf32> to vector<8x32xf32>
    %209 = vector.extract_strided_slice %205 {offsets = [0, 96], sizes = [8, 32], strides = [1, 1]} : vector<8x128xf32> to vector<8x32xf32>
    %210 = vector.extract_strided_slice %206 {offsets = [0, 64], sizes = [8, 32], strides = [1, 1]} : vector<8x128xf32> to vector<8x32xf32>
    %211 = arith.mulf %208, %187 : vector<8x32xf32>
    %212 = arith.mulf %207, %210 : vector<8x32xf32>
    %213 = arith.addf %211, %212 : vector<8x32xf32>
    %214 = math.tanh %213 : vector<8x32xf32>
    %215 = arith.mulf %209, %214 : vector<8x32xf32>
    %216 = arith.index_cast %193 : i32 to index
    %c0_65 = arith.constant 0 : index
    %217 = vector.load %arg21[%216, %c0_65] : memref<64x32xf32, #tpu.memory_space<vmem>>, vector<8x32xf32>
    tpu.vector_store %arg21[%216, %c0_65], %215 {strides = array<i32>} : memref<64x32xf32, #tpu.memory_space<vmem>>, vector<8x32xf32>,
    %c8_i32_66 = arith.constant 8 : i32
    %c0_67 = arith.constant 0 : index
    %c0_68 = arith.constant 0 : index
    %218 = vector.load %arg21[%c0_67, %c0_68] : memref<64x32xf32, #tpu.memory_space<vmem>>, vector<64x32xf32>
    %219 = arith.truncf %218 : vector<64x32xf32> to vector<64x32xbf16>
    %c0_69 = arith.constant 0 : index
    %c0_70 = arith.constant 0 : index
    %220 = vector.load %arg8[%c0_69, %c0_70] : memref<32x128xbf16, #tpu.memory_space<vmem>>, vector<32x128xbf16>
    %cst_71 = arith.constant dense<0.000000e+00> : vector<64x128xf32>
    %221 = tpu.matmul %219, %220, %cst_71 {dimension_numbers = #tpu.dot_dimension_numbers<[1], [0], [0], [1], [0, 0, 1, 1], [], []>} : vector<64x32xbf16>, vector<32x128xbf16>, vector<64x128xf32> -> vector<64x128xf32>
    %c0_72 = arith.constant 0 : index
    %c0_73 = arith.constant 0 : index
    %222 = vector.load %arg10[%c0_72, %c0_73] : memref<1x128xf32, #tpu.memory_space<vmem>>, vector<1x128xf32>
    %223 = vector.broadcast %222 : vector<1x128xf32> to vector<64x128xf32>
    %224 = arith.addf %221, %223 : vector<64x128xf32>
    %c0_74 = arith.constant 0 : index
    %c0_75 = arith.constant 0 : index
    %225 = vector.load %arg22[%c0_74, %c0_75] : memref<64x128xf32, #tpu.memory_space<vmem>>, vector<64x128xf32>
    tpu.vector_store %arg22[%c0_74, %c0_75], %224 {strides = array<i32>} : memref<64x128xf32, #tpu.memory_space<vmem>>, vector<64x128xf32>,
    %c0_76 = arith.constant 0 : index
    %c0_77 = arith.constant 0 : index
    %226 = vector.load %arg9[%c0_76, %c0_77] : memref<32x128xbf16, #tpu.memory_space<vmem>>, vector<32x128xbf16>
    %cst_78 = arith.constant 0.000000e+00 : f32
    %227 = vector.broadcast %cst_78 : f32 to vector<8x32xf32>
    %cst_79 = arith.constant 0.000000e+00 : f32
    %228 = vector.broadcast %cst_79 : f32 to vector<8x32xf32>
    %c0_i32_80 = arith.constant 0 : i32
    %c8_i32_81 = arith.constant 8 : i32
    %229 = arith.muli %c0_i32_80, %c8_i32_81 : i32
    %230 = tpu.assume_multiple %229, 8 : i32
    %231 = arith.index_cast %230 : i32 to index
    %c0_82 = arith.constant 0 : index
    %232 = vector.load %arg22[%231, %c0_82] : memref<64x128xf32, #tpu.memory_space<vmem>>, vector<8x128xf32>
    %233 = arith.truncf %227 : vector<8x32xf32> to vector<8x32xbf16>
    %cst_83 = arith.constant dense<0.000000e+00> : vector<8x128xf32>
    %234 = tpu.matmul %233, %226, %cst_83 {dimension_numbers = #tpu.dot_dimension_numbers<[1], [0], [0], [1], [0, 0, 1, 1], [], []>} : vector<8x32xbf16>, vector<32x128xbf16>, vector<8x128xf32> -> vector<8x128xf32>
    %235 = arith.addf %232, %234 : vector<8x128xf32>
    %cst_84 = arith.constant 5.000000e-01 : f32
    %236 = vector.broadcast %cst_84 : f32 to vector<8x128xf32>
    %237 = arith.mulf %236, %235 : vector<8x128xf32>
    %238 = math.tanh %237 : vector<8x128xf32>
    %cst_85 = arith.constant 5.000000e-01 : f32
    %239 = vector.broadcast %cst_85 : f32 to vector<8x128xf32>
    %240 = arith.mulf %239, %238 : vector<8x128xf32>
    %cst_86 = arith.constant 5.000000e-01 : f32
    %241 = vector.broadcast %cst_86 : f32 to vector<8x128xf32>
    %242 = arith.addf %240, %241 : vector<8x128xf32>
    %243 = math.tanh %235 : vector<8x128xf32>
    %244 = vector.extract_strided_slice %242 {offsets = [0, 0], sizes = [8, 32], strides = [1, 1]} : vector<8x128xf32> to vector<8x32xf32>
    %245 = vector.extract_strided_slice %242 {offsets = [0, 32], sizes = [8, 32], strides = [1, 1]} : vector<8x128xf32> to vector<8x32xf32>
    %246 = vector.extract_strided_slice %242 {offsets = [0, 96], sizes = [8, 32], strides = [1, 1]} : vector<8x128xf32> to vector<8x32xf32>
    %247 = vector.extract_strided_slice %243 {offsets = [0, 64], sizes = [8, 32], strides = [1, 1]} : vector<8x128xf32> to vector<8x32xf32>
    %248 = arith.mulf %245, %228 : vector<8x32xf32>
    %249 = arith.mulf %244, %247 : vector<8x32xf32>
    %250 = arith.addf %248, %249 : vector<8x32xf32>
    %251 = math.tanh %250 : vector<8x32xf32>
    %252 = arith.mulf %246, %251 : vector<8x32xf32>
    %253 = arith.index_cast %230 : i32 to index
    %c0_87 = arith.constant 0 : index
    %254 = vector.load %arg21[%253, %c0_87] : memref<64x32xf32, #tpu.memory_space<vmem>>, vector<8x32xf32>
    tpu.vector_store %arg21[%253, %c0_87], %252 {strides = array<i32>} : memref<64x32xf32, #tpu.memory_space<vmem>>, vector<8x32xf32>,
    %c1_i32_88 = arith.constant 1 : i32
    %c8_i32_89 = arith.constant 8 : i32
    %255 = arith.muli %c1_i32_88, %c8_i32_89 : i32
    %256 = tpu.assume_multiple %255, 8 : i32
    %257 = arith.index_cast %256 : i32 to index
    %c0_90 = arith.constant 0 : index
    %258 = vector.load %arg22[%257, %c0_90] : memref<64x128xf32, #tpu.memory_space<vmem>>, vector<8x128xf32>
    %259 = arith.truncf %252 : vector<8x32xf32> to vector<8x32xbf16>
    %cst_91 = arith.constant dense<0.000000e+00> : vector<8x128xf32>
    %260 = tpu.matmul %259, %226, %cst_91 {dimension_numbers = #tpu.dot_dimension_numbers<[1], [0], [0], [1], [0, 0, 1, 1], [], []>} : vector<8x32xbf16>, vector<32x128xbf16>, vector<8x128xf32> -> vector<8x128xf32>
    %261 = arith.addf %258, %260 : vector<8x128xf32>
    %cst_92 = arith.constant 5.000000e-01 : f32
    %262 = vector.broadcast %cst_92 : f32 to vector<8x128xf32>
    %263 = arith.mulf %262, %261 : vector<8x128xf32>
    %264 = math.tanh %263 : vector<8x128xf32>
    %cst_93 = arith.constant 5.000000e-01 : f32
    %265 = vector.broadcast %cst_93 : f32 to vector<8x128xf32>
    %266 = arith.mulf %265, %264 : vector<8x128xf32>
    %cst_94 = arith.constant 5.000000e-01 : f32
    %267 = vector.broadcast %cst_94 : f32 to vector<8x128xf32>
    %268 = arith.addf %266, %267 : vector<8x128xf32>
    %269 = math.tanh %261 : vector<8x128xf32>
    %270 = vector.extract_strided_slice %268 {offsets = [0, 0], sizes = [8, 32], strides = [1, 1]} : vector<8x128xf32> to vector<8x32xf32>
    %271 = vector.extract_strided_slice %268 {offsets = [0, 32], sizes = [8, 32], strides = [1, 1]} : vector<8x128xf32> to vector<8x32xf32>
    %272 = vector.extract_strided_slice %268 {offsets = [0, 96], sizes = [8, 32], strides = [1, 1]} : vector<8x128xf32> to vector<8x32xf32>
    %273 = vector.extract_strided_slice %269 {offsets = [0, 64], sizes = [8, 32], strides = [1, 1]} : vector<8x128xf32> to vector<8x32xf32>
    %274 = arith.mulf %271, %250 : vector<8x32xf32>
    %275 = arith.mulf %270, %273 : vector<8x32xf32>
    %276 = arith.addf %274, %275 : vector<8x32xf32>
    %277 = math.tanh %276 : vector<8x32xf32>
    %278 = arith.mulf %272, %277 : vector<8x32xf32>
    %279 = arith.index_cast %256 : i32 to index
    %c0_95 = arith.constant 0 : index
    %280 = vector.load %arg21[%279, %c0_95] : memref<64x32xf32, #tpu.memory_space<vmem>>, vector<8x32xf32>
    tpu.vector_store %arg21[%279, %c0_95], %278 {strides = array<i32>} : memref<64x32xf32, #tpu.memory_space<vmem>>, vector<8x32xf32>,
    %c2_i32_96 = arith.constant 2 : i32
    %c8_i32_97 = arith.constant 8 : i32
    %281 = arith.muli %c2_i32_96, %c8_i32_97 : i32
    %282 = tpu.assume_multiple %281, 8 : i32
    %283 = arith.index_cast %282 : i32 to index
    %c0_98 = arith.constant 0 : index
    %284 = vector.load %arg22[%283, %c0_98] : memref<64x128xf32, #tpu.memory_space<vmem>>, vector<8x128xf32>
    %285 = arith.truncf %278 : vector<8x32xf32> to vector<8x32xbf16>
    %cst_99 = arith.constant dense<0.000000e+00> : vector<8x128xf32>
    %286 = tpu.matmul %285, %226, %cst_99 {dimension_numbers = #tpu.dot_dimension_numbers<[1], [0], [0], [1], [0, 0, 1, 1], [], []>} : vector<8x32xbf16>, vector<32x128xbf16>, vector<8x128xf32> -> vector<8x128xf32>
    %287 = arith.addf %284, %286 : vector<8x128xf32>
    %cst_100 = arith.constant 5.000000e-01 : f32
    %288 = vector.broadcast %cst_100 : f32 to vector<8x128xf32>
    %289 = arith.mulf %288, %287 : vector<8x128xf32>
    %290 = math.tanh %289 : vector<8x128xf32>
    %cst_101 = arith.constant 5.000000e-01 : f32
    %291 = vector.broadcast %cst_101 : f32 to vector<8x128xf32>
    %292 = arith.mulf %291, %290 : vector<8x128xf32>
    %cst_102 = arith.constant 5.000000e-01 : f32
    %293 = vector.broadcast %cst_102 : f32 to vector<8x128xf32>
    %294 = arith.addf %292, %293 : vector<8x128xf32>
    %295 = math.tanh %287 : vector<8x128xf32>
    %296 = vector.extract_strided_slice %294 {offsets = [0, 0], sizes = [8, 32], strides = [1, 1]} : vector<8x128xf32> to vector<8x32xf32>
    %297 = vector.extract_strided_slice %294 {offsets = [0, 32], sizes = [8, 32], strides = [1, 1]} : vector<8x128xf32> to vector<8x32xf32>
    %298 = vector.extract_strided_slice %294 {offsets = [0, 96], sizes = [8, 32], strides = [1, 1]} : vector<8x128xf32> to vector<8x32xf32>
    %299 = vector.extract_strided_slice %295 {offsets = [0, 64], sizes = [8, 32], strides = [1, 1]} : vector<8x128xf32> to vector<8x32xf32>
    %300 = arith.mulf %297, %276 : vector<8x32xf32>
    %301 = arith.mulf %296, %299 : vector<8x32xf32>
    %302 = arith.addf %300, %301 : vector<8x32xf32>
    %303 = math.tanh %302 : vector<8x32xf32>
    %304 = arith.mulf %298, %303 : vector<8x32xf32>
    %305 = arith.index_cast %282 : i32 to index
    %c0_103 = arith.constant 0 : index
    %306 = vector.load %arg21[%305, %c0_103] : memref<64x32xf32, #tpu.memory_space<vmem>>, vector<8x32xf32>
    tpu.vector_store %arg21[%305, %c0_103], %304 {strides = array<i32>} : memref<64x32xf32, #tpu.memory_space<vmem>>, vector<8x32xf32>,
    %c3_i32_104 = arith.constant 3 : i32
    %c8_i32_105 = arith.constant 8 : i32
    %307 = arith.muli %c3_i32_104, %c8_i32_105 : i32
    %308 = tpu.assume_multiple %307, 8 : i32
    %309 = arith.index_cast %308 : i32 to index
    %c0_106 = arith.constant 0 : index
    %310 = vector.load %arg22[%309, %c0_106] : memref<64x128xf32, #tpu.memory_space<vmem>>, vector<8x128xf32>
    %311 = arith.truncf %304 : vector<8x32xf32> to vector<8x32xbf16>
    %cst_107 = arith.constant dense<0.000000e+00> : vector<8x128xf32>
    %312 = tpu.matmul %311, %226, %cst_107 {dimension_numbers = #tpu.dot_dimension_numbers<[1], [0], [0], [1], [0, 0, 1, 1], [], []>} : vector<8x32xbf16>, vector<32x128xbf16>, vector<8x128xf32> -> vector<8x128xf32>
    %313 = arith.addf %310, %312 : vector<8x128xf32>
    %cst_108 = arith.constant 5.000000e-01 : f32
    %314 = vector.broadcast %cst_108 : f32 to vector<8x128xf32>
    %315 = arith.mulf %314, %313 : vector<8x128xf32>
    %316 = math.tanh %315 : vector<8x128xf32>
    %cst_109 = arith.constant 5.000000e-01 : f32
    %317 = vector.broadcast %cst_109 : f32 to vector<8x128xf32>
    %318 = arith.mulf %317, %316 : vector<8x128xf32>
    %cst_110 = arith.constant 5.000000e-01 : f32
    %319 = vector.broadcast %cst_110 : f32 to vector<8x128xf32>
    %320 = arith.addf %318, %319 : vector<8x128xf32>
    %321 = math.tanh %313 : vector<8x128xf32>
    %322 = vector.extract_strided_slice %320 {offsets = [0, 0], sizes = [8, 32], strides = [1, 1]} : vector<8x128xf32> to vector<8x32xf32>
    %323 = vector.extract_strided_slice %320 {offsets = [0, 32], sizes = [8, 32], strides = [1, 1]} : vector<8x128xf32> to vector<8x32xf32>
    %324 = vector.extract_strided_slice %320 {offsets = [0, 96], sizes = [8, 32], strides = [1, 1]} : vector<8x128xf32> to vector<8x32xf32>
    %325 = vector.extract_strided_slice %321 {offsets = [0, 64], sizes = [8, 32], strides = [1, 1]} : vector<8x128xf32> to vector<8x32xf32>
    %326 = arith.mulf %323, %302 : vector<8x32xf32>
    %327 = arith.mulf %322, %325 : vector<8x32xf32>
    %328 = arith.addf %326, %327 : vector<8x32xf32>
    %329 = math.tanh %328 : vector<8x32xf32>
    %330 = arith.mulf %324, %329 : vector<8x32xf32>
    %331 = arith.index_cast %308 : i32 to index
    %c0_111 = arith.constant 0 : index
    %332 = vector.load %arg21[%331, %c0_111] : memref<64x32xf32, #tpu.memory_space<vmem>>, vector<8x32xf32>
    tpu.vector_store %arg21[%331, %c0_111], %330 {strides = array<i32>} : memref<64x32xf32, #tpu.memory_space<vmem>>, vector<8x32xf32>,
    %c4_i32_112 = arith.constant 4 : i32
    %c8_i32_113 = arith.constant 8 : i32
    %333 = arith.muli %c4_i32_112, %c8_i32_113 : i32
    %334 = tpu.assume_multiple %333, 8 : i32
    %335 = arith.index_cast %334 : i32 to index
    %c0_114 = arith.constant 0 : index
    %336 = vector.load %arg22[%335, %c0_114] : memref<64x128xf32, #tpu.memory_space<vmem>>, vector<8x128xf32>
    %337 = arith.truncf %330 : vector<8x32xf32> to vector<8x32xbf16>
    %cst_115 = arith.constant dense<0.000000e+00> : vector<8x128xf32>
    %338 = tpu.matmul %337, %226, %cst_115 {dimension_numbers = #tpu.dot_dimension_numbers<[1], [0], [0], [1], [0, 0, 1, 1], [], []>} : vector<8x32xbf16>, vector<32x128xbf16>, vector<8x128xf32> -> vector<8x128xf32>
    %339 = arith.addf %336, %338 : vector<8x128xf32>
    %cst_116 = arith.constant 5.000000e-01 : f32
    %340 = vector.broadcast %cst_116 : f32 to vector<8x128xf32>
    %341 = arith.mulf %340, %339 : vector<8x128xf32>
    %342 = math.tanh %341 : vector<8x128xf32>
    %cst_117 = arith.constant 5.000000e-01 : f32
    %343 = vector.broadcast %cst_117 : f32 to vector<8x128xf32>
    %344 = arith.mulf %343, %342 : vector<8x128xf32>
    %cst_118 = arith.constant 5.000000e-01 : f32
    %345 = vector.broadcast %cst_118 : f32 to vector<8x128xf32>
    %346 = arith.addf %344, %345 : vector<8x128xf32>
    %347 = math.tanh %339 : vector<8x128xf32>
    %348 = vector.extract_strided_slice %346 {offsets = [0, 0], sizes = [8, 32], strides = [1, 1]} : vector<8x128xf32> to vector<8x32xf32>
    %349 = vector.extract_strided_slice %346 {offsets = [0, 32], sizes = [8, 32], strides = [1, 1]} : vector<8x128xf32> to vector<8x32xf32>
    %350 = vector.extract_strided_slice %346 {offsets = [0, 96], sizes = [8, 32], strides = [1, 1]} : vector<8x128xf32> to vector<8x32xf32>
    %351 = vector.extract_strided_slice %347 {offsets = [0, 64], sizes = [8, 32], strides = [1, 1]} : vector<8x128xf32> to vector<8x32xf32>
    %352 = arith.mulf %349, %328 : vector<8x32xf32>
    %353 = arith.mulf %348, %351 : vector<8x32xf32>
    %354 = arith.addf %352, %353 : vector<8x32xf32>
    %355 = math.tanh %354 : vector<8x32xf32>
    %356 = arith.mulf %350, %355 : vector<8x32xf32>
    %357 = arith.index_cast %334 : i32 to index
    %c0_119 = arith.constant 0 : index
    %358 = vector.load %arg21[%357, %c0_119] : memref<64x32xf32, #tpu.memory_space<vmem>>, vector<8x32xf32>
    tpu.vector_store %arg21[%357, %c0_119], %356 {strides = array<i32>} : memref<64x32xf32, #tpu.memory_space<vmem>>, vector<8x32xf32>,
    %c5_i32_120 = arith.constant 5 : i32
    %c8_i32_121 = arith.constant 8 : i32
    %359 = arith.muli %c5_i32_120, %c8_i32_121 : i32
    %360 = tpu.assume_multiple %359, 8 : i32
    %361 = arith.index_cast %360 : i32 to index
    %c0_122 = arith.constant 0 : index
    %362 = vector.load %arg22[%361, %c0_122] : memref<64x128xf32, #tpu.memory_space<vmem>>, vector<8x128xf32>
    %363 = arith.truncf %356 : vector<8x32xf32> to vector<8x32xbf16>
    %cst_123 = arith.constant dense<0.000000e+00> : vector<8x128xf32>
    %364 = tpu.matmul %363, %226, %cst_123 {dimension_numbers = #tpu.dot_dimension_numbers<[1], [0], [0], [1], [0, 0, 1, 1], [], []>} : vector<8x32xbf16>, vector<32x128xbf16>, vector<8x128xf32> -> vector<8x128xf32>
    %365 = arith.addf %362, %364 : vector<8x128xf32>
    %cst_124 = arith.constant 5.000000e-01 : f32
    %366 = vector.broadcast %cst_124 : f32 to vector<8x128xf32>
    %367 = arith.mulf %366, %365 : vector<8x128xf32>
    %368 = math.tanh %367 : vector<8x128xf32>
    %cst_125 = arith.constant 5.000000e-01 : f32
    %369 = vector.broadcast %cst_125 : f32 to vector<8x128xf32>
    %370 = arith.mulf %369, %368 : vector<8x128xf32>
    %cst_126 = arith.constant 5.000000e-01 : f32
    %371 = vector.broadcast %cst_126 : f32 to vector<8x128xf32>
    %372 = arith.addf %370, %371 : vector<8x128xf32>
    %373 = math.tanh %365 : vector<8x128xf32>
    %374 = vector.extract_strided_slice %372 {offsets = [0, 0], sizes = [8, 32], strides = [1, 1]} : vector<8x128xf32> to vector<8x32xf32>
    %375 = vector.extract_strided_slice %372 {offsets = [0, 32], sizes = [8, 32], strides = [1, 1]} : vector<8x128xf32> to vector<8x32xf32>
    %376 = vector.extract_strided_slice %372 {offsets = [0, 96], sizes = [8, 32], strides = [1, 1]} : vector<8x128xf32> to vector<8x32xf32>
    %377 = vector.extract_strided_slice %373 {offsets = [0, 64], sizes = [8, 32], strides = [1, 1]} : vector<8x128xf32> to vector<8x32xf32>
    %378 = arith.mulf %375, %354 : vector<8x32xf32>
    %379 = arith.mulf %374, %377 : vector<8x32xf32>
    %380 = arith.addf %378, %379 : vector<8x32xf32>
    %381 = math.tanh %380 : vector<8x32xf32>
    %382 = arith.mulf %376, %381 : vector<8x32xf32>
    %383 = arith.index_cast %360 : i32 to index
    %c0_127 = arith.constant 0 : index
    %384 = vector.load %arg21[%383, %c0_127] : memref<64x32xf32, #tpu.memory_space<vmem>>, vector<8x32xf32>
    tpu.vector_store %arg21[%383, %c0_127], %382 {strides = array<i32>} : memref<64x32xf32, #tpu.memory_space<vmem>>, vector<8x32xf32>,
    %c6_i32_128 = arith.constant 6 : i32
    %c8_i32_129 = arith.constant 8 : i32
    %385 = arith.muli %c6_i32_128, %c8_i32_129 : i32
    %386 = tpu.assume_multiple %385, 8 : i32
    %387 = arith.index_cast %386 : i32 to index
    %c0_130 = arith.constant 0 : index
    %388 = vector.load %arg22[%387, %c0_130] : memref<64x128xf32, #tpu.memory_space<vmem>>, vector<8x128xf32>
    %389 = arith.truncf %382 : vector<8x32xf32> to vector<8x32xbf16>
    %cst_131 = arith.constant dense<0.000000e+00> : vector<8x128xf32>
    %390 = tpu.matmul %389, %226, %cst_131 {dimension_numbers = #tpu.dot_dimension_numbers<[1], [0], [0], [1], [0, 0, 1, 1], [], []>} : vector<8x32xbf16>, vector<32x128xbf16>, vector<8x128xf32> -> vector<8x128xf32>
    %391 = arith.addf %388, %390 : vector<8x128xf32>
    %cst_132 = arith.constant 5.000000e-01 : f32
    %392 = vector.broadcast %cst_132 : f32 to vector<8x128xf32>
    %393 = arith.mulf %392, %391 : vector<8x128xf32>
    %394 = math.tanh %393 : vector<8x128xf32>
    %cst_133 = arith.constant 5.000000e-01 : f32
    %395 = vector.broadcast %cst_133 : f32 to vector<8x128xf32>
    %396 = arith.mulf %395, %394 : vector<8x128xf32>
    %cst_134 = arith.constant 5.000000e-01 : f32
    %397 = vector.broadcast %cst_134 : f32 to vector<8x128xf32>
    %398 = arith.addf %396, %397 : vector<8x128xf32>
    %399 = math.tanh %391 : vector<8x128xf32>
    %400 = vector.extract_strided_slice %398 {offsets = [0, 0], sizes = [8, 32], strides = [1, 1]} : vector<8x128xf32> to vector<8x32xf32>
    %401 = vector.extract_strided_slice %398 {offsets = [0, 32], sizes = [8, 32], strides = [1, 1]} : vector<8x128xf32> to vector<8x32xf32>
    %402 = vector.extract_strided_slice %398 {offsets = [0, 96], sizes = [8, 32], strides = [1, 1]} : vector<8x128xf32> to vector<8x32xf32>
    %403 = vector.extract_strided_slice %399 {offsets = [0, 64], sizes = [8, 32], strides = [1, 1]} : vector<8x128xf32> to vector<8x32xf32>
    %404 = arith.mulf %401, %380 : vector<8x32xf32>
    %405 = arith.mulf %400, %403 : vector<8x32xf32>
    %406 = arith.addf %404, %405 : vector<8x32xf32>
    %407 = math.tanh %406 : vector<8x32xf32>
    %408 = arith.mulf %402, %407 : vector<8x32xf32>
    %409 = arith.index_cast %386 : i32 to index
    %c0_135 = arith.constant 0 : index
    %410 = vector.load %arg21[%409, %c0_135] : memref<64x32xf32, #tpu.memory_space<vmem>>, vector<8x32xf32>
    tpu.vector_store %arg21[%409, %c0_135], %408 {strides = array<i32>} : memref<64x32xf32, #tpu.memory_space<vmem>>, vector<8x32xf32>,
    %c7_i32_136 = arith.constant 7 : i32
    %c8_i32_137 = arith.constant 8 : i32
    %411 = arith.muli %c7_i32_136, %c8_i32_137 : i32
    %412 = tpu.assume_multiple %411, 8 : i32
    %413 = arith.index_cast %412 : i32 to index
    %c0_138 = arith.constant 0 : index
    %414 = vector.load %arg22[%413, %c0_138] : memref<64x128xf32, #tpu.memory_space<vmem>>, vector<8x128xf32>
    %415 = arith.truncf %408 : vector<8x32xf32> to vector<8x32xbf16>
    %cst_139 = arith.constant dense<0.000000e+00> : vector<8x128xf32>
    %416 = tpu.matmul %415, %226, %cst_139 {dimension_numbers = #tpu.dot_dimension_numbers<[1], [0], [0], [1], [0, 0, 1, 1], [], []>} : vector<8x32xbf16>, vector<32x128xbf16>, vector<8x128xf32> -> vector<8x128xf32>
    %417 = arith.addf %414, %416 : vector<8x128xf32>
    %cst_140 = arith.constant 5.000000e-01 : f32
    %418 = vector.broadcast %cst_140 : f32 to vector<8x128xf32>
    %419 = arith.mulf %418, %417 : vector<8x128xf32>
    %420 = math.tanh %419 : vector<8x128xf32>
    %cst_141 = arith.constant 5.000000e-01 : f32
    %421 = vector.broadcast %cst_141 : f32 to vector<8x128xf32>
    %422 = arith.mulf %421, %420 : vector<8x128xf32>
    %cst_142 = arith.constant 5.000000e-01 : f32
    %423 = vector.broadcast %cst_142 : f32 to vector<8x128xf32>
    %424 = arith.addf %422, %423 : vector<8x128xf32>
    %425 = math.tanh %417 : vector<8x128xf32>
    %426 = vector.extract_strided_slice %424 {offsets = [0, 0], sizes = [8, 32], strides = [1, 1]} : vector<8x128xf32> to vector<8x32xf32>
    %427 = vector.extract_strided_slice %424 {offsets = [0, 32], sizes = [8, 32], strides = [1, 1]} : vector<8x128xf32> to vector<8x32xf32>
    %428 = vector.extract_strided_slice %424 {offsets = [0, 96], sizes = [8, 32], strides = [1, 1]} : vector<8x128xf32> to vector<8x32xf32>
    %429 = vector.extract_strided_slice %425 {offsets = [0, 64], sizes = [8, 32], strides = [1, 1]} : vector<8x128xf32> to vector<8x32xf32>
    %430 = arith.mulf %427, %406 : vector<8x32xf32>
    %431 = arith.mulf %426, %429 : vector<8x32xf32>
    %432 = arith.addf %430, %431 : vector<8x32xf32>
    %433 = math.tanh %432 : vector<8x32xf32>
    %434 = arith.mulf %428, %433 : vector<8x32xf32>
    %435 = arith.index_cast %412 : i32 to index
    %c0_143 = arith.constant 0 : index
    %436 = vector.load %arg21[%435, %c0_143] : memref<64x32xf32, #tpu.memory_space<vmem>>, vector<8x32xf32>
    tpu.vector_store %arg21[%435, %c0_143], %434 {strides = array<i32>} : memref<64x32xf32, #tpu.memory_space<vmem>>, vector<8x32xf32>,
    %c8_i32_144 = arith.constant 8 : i32
    %437 = tpu.iota {dimensions = array<i32: 1>} : vector<8x64xi32>
    %c0_145 = arith.constant 0 : index
    %c0_146 = arith.constant 0 : index
    %438 = vector.load %arg2[%c0_145, %c0_146] : memref<8x1xi32, #tpu.memory_space<vmem>>, vector<8x1xi32>
    %439 = vector.broadcast %438 : vector<8x1xi32> to vector<8x64xi32>
    %440 = arith.cmpi eq, %437, %439 : vector<8x64xi32>
    %441 = arith.extui %440 : vector<8x64xi1> to vector<8x64xi32>
    %442 = arith.sitofp %441 : vector<8x64xi32> to vector<8x64xf32>
    %443 = arith.truncf %442 : vector<8x64xf32> to vector<8x64xbf16>
    %c0_147 = arith.constant 0 : index
    %c0_148 = arith.constant 0 : index
    %444 = vector.load %arg21[%c0_147, %c0_148] : memref<64x32xf32, #tpu.memory_space<vmem>>, vector<64x32xf32>
    %445 = arith.truncf %444 : vector<64x32xf32> to vector<64x32xbf16>
    %cst_149 = arith.constant dense<0.000000e+00> : vector<8x32xf32>
    %446 = tpu.matmul %443, %445, %cst_149 {dimension_numbers = #tpu.dot_dimension_numbers<[1], [0], [0], [1], [0, 0, 1, 1], [], []>} : vector<8x64xbf16>, vector<64x32xbf16>, vector<8x32xf32> -> vector<8x32xf32>
    %447 = arith.truncf %446 : vector<8x32xf32> to vector<8x32xbf16>
    %c0_150 = arith.constant 0 : index
    %c0_151 = arith.constant 0 : index
    %448 = vector.load %arg11[%c0_150, %c0_151] : memref<32x128xbf16, #tpu.memory_space<vmem>>, vector<32x128xbf16>
    %cst_152 = arith.constant dense<0.000000e+00> : vector<8x128xf32>
    %449 = tpu.matmul %447, %448, %cst_152 {dimension_numbers = #tpu.dot_dimension_numbers<[1], [0], [0], [1], [0, 0, 1, 1], [], []>} : vector<8x32xbf16>, vector<32x128xbf16>, vector<8x128xf32> -> vector<8x128xf32>
    %c0_153 = arith.constant 0 : index
    %c0_154 = arith.constant 0 : index
    %450 = vector.load %arg1[%c0_153, %c0_154] : memref<64x32xbf16, #tpu.memory_space<vmem>>, vector<64x32xbf16>
    %c0_155 = arith.constant 0 : index
    %c0_156 = arith.constant 0 : index
    %451 = vector.load %arg12[%c0_155, %c0_156] : memref<32x128xbf16, #tpu.memory_space<vmem>>, vector<32x128xbf16>
    %cst_157 = arith.constant dense<0.000000e+00> : vector<64x128xf32>
    %452 = tpu.matmul %450, %451, %cst_157 {dimension_numbers = #tpu.dot_dimension_numbers<[1], [0], [0], [1], [0, 0, 1, 1], [], []>} : vector<64x32xbf16>, vector<32x128xbf16>, vector<64x128xf32> -> vector<64x128xf32>
    %c0_158 = arith.constant 0 : index
    %c0_159 = arith.constant 0 : index
    %453 = vector.load %arg14[%c0_158, %c0_159] : memref<1x128xf32, #tpu.memory_space<vmem>>, vector<1x128xf32>
    %454 = vector.broadcast %453 : vector<1x128xf32> to vector<64x128xf32>
    %455 = arith.addf %452, %454 : vector<64x128xf32>
    %456 = vector.shape_cast %455 : vector<64x128xf32> to vector<8x8x128xf32>
    %457 = vector.shape_cast %449 : vector<8x128xf32> to vector<1x8x128xf32>
    %458 = vector.broadcast %457 : vector<1x8x128xf32> to vector<8x8x128xf32>
    %459 = arith.addf %456, %458 : vector<8x8x128xf32>
    %460 = vector.shape_cast %459 : vector<8x8x128xf32> to vector<64x128xf32>
    %c0_160 = arith.constant 0 : index
    %c0_161 = arith.constant 0 : index
    %461 = vector.load %arg22[%c0_160, %c0_161] : memref<64x128xf32, #tpu.memory_space<vmem>>, vector<64x128xf32>
    tpu.vector_store %arg22[%c0_160, %c0_161], %460 {strides = array<i32>} : memref<64x128xf32, #tpu.memory_space<vmem>>, vector<64x128xf32>,
    %c0_162 = arith.constant 0 : index
    %c0_163 = arith.constant 0 : index
    %462 = vector.load %arg13[%c0_162, %c0_163] : memref<32x128xbf16, #tpu.memory_space<vmem>>, vector<32x128xbf16>
    %cst_164 = arith.constant 0.000000e+00 : f32
    %463 = vector.broadcast %cst_164 : f32 to vector<8x32xf32>
    %cst_165 = arith.constant 0.000000e+00 : f32
    %464 = vector.broadcast %cst_165 : f32 to vector<8x32xf32>
    %c0_i32_166 = arith.constant 0 : i32
    %c8_i32_167 = arith.constant 8 : i32
    %465 = arith.muli %c0_i32_166, %c8_i32_167 : i32
    %466 = tpu.assume_multiple %465, 8 : i32
    %467 = arith.index_cast %466 : i32 to index
    %c0_168 = arith.constant 0 : index
    %468 = vector.load %arg22[%467, %c0_168] : memref<64x128xf32, #tpu.memory_space<vmem>>, vector<8x128xf32>
    %469 = arith.truncf %463 : vector<8x32xf32> to vector<8x32xbf16>
    %cst_169 = arith.constant dense<0.000000e+00> : vector<8x128xf32>
    %470 = tpu.matmul %469, %462, %cst_169 {dimension_numbers = #tpu.dot_dimension_numbers<[1], [0], [0], [1], [0, 0, 1, 1], [], []>} : vector<8x32xbf16>, vector<32x128xbf16>, vector<8x128xf32> -> vector<8x128xf32>
    %471 = arith.addf %468, %470 : vector<8x128xf32>
    %cst_170 = arith.constant 5.000000e-01 : f32
    %472 = vector.broadcast %cst_170 : f32 to vector<8x128xf32>
    %473 = arith.mulf %472, %471 : vector<8x128xf32>
    %474 = math.tanh %473 : vector<8x128xf32>
    %cst_171 = arith.constant 5.000000e-01 : f32
    %475 = vector.broadcast %cst_171 : f32 to vector<8x128xf32>
    %476 = arith.mulf %475, %474 : vector<8x128xf32>
    %cst_172 = arith.constant 5.000000e-01 : f32
    %477 = vector.broadcast %cst_172 : f32 to vector<8x128xf32>
    %478 = arith.addf %476, %477 : vector<8x128xf32>
    %479 = math.tanh %471 : vector<8x128xf32>
    %480 = vector.extract_strided_slice %478 {offsets = [0, 0], sizes = [8, 32], strides = [1, 1]} : vector<8x128xf32> to vector<8x32xf32>
    %481 = vector.extract_strided_slice %478 {offsets = [0, 32], sizes = [8, 32], strides = [1, 1]} : vector<8x128xf32> to vector<8x32xf32>
    %482 = vector.extract_strided_slice %478 {offsets = [0, 96], sizes = [8, 32], strides = [1, 1]} : vector<8x128xf32> to vector<8x32xf32>
    %483 = vector.extract_strided_slice %479 {offsets = [0, 64], sizes = [8, 32], strides = [1, 1]} : vector<8x128xf32> to vector<8x32xf32>
    %484 = arith.mulf %481, %464 : vector<8x32xf32>
    %485 = arith.mulf %480, %483 : vector<8x32xf32>
    %486 = arith.addf %484, %485 : vector<8x32xf32>
    %487 = math.tanh %486 : vector<8x32xf32>
    %488 = arith.mulf %482, %487 : vector<8x32xf32>
    %489 = arith.index_cast %466 : i32 to index
    %c0_173 = arith.constant 0 : index
    %490 = vector.load %arg21[%489, %c0_173] : memref<64x32xf32, #tpu.memory_space<vmem>>, vector<8x32xf32>
    tpu.vector_store %arg21[%489, %c0_173], %488 {strides = array<i32>} : memref<64x32xf32, #tpu.memory_space<vmem>>, vector<8x32xf32>,
    %c1_i32_174 = arith.constant 1 : i32
    %c8_i32_175 = arith.constant 8 : i32
    %491 = arith.muli %c1_i32_174, %c8_i32_175 : i32
    %492 = tpu.assume_multiple %491, 8 : i32
    %493 = arith.index_cast %492 : i32 to index
    %c0_176 = arith.constant 0 : index
    %494 = vector.load %arg22[%493, %c0_176] : memref<64x128xf32, #tpu.memory_space<vmem>>, vector<8x128xf32>
    %495 = arith.truncf %488 : vector<8x32xf32> to vector<8x32xbf16>
    %cst_177 = arith.constant dense<0.000000e+00> : vector<8x128xf32>
    %496 = tpu.matmul %495, %462, %cst_177 {dimension_numbers = #tpu.dot_dimension_numbers<[1], [0], [0], [1], [0, 0, 1, 1], [], []>} : vector<8x32xbf16>, vector<32x128xbf16>, vector<8x128xf32> -> vector<8x128xf32>
    %497 = arith.addf %494, %496 : vector<8x128xf32>
    %cst_178 = arith.constant 5.000000e-01 : f32
    %498 = vector.broadcast %cst_178 : f32 to vector<8x128xf32>
    %499 = arith.mulf %498, %497 : vector<8x128xf32>
    %500 = math.tanh %499 : vector<8x128xf32>
    %cst_179 = arith.constant 5.000000e-01 : f32
    %501 = vector.broadcast %cst_179 : f32 to vector<8x128xf32>
    %502 = arith.mulf %501, %500 : vector<8x128xf32>
    %cst_180 = arith.constant 5.000000e-01 : f32
    %503 = vector.broadcast %cst_180 : f32 to vector<8x128xf32>
    %504 = arith.addf %502, %503 : vector<8x128xf32>
    %505 = math.tanh %497 : vector<8x128xf32>
    %506 = vector.extract_strided_slice %504 {offsets = [0, 0], sizes = [8, 32], strides = [1, 1]} : vector<8x128xf32> to vector<8x32xf32>
    %507 = vector.extract_strided_slice %504 {offsets = [0, 32], sizes = [8, 32], strides = [1, 1]} : vector<8x128xf32> to vector<8x32xf32>
    %508 = vector.extract_strided_slice %504 {offsets = [0, 96], sizes = [8, 32], strides = [1, 1]} : vector<8x128xf32> to vector<8x32xf32>
    %509 = vector.extract_strided_slice %505 {offsets = [0, 64], sizes = [8, 32], strides = [1, 1]} : vector<8x128xf32> to vector<8x32xf32>
    %510 = arith.mulf %507, %486 : vector<8x32xf32>
    %511 = arith.mulf %506, %509 : vector<8x32xf32>
    %512 = arith.addf %510, %511 : vector<8x32xf32>
    %513 = math.tanh %512 : vector<8x32xf32>
    %514 = arith.mulf %508, %513 : vector<8x32xf32>
    %515 = arith.index_cast %492 : i32 to index
    %c0_181 = arith.constant 0 : index
    %516 = vector.load %arg21[%515, %c0_181] : memref<64x32xf32, #tpu.memory_space<vmem>>, vector<8x32xf32>
    tpu.vector_store %arg21[%515, %c0_181], %514 {strides = array<i32>} : memref<64x32xf32, #tpu.memory_space<vmem>>, vector<8x32xf32>,
    %c2_i32_182 = arith.constant 2 : i32
    %c8_i32_183 = arith.constant 8 : i32
    %517 = arith.muli %c2_i32_182, %c8_i32_183 : i32
    %518 = tpu.assume_multiple %517, 8 : i32
    %519 = arith.index_cast %518 : i32 to index
    %c0_184 = arith.constant 0 : index
    %520 = vector.load %arg22[%519, %c0_184] : memref<64x128xf32, #tpu.memory_space<vmem>>, vector<8x128xf32>
    %521 = arith.truncf %514 : vector<8x32xf32> to vector<8x32xbf16>
    %cst_185 = arith.constant dense<0.000000e+00> : vector<8x128xf32>
    %522 = tpu.matmul %521, %462, %cst_185 {dimension_numbers = #tpu.dot_dimension_numbers<[1], [0], [0], [1], [0, 0, 1, 1], [], []>} : vector<8x32xbf16>, vector<32x128xbf16>, vector<8x128xf32> -> vector<8x128xf32>
    %523 = arith.addf %520, %522 : vector<8x128xf32>
    %cst_186 = arith.constant 5.000000e-01 : f32
    %524 = vector.broadcast %cst_186 : f32 to vector<8x128xf32>
    %525 = arith.mulf %524, %523 : vector<8x128xf32>
    %526 = math.tanh %525 : vector<8x128xf32>
    %cst_187 = arith.constant 5.000000e-01 : f32
    %527 = vector.broadcast %cst_187 : f32 to vector<8x128xf32>
    %528 = arith.mulf %527, %526 : vector<8x128xf32>
    %cst_188 = arith.constant 5.000000e-01 : f32
    %529 = vector.broadcast %cst_188 : f32 to vector<8x128xf32>
    %530 = arith.addf %528, %529 : vector<8x128xf32>
    %531 = math.tanh %523 : vector<8x128xf32>
    %532 = vector.extract_strided_slice %530 {offsets = [0, 0], sizes = [8, 32], strides = [1, 1]} : vector<8x128xf32> to vector<8x32xf32>
    %533 = vector.extract_strided_slice %530 {offsets = [0, 32], sizes = [8, 32], strides = [1, 1]} : vector<8x128xf32> to vector<8x32xf32>
    %534 = vector.extract_strided_slice %530 {offsets = [0, 96], sizes = [8, 32], strides = [1, 1]} : vector<8x128xf32> to vector<8x32xf32>
    %535 = vector.extract_strided_slice %531 {offsets = [0, 64], sizes = [8, 32], strides = [1, 1]} : vector<8x128xf32> to vector<8x32xf32>
    %536 = arith.mulf %533, %512 : vector<8x32xf32>
    %537 = arith.mulf %532, %535 : vector<8x32xf32>
    %538 = arith.addf %536, %537 : vector<8x32xf32>
    %539 = math.tanh %538 : vector<8x32xf32>
    %540 = arith.mulf %534, %539 : vector<8x32xf32>
    %541 = arith.index_cast %518 : i32 to index
    %c0_189 = arith.constant 0 : index
    %542 = vector.load %arg21[%541, %c0_189] : memref<64x32xf32, #tpu.memory_space<vmem>>, vector<8x32xf32>
    tpu.vector_store %arg21[%541, %c0_189], %540 {strides = array<i32>} : memref<64x32xf32, #tpu.memory_space<vmem>>, vector<8x32xf32>,
    %c3_i32_190 = arith.constant 3 : i32
    %c8_i32_191 = arith.constant 8 : i32
    %543 = arith.muli %c3_i32_190, %c8_i32_191 : i32
    %544 = tpu.assume_multiple %543, 8 : i32
    %545 = arith.index_cast %544 : i32 to index
    %c0_192 = arith.constant 0 : index
    %546 = vector.load %arg22[%545, %c0_192] : memref<64x128xf32, #tpu.memory_space<vmem>>, vector<8x128xf32>
    %547 = arith.truncf %540 : vector<8x32xf32> to vector<8x32xbf16>
    %cst_193 = arith.constant dense<0.000000e+00> : vector<8x128xf32>
    %548 = tpu.matmul %547, %462, %cst_193 {dimension_numbers = #tpu.dot_dimension_numbers<[1], [0], [0], [1], [0, 0, 1, 1], [], []>} : vector<8x32xbf16>, vector<32x128xbf16>, vector<8x128xf32> -> vector<8x128xf32>
    %549 = arith.addf %546, %548 : vector<8x128xf32>
    %cst_194 = arith.constant 5.000000e-01 : f32
    %550 = vector.broadcast %cst_194 : f32 to vector<8x128xf32>
    %551 = arith.mulf %550, %549 : vector<8x128xf32>
    %552 = math.tanh %551 : vector<8x128xf32>
    %cst_195 = arith.constant 5.000000e-01 : f32
    %553 = vector.broadcast %cst_195 : f32 to vector<8x128xf32>
    %554 = arith.mulf %553, %552 : vector<8x128xf32>
    %cst_196 = arith.constant 5.000000e-01 : f32
    %555 = vector.broadcast %cst_196 : f32 to vector<8x128xf32>
    %556 = arith.addf %554, %555 : vector<8x128xf32>
    %557 = math.tanh %549 : vector<8x128xf32>
    %558 = vector.extract_strided_slice %556 {offsets = [0, 0], sizes = [8, 32], strides = [1, 1]} : vector<8x128xf32> to vector<8x32xf32>
    %559 = vector.extract_strided_slice %556 {offsets = [0, 32], sizes = [8, 32], strides = [1, 1]} : vector<8x128xf32> to vector<8x32xf32>
    %560 = vector.extract_strided_slice %556 {offsets = [0, 96], sizes = [8, 32], strides = [1, 1]} : vector<8x128xf32> to vector<8x32xf32>
    %561 = vector.extract_strided_slice %557 {offsets = [0, 64], sizes = [8, 32], strides = [1, 1]} : vector<8x128xf32> to vector<8x32xf32>
    %562 = arith.mulf %559, %538 : vector<8x32xf32>
    %563 = arith.mulf %558, %561 : vector<8x32xf32>
    %564 = arith.addf %562, %563 : vector<8x32xf32>
    %565 = math.tanh %564 : vector<8x32xf32>
    %566 = arith.mulf %560, %565 : vector<8x32xf32>
    %567 = arith.index_cast %544 : i32 to index
    %c0_197 = arith.constant 0 : index
    %568 = vector.load %arg21[%567, %c0_197] : memref<64x32xf32, #tpu.memory_space<vmem>>, vector<8x32xf32>
    tpu.vector_store %arg21[%567, %c0_197], %566 {strides = array<i32>} : memref<64x32xf32, #tpu.memory_space<vmem>>, vector<8x32xf32>,
    %c4_i32_198 = arith.constant 4 : i32
    %c8_i32_199 = arith.constant 8 : i32
    %569 = arith.muli %c4_i32_198, %c8_i32_199 : i32
    %570 = tpu.assume_multiple %569, 8 : i32
    %571 = arith.index_cast %570 : i32 to index
    %c0_200 = arith.constant 0 : index
    %572 = vector.load %arg22[%571, %c0_200] : memref<64x128xf32, #tpu.memory_space<vmem>>, vector<8x128xf32>
    %573 = arith.truncf %566 : vector<8x32xf32> to vector<8x32xbf16>
    %cst_201 = arith.constant dense<0.000000e+00> : vector<8x128xf32>
    %574 = tpu.matmul %573, %462, %cst_201 {dimension_numbers = #tpu.dot_dimension_numbers<[1], [0], [0], [1], [0, 0, 1, 1], [], []>} : vector<8x32xbf16>, vector<32x128xbf16>, vector<8x128xf32> -> vector<8x128xf32>
    %575 = arith.addf %572, %574 : vector<8x128xf32>
    %cst_202 = arith.constant 5.000000e-01 : f32
    %576 = vector.broadcast %cst_202 : f32 to vector<8x128xf32>
    %577 = arith.mulf %576, %575 : vector<8x128xf32>
    %578 = math.tanh %577 : vector<8x128xf32>
    %cst_203 = arith.constant 5.000000e-01 : f32
    %579 = vector.broadcast %cst_203 : f32 to vector<8x128xf32>
    %580 = arith.mulf %579, %578 : vector<8x128xf32>
    %cst_204 = arith.constant 5.000000e-01 : f32
    %581 = vector.broadcast %cst_204 : f32 to vector<8x128xf32>
    %582 = arith.addf %580, %581 : vector<8x128xf32>
    %583 = math.tanh %575 : vector<8x128xf32>
    %584 = vector.extract_strided_slice %582 {offsets = [0, 0], sizes = [8, 32], strides = [1, 1]} : vector<8x128xf32> to vector<8x32xf32>
    %585 = vector.extract_strided_slice %582 {offsets = [0, 32], sizes = [8, 32], strides = [1, 1]} : vector<8x128xf32> to vector<8x32xf32>
    %586 = vector.extract_strided_slice %582 {offsets = [0, 96], sizes = [8, 32], strides = [1, 1]} : vector<8x128xf32> to vector<8x32xf32>
    %587 = vector.extract_strided_slice %583 {offsets = [0, 64], sizes = [8, 32], strides = [1, 1]} : vector<8x128xf32> to vector<8x32xf32>
    %588 = arith.mulf %585, %564 : vector<8x32xf32>
    %589 = arith.mulf %584, %587 : vector<8x32xf32>
    %590 = arith.addf %588, %589 : vector<8x32xf32>
    %591 = math.tanh %590 : vector<8x32xf32>
    %592 = arith.mulf %586, %591 : vector<8x32xf32>
    %593 = arith.index_cast %570 : i32 to index
    %c0_205 = arith.constant 0 : index
    %594 = vector.load %arg21[%593, %c0_205] : memref<64x32xf32, #tpu.memory_space<vmem>>, vector<8x32xf32>
    tpu.vector_store %arg21[%593, %c0_205], %592 {strides = array<i32>} : memref<64x32xf32, #tpu.memory_space<vmem>>, vector<8x32xf32>,
    %c5_i32_206 = arith.constant 5 : i32
    %c8_i32_207 = arith.constant 8 : i32
    %595 = arith.muli %c5_i32_206, %c8_i32_207 : i32
    %596 = tpu.assume_multiple %595, 8 : i32
    %597 = arith.index_cast %596 : i32 to index
    %c0_208 = arith.constant 0 : index
    %598 = vector.load %arg22[%597, %c0_208] : memref<64x128xf32, #tpu.memory_space<vmem>>, vector<8x128xf32>
    %599 = arith.truncf %592 : vector<8x32xf32> to vector<8x32xbf16>
    %cst_209 = arith.constant dense<0.000000e+00> : vector<8x128xf32>
    %600 = tpu.matmul %599, %462, %cst_209 {dimension_numbers = #tpu.dot_dimension_numbers<[1], [0], [0], [1], [0, 0, 1, 1], [], []>} : vector<8x32xbf16>, vector<32x128xbf16>, vector<8x128xf32> -> vector<8x128xf32>
    %601 = arith.addf %598, %600 : vector<8x128xf32>
    %cst_210 = arith.constant 5.000000e-01 : f32
    %602 = vector.broadcast %cst_210 : f32 to vector<8x128xf32>
    %603 = arith.mulf %602, %601 : vector<8x128xf32>
    %604 = math.tanh %603 : vector<8x128xf32>
    %cst_211 = arith.constant 5.000000e-01 : f32
    %605 = vector.broadcast %cst_211 : f32 to vector<8x128xf32>
    %606 = arith.mulf %605, %604 : vector<8x128xf32>
    %cst_212 = arith.constant 5.000000e-01 : f32
    %607 = vector.broadcast %cst_212 : f32 to vector<8x128xf32>
    %608 = arith.addf %606, %607 : vector<8x128xf32>
    %609 = math.tanh %601 : vector<8x128xf32>
    %610 = vector.extract_strided_slice %608 {offsets = [0, 0], sizes = [8, 32], strides = [1, 1]} : vector<8x128xf32> to vector<8x32xf32>
    %611 = vector.extract_strided_slice %608 {offsets = [0, 32], sizes = [8, 32], strides = [1, 1]} : vector<8x128xf32> to vector<8x32xf32>
    %612 = vector.extract_strided_slice %608 {offsets = [0, 96], sizes = [8, 32], strides = [1, 1]} : vector<8x128xf32> to vector<8x32xf32>
    %613 = vector.extract_strided_slice %609 {offsets = [0, 64], sizes = [8, 32], strides = [1, 1]} : vector<8x128xf32> to vector<8x32xf32>
    %614 = arith.mulf %611, %590 : vector<8x32xf32>
    %615 = arith.mulf %610, %613 : vector<8x32xf32>
    %616 = arith.addf %614, %615 : vector<8x32xf32>
    %617 = math.tanh %616 : vector<8x32xf32>
    %618 = arith.mulf %612, %617 : vector<8x32xf32>
    %619 = arith.index_cast %596 : i32 to index
    %c0_213 = arith.constant 0 : index
    %620 = vector.load %arg21[%619, %c0_213] : memref<64x32xf32, #tpu.memory_space<vmem>>, vector<8x32xf32>
    tpu.vector_store %arg21[%619, %c0_213], %618 {strides = array<i32>} : memref<64x32xf32, #tpu.memory_space<vmem>>, vector<8x32xf32>,
    %c6_i32_214 = arith.constant 6 : i32
    %c8_i32_215 = arith.constant 8 : i32
    %621 = arith.muli %c6_i32_214, %c8_i32_215 : i32
    %622 = tpu.assume_multiple %621, 8 : i32
    %623 = arith.index_cast %622 : i32 to index
    %c0_216 = arith.constant 0 : index
    %624 = vector.load %arg22[%623, %c0_216] : memref<64x128xf32, #tpu.memory_space<vmem>>, vector<8x128xf32>
    %625 = arith.truncf %618 : vector<8x32xf32> to vector<8x32xbf16>
    %cst_217 = arith.constant dense<0.000000e+00> : vector<8x128xf32>
    %626 = tpu.matmul %625, %462, %cst_217 {dimension_numbers = #tpu.dot_dimension_numbers<[1], [0], [0], [1], [0, 0, 1, 1], [], []>} : vector<8x32xbf16>, vector<32x128xbf16>, vector<8x128xf32> -> vector<8x128xf32>
    %627 = arith.addf %624, %626 : vector<8x128xf32>
    %cst_218 = arith.constant 5.000000e-01 : f32
    %628 = vector.broadcast %cst_218 : f32 to vector<8x128xf32>
    %629 = arith.mulf %628, %627 : vector<8x128xf32>
    %630 = math.tanh %629 : vector<8x128xf32>
    %cst_219 = arith.constant 5.000000e-01 : f32
    %631 = vector.broadcast %cst_219 : f32 to vector<8x128xf32>
    %632 = arith.mulf %631, %630 : vector<8x128xf32>
    %cst_220 = arith.constant 5.000000e-01 : f32
    %633 = vector.broadcast %cst_220 : f32 to vector<8x128xf32>
    %634 = arith.addf %632, %633 : vector<8x128xf32>
    %635 = math.tanh %627 : vector<8x128xf32>
    %636 = vector.extract_strided_slice %634 {offsets = [0, 0], sizes = [8, 32], strides = [1, 1]} : vector<8x128xf32> to vector<8x32xf32>
    %637 = vector.extract_strided_slice %634 {offsets = [0, 32], sizes = [8, 32], strides = [1, 1]} : vector<8x128xf32> to vector<8x32xf32>
    %638 = vector.extract_strided_slice %634 {offsets = [0, 96], sizes = [8, 32], strides = [1, 1]} : vector<8x128xf32> to vector<8x32xf32>
    %639 = vector.extract_strided_slice %635 {offsets = [0, 64], sizes = [8, 32], strides = [1, 1]} : vector<8x128xf32> to vector<8x32xf32>
    %640 = arith.mulf %637, %616 : vector<8x32xf32>
    %641 = arith.mulf %636, %639 : vector<8x32xf32>
    %642 = arith.addf %640, %641 : vector<8x32xf32>
    %643 = math.tanh %642 : vector<8x32xf32>
    %644 = arith.mulf %638, %643 : vector<8x32xf32>
    %645 = arith.index_cast %622 : i32 to index
    %c0_221 = arith.constant 0 : index
    %646 = vector.load %arg21[%645, %c0_221] : memref<64x32xf32, #tpu.memory_space<vmem>>, vector<8x32xf32>
    tpu.vector_store %arg21[%645, %c0_221], %644 {strides = array<i32>} : memref<64x32xf32, #tpu.memory_space<vmem>>, vector<8x32xf32>,
    %c7_i32_222 = arith.constant 7 : i32
    %c8_i32_223 = arith.constant 8 : i32
    %647 = arith.muli %c7_i32_222, %c8_i32_223 : i32
    %648 = tpu.assume_multiple %647, 8 : i32
    %649 = arith.index_cast %648 : i32 to index
    %c0_224 = arith.constant 0 : index
    %650 = vector.load %arg22[%649, %c0_224] : memref<64x128xf32, #tpu.memory_space<vmem>>, vector<8x128xf32>
    %651 = arith.truncf %644 : vector<8x32xf32> to vector<8x32xbf16>
    %cst_225 = arith.constant dense<0.000000e+00> : vector<8x128xf32>
    %652 = tpu.matmul %651, %462, %cst_225 {dimension_numbers = #tpu.dot_dimension_numbers<[1], [0], [0], [1], [0, 0, 1, 1], [], []>} : vector<8x32xbf16>, vector<32x128xbf16>, vector<8x128xf32> -> vector<8x128xf32>
    %653 = arith.addf %650, %652 : vector<8x128xf32>
    %cst_226 = arith.constant 5.000000e-01 : f32
    %654 = vector.broadcast %cst_226 : f32 to vector<8x128xf32>
    %655 = arith.mulf %654, %653 : vector<8x128xf32>
    %656 = math.tanh %655 : vector<8x128xf32>
    %cst_227 = arith.constant 5.000000e-01 : f32
    %657 = vector.broadcast %cst_227 : f32 to vector<8x128xf32>
    %658 = arith.mulf %657, %656 : vector<8x128xf32>
    %cst_228 = arith.constant 5.000000e-01 : f32
    %659 = vector.broadcast %cst_228 : f32 to vector<8x128xf32>
    %660 = arith.addf %658, %659 : vector<8x128xf32>
    %661 = math.tanh %653 : vector<8x128xf32>
    %662 = vector.extract_strided_slice %660 {offsets = [0, 0], sizes = [8, 32], strides = [1, 1]} : vector<8x128xf32> to vector<8x32xf32>
    %663 = vector.extract_strided_slice %660 {offsets = [0, 32], sizes = [8, 32], strides = [1, 1]} : vector<8x128xf32> to vector<8x32xf32>
    %664 = vector.extract_strided_slice %660 {offsets = [0, 96], sizes = [8, 32], strides = [1, 1]} : vector<8x128xf32> to vector<8x32xf32>
    %665 = vector.extract_strided_slice %661 {offsets = [0, 64], sizes = [8, 32], strides = [1, 1]} : vector<8x128xf32> to vector<8x32xf32>
    %666 = arith.mulf %663, %642 : vector<8x32xf32>
    %667 = arith.mulf %662, %665 : vector<8x32xf32>
    %668 = arith.addf %666, %667 : vector<8x32xf32>
    %669 = math.tanh %668 : vector<8x32xf32>
    %670 = arith.mulf %664, %669 : vector<8x32xf32>
    %671 = arith.index_cast %648 : i32 to index
    %c0_229 = arith.constant 0 : index
    %672 = vector.load %arg21[%671, %c0_229] : memref<64x32xf32, #tpu.memory_space<vmem>>, vector<8x32xf32>
    tpu.vector_store %arg21[%671, %c0_229], %670 {strides = array<i32>} : memref<64x32xf32, #tpu.memory_space<vmem>>, vector<8x32xf32>,
    %c8_i32_230 = arith.constant 8 : i32
    %c0_231 = arith.constant 0 : index
    %c0_232 = arith.constant 0 : index
    %673 = vector.load %arg21[%c0_231, %c0_232] : memref<64x32xf32, #tpu.memory_space<vmem>>, vector<64x32xf32>
    %674 = arith.truncf %673 : vector<64x32xf32> to vector<64x32xbf16>
    %c0_233 = arith.constant 0 : index
    %c0_234 = arith.constant 0 : index
    %675 = vector.load %arg15[%c0_233, %c0_234] : memref<32x128xbf16, #tpu.memory_space<vmem>>, vector<32x128xbf16>
    %cst_235 = arith.constant dense<0.000000e+00> : vector<64x128xf32>
    %676 = tpu.matmul %674, %675, %cst_235 {dimension_numbers = #tpu.dot_dimension_numbers<[1], [0], [0], [1], [0, 0, 1, 1], [], []>} : vector<64x32xbf16>, vector<32x128xbf16>, vector<64x128xf32> -> vector<64x128xf32>
    %c0_236 = arith.constant 0 : index
    %c0_237 = arith.constant 0 : index
    %677 = vector.load %arg17[%c0_236, %c0_237] : memref<1x128xf32, #tpu.memory_space<vmem>>, vector<1x128xf32>
    %678 = vector.broadcast %677 : vector<1x128xf32> to vector<64x128xf32>
    %679 = arith.addf %676, %678 : vector<64x128xf32>
    %c0_238 = arith.constant 0 : index
    %c0_239 = arith.constant 0 : index
    %680 = vector.load %arg22[%c0_238, %c0_239] : memref<64x128xf32, #tpu.memory_space<vmem>>, vector<64x128xf32>
    tpu.vector_store %arg22[%c0_238, %c0_239], %679 {strides = array<i32>} : memref<64x128xf32, #tpu.memory_space<vmem>>, vector<64x128xf32>,
    %c0_240 = arith.constant 0 : index
    %c0_241 = arith.constant 0 : index
    %681 = vector.load %arg16[%c0_240, %c0_241] : memref<32x128xbf16, #tpu.memory_space<vmem>>, vector<32x128xbf16>
    %cst_242 = arith.constant 0.000000e+00 : f32
    %682 = vector.broadcast %cst_242 : f32 to vector<8x32xf32>
    %cst_243 = arith.constant 0.000000e+00 : f32
    %683 = vector.broadcast %cst_243 : f32 to vector<8x32xf32>
    %c0_i32_244 = arith.constant 0 : i32
    %c8_i32_245 = arith.constant 8 : i32
    %684 = arith.muli %c0_i32_244, %c8_i32_245 : i32
    %685 = tpu.assume_multiple %684, 8 : i32
    %686 = arith.index_cast %685 : i32 to index
    %c0_246 = arith.constant 0 : index
    %687 = vector.load %arg22[%686, %c0_246] : memref<64x128xf32, #tpu.memory_space<vmem>>, vector<8x128xf32>
    %688 = arith.truncf %682 : vector<8x32xf32> to vector<8x32xbf16>
    %cst_247 = arith.constant dense<0.000000e+00> : vector<8x128xf32>
    %689 = tpu.matmul %688, %681, %cst_247 {dimension_numbers = #tpu.dot_dimension_numbers<[1], [0], [0], [1], [0, 0, 1, 1], [], []>} : vector<8x32xbf16>, vector<32x128xbf16>, vector<8x128xf32> -> vector<8x128xf32>
    %690 = arith.addf %687, %689 : vector<8x128xf32>
    %cst_248 = arith.constant 5.000000e-01 : f32
    %691 = vector.broadcast %cst_248 : f32 to vector<8x128xf32>
    %692 = arith.mulf %691, %690 : vector<8x128xf32>
    %693 = math.tanh %692 : vector<8x128xf32>
    %cst_249 = arith.constant 5.000000e-01 : f32
    %694 = vector.broadcast %cst_249 : f32 to vector<8x128xf32>
    %695 = arith.mulf %694, %693 : vector<8x128xf32>
    %cst_250 = arith.constant 5.000000e-01 : f32
    %696 = vector.broadcast %cst_250 : f32 to vector<8x128xf32>
    %697 = arith.addf %695, %696 : vector<8x128xf32>
    %698 = math.tanh %690 : vector<8x128xf32>
    %699 = vector.extract_strided_slice %697 {offsets = [0, 0], sizes = [8, 32], strides = [1, 1]} : vector<8x128xf32> to vector<8x32xf32>
    %700 = vector.extract_strided_slice %697 {offsets = [0, 32], sizes = [8, 32], strides = [1, 1]} : vector<8x128xf32> to vector<8x32xf32>
    %701 = vector.extract_strided_slice %697 {offsets = [0, 96], sizes = [8, 32], strides = [1, 1]} : vector<8x128xf32> to vector<8x32xf32>
    %702 = vector.extract_strided_slice %698 {offsets = [0, 64], sizes = [8, 32], strides = [1, 1]} : vector<8x128xf32> to vector<8x32xf32>
    %703 = arith.mulf %700, %683 : vector<8x32xf32>
    %704 = arith.mulf %699, %702 : vector<8x32xf32>
    %705 = arith.addf %703, %704 : vector<8x32xf32>
    %706 = math.tanh %705 : vector<8x32xf32>
    %707 = arith.mulf %701, %706 : vector<8x32xf32>
    %708 = arith.index_cast %685 : i32 to index
    %c0_251 = arith.constant 0 : index
    %709 = vector.load %arg21[%708, %c0_251] : memref<64x32xf32, #tpu.memory_space<vmem>>, vector<8x32xf32>
    tpu.vector_store %arg21[%708, %c0_251], %707 {strides = array<i32>} : memref<64x32xf32, #tpu.memory_space<vmem>>, vector<8x32xf32>,
    %c1_i32_252 = arith.constant 1 : i32
    %c8_i32_253 = arith.constant 8 : i32
    %710 = arith.muli %c1_i32_252, %c8_i32_253 : i32
    %711 = tpu.assume_multiple %710, 8 : i32
    %712 = arith.index_cast %711 : i32 to index
    %c0_254 = arith.constant 0 : index
    %713 = vector.load %arg22[%712, %c0_254] : memref<64x128xf32, #tpu.memory_space<vmem>>, vector<8x128xf32>
    %714 = arith.truncf %707 : vector<8x32xf32> to vector<8x32xbf16>
    %cst_255 = arith.constant dense<0.000000e+00> : vector<8x128xf32>
    %715 = tpu.matmul %714, %681, %cst_255 {dimension_numbers = #tpu.dot_dimension_numbers<[1], [0], [0], [1], [0, 0, 1, 1], [], []>} : vector<8x32xbf16>, vector<32x128xbf16>, vector<8x128xf32> -> vector<8x128xf32>
    %716 = arith.addf %713, %715 : vector<8x128xf32>
    %cst_256 = arith.constant 5.000000e-01 : f32
    %717 = vector.broadcast %cst_256 : f32 to vector<8x128xf32>
    %718 = arith.mulf %717, %716 : vector<8x128xf32>
    %719 = math.tanh %718 : vector<8x128xf32>
    %cst_257 = arith.constant 5.000000e-01 : f32
    %720 = vector.broadcast %cst_257 : f32 to vector<8x128xf32>
    %721 = arith.mulf %720, %719 : vector<8x128xf32>
    %cst_258 = arith.constant 5.000000e-01 : f32
    %722 = vector.broadcast %cst_258 : f32 to vector<8x128xf32>
    %723 = arith.addf %721, %722 : vector<8x128xf32>
    %724 = math.tanh %716 : vector<8x128xf32>
    %725 = vector.extract_strided_slice %723 {offsets = [0, 0], sizes = [8, 32], strides = [1, 1]} : vector<8x128xf32> to vector<8x32xf32>
    %726 = vector.extract_strided_slice %723 {offsets = [0, 32], sizes = [8, 32], strides = [1, 1]} : vector<8x128xf32> to vector<8x32xf32>
    %727 = vector.extract_strided_slice %723 {offsets = [0, 96], sizes = [8, 32], strides = [1, 1]} : vector<8x128xf32> to vector<8x32xf32>
    %728 = vector.extract_strided_slice %724 {offsets = [0, 64], sizes = [8, 32], strides = [1, 1]} : vector<8x128xf32> to vector<8x32xf32>
    %729 = arith.mulf %726, %705 : vector<8x32xf32>
    %730 = arith.mulf %725, %728 : vector<8x32xf32>
    %731 = arith.addf %729, %730 : vector<8x32xf32>
    %732 = math.tanh %731 : vector<8x32xf32>
    %733 = arith.mulf %727, %732 : vector<8x32xf32>
    %734 = arith.index_cast %711 : i32 to index
    %c0_259 = arith.constant 0 : index
    %735 = vector.load %arg21[%734, %c0_259] : memref<64x32xf32, #tpu.memory_space<vmem>>, vector<8x32xf32>
    tpu.vector_store %arg21[%734, %c0_259], %733 {strides = array<i32>} : memref<64x32xf32, #tpu.memory_space<vmem>>, vector<8x32xf32>,
    %c2_i32_260 = arith.constant 2 : i32
    %c8_i32_261 = arith.constant 8 : i32
    %736 = arith.muli %c2_i32_260, %c8_i32_261 : i32
    %737 = tpu.assume_multiple %736, 8 : i32
    %738 = arith.index_cast %737 : i32 to index
    %c0_262 = arith.constant 0 : index
    %739 = vector.load %arg22[%738, %c0_262] : memref<64x128xf32, #tpu.memory_space<vmem>>, vector<8x128xf32>
    %740 = arith.truncf %733 : vector<8x32xf32> to vector<8x32xbf16>
    %cst_263 = arith.constant dense<0.000000e+00> : vector<8x128xf32>
    %741 = tpu.matmul %740, %681, %cst_263 {dimension_numbers = #tpu.dot_dimension_numbers<[1], [0], [0], [1], [0, 0, 1, 1], [], []>} : vector<8x32xbf16>, vector<32x128xbf16>, vector<8x128xf32> -> vector<8x128xf32>
    %742 = arith.addf %739, %741 : vector<8x128xf32>
    %cst_264 = arith.constant 5.000000e-01 : f32
    %743 = vector.broadcast %cst_264 : f32 to vector<8x128xf32>
    %744 = arith.mulf %743, %742 : vector<8x128xf32>
    %745 = math.tanh %744 : vector<8x128xf32>
    %cst_265 = arith.constant 5.000000e-01 : f32
    %746 = vector.broadcast %cst_265 : f32 to vector<8x128xf32>
    %747 = arith.mulf %746, %745 : vector<8x128xf32>
    %cst_266 = arith.constant 5.000000e-01 : f32
    %748 = vector.broadcast %cst_266 : f32 to vector<8x128xf32>
    %749 = arith.addf %747, %748 : vector<8x128xf32>
    %750 = math.tanh %742 : vector<8x128xf32>
    %751 = vector.extract_strided_slice %749 {offsets = [0, 0], sizes = [8, 32], strides = [1, 1]} : vector<8x128xf32> to vector<8x32xf32>
    %752 = vector.extract_strided_slice %749 {offsets = [0, 32], sizes = [8, 32], strides = [1, 1]} : vector<8x128xf32> to vector<8x32xf32>
    %753 = vector.extract_strided_slice %749 {offsets = [0, 96], sizes = [8, 32], strides = [1, 1]} : vector<8x128xf32> to vector<8x32xf32>
    %754 = vector.extract_strided_slice %750 {offsets = [0, 64], sizes = [8, 32], strides = [1, 1]} : vector<8x128xf32> to vector<8x32xf32>
    %755 = arith.mulf %752, %731 : vector<8x32xf32>
    %756 = arith.mulf %751, %754 : vector<8x32xf32>
    %757 = arith.addf %755, %756 : vector<8x32xf32>
    %758 = math.tanh %757 : vector<8x32xf32>
    %759 = arith.mulf %753, %758 : vector<8x32xf32>
    %760 = arith.index_cast %737 : i32 to index
    %c0_267 = arith.constant 0 : index
    %761 = vector.load %arg21[%760, %c0_267] : memref<64x32xf32, #tpu.memory_space<vmem>>, vector<8x32xf32>
    tpu.vector_store %arg21[%760, %c0_267], %759 {strides = array<i32>} : memref<64x32xf32, #tpu.memory_space<vmem>>, vector<8x32xf32>,
    %c3_i32_268 = arith.constant 3 : i32
    %c8_i32_269 = arith.constant 8 : i32
    %762 = arith.muli %c3_i32_268, %c8_i32_269 : i32
    %763 = tpu.assume_multiple %762, 8 : i32
    %764 = arith.index_cast %763 : i32 to index
    %c0_270 = arith.constant 0 : index
    %765 = vector.load %arg22[%764, %c0_270] : memref<64x128xf32, #tpu.memory_space<vmem>>, vector<8x128xf32>
    %766 = arith.truncf %759 : vector<8x32xf32> to vector<8x32xbf16>
    %cst_271 = arith.constant dense<0.000000e+00> : vector<8x128xf32>
    %767 = tpu.matmul %766, %681, %cst_271 {dimension_numbers = #tpu.dot_dimension_numbers<[1], [0], [0], [1], [0, 0, 1, 1], [], []>} : vector<8x32xbf16>, vector<32x128xbf16>, vector<8x128xf32> -> vector<8x128xf32>
    %768 = arith.addf %765, %767 : vector<8x128xf32>
    %cst_272 = arith.constant 5.000000e-01 : f32
    %769 = vector.broadcast %cst_272 : f32 to vector<8x128xf32>
    %770 = arith.mulf %769, %768 : vector<8x128xf32>
    %771 = math.tanh %770 : vector<8x128xf32>
    %cst_273 = arith.constant 5.000000e-01 : f32
    %772 = vector.broadcast %cst_273 : f32 to vector<8x128xf32>
    %773 = arith.mulf %772, %771 : vector<8x128xf32>
    %cst_274 = arith.constant 5.000000e-01 : f32
    %774 = vector.broadcast %cst_274 : f32 to vector<8x128xf32>
    %775 = arith.addf %773, %774 : vector<8x128xf32>
    %776 = math.tanh %768 : vector<8x128xf32>
    %777 = vector.extract_strided_slice %775 {offsets = [0, 0], sizes = [8, 32], strides = [1, 1]} : vector<8x128xf32> to vector<8x32xf32>
    %778 = vector.extract_strided_slice %775 {offsets = [0, 32], sizes = [8, 32], strides = [1, 1]} : vector<8x128xf32> to vector<8x32xf32>
    %779 = vector.extract_strided_slice %775 {offsets = [0, 96], sizes = [8, 32], strides = [1, 1]} : vector<8x128xf32> to vector<8x32xf32>
    %780 = vector.extract_strided_slice %776 {offsets = [0, 64], sizes = [8, 32], strides = [1, 1]} : vector<8x128xf32> to vector<8x32xf32>
    %781 = arith.mulf %778, %757 : vector<8x32xf32>
    %782 = arith.mulf %777, %780 : vector<8x32xf32>
    %783 = arith.addf %781, %782 : vector<8x32xf32>
    %784 = math.tanh %783 : vector<8x32xf32>
    %785 = arith.mulf %779, %784 : vector<8x32xf32>
    %786 = arith.index_cast %763 : i32 to index
    %c0_275 = arith.constant 0 : index
    %787 = vector.load %arg21[%786, %c0_275] : memref<64x32xf32, #tpu.memory_space<vmem>>, vector<8x32xf32>
    tpu.vector_store %arg21[%786, %c0_275], %785 {strides = array<i32>} : memref<64x32xf32, #tpu.memory_space<vmem>>, vector<8x32xf32>,
    %c4_i32_276 = arith.constant 4 : i32
    %c8_i32_277 = arith.constant 8 : i32
    %788 = arith.muli %c4_i32_276, %c8_i32_277 : i32
    %789 = tpu.assume_multiple %788, 8 : i32
    %790 = arith.index_cast %789 : i32 to index
    %c0_278 = arith.constant 0 : index
    %791 = vector.load %arg22[%790, %c0_278] : memref<64x128xf32, #tpu.memory_space<vmem>>, vector<8x128xf32>
    %792 = arith.truncf %785 : vector<8x32xf32> to vector<8x32xbf16>
    %cst_279 = arith.constant dense<0.000000e+00> : vector<8x128xf32>
    %793 = tpu.matmul %792, %681, %cst_279 {dimension_numbers = #tpu.dot_dimension_numbers<[1], [0], [0], [1], [0, 0, 1, 1], [], []>} : vector<8x32xbf16>, vector<32x128xbf16>, vector<8x128xf32> -> vector<8x128xf32>
    %794 = arith.addf %791, %793 : vector<8x128xf32>
    %cst_280 = arith.constant 5.000000e-01 : f32
    %795 = vector.broadcast %cst_280 : f32 to vector<8x128xf32>
    %796 = arith.mulf %795, %794 : vector<8x128xf32>
    %797 = math.tanh %796 : vector<8x128xf32>
    %cst_281 = arith.constant 5.000000e-01 : f32
    %798 = vector.broadcast %cst_281 : f32 to vector<8x128xf32>
    %799 = arith.mulf %798, %797 : vector<8x128xf32>
    %cst_282 = arith.constant 5.000000e-01 : f32
    %800 = vector.broadcast %cst_282 : f32 to vector<8x128xf32>
    %801 = arith.addf %799, %800 : vector<8x128xf32>
    %802 = math.tanh %794 : vector<8x128xf32>
    %803 = vector.extract_strided_slice %801 {offsets = [0, 0], sizes = [8, 32], strides = [1, 1]} : vector<8x128xf32> to vector<8x32xf32>
    %804 = vector.extract_strided_slice %801 {offsets = [0, 32], sizes = [8, 32], strides = [1, 1]} : vector<8x128xf32> to vector<8x32xf32>
    %805 = vector.extract_strided_slice %801 {offsets = [0, 96], sizes = [8, 32], strides = [1, 1]} : vector<8x128xf32> to vector<8x32xf32>
    %806 = vector.extract_strided_slice %802 {offsets = [0, 64], sizes = [8, 32], strides = [1, 1]} : vector<8x128xf32> to vector<8x32xf32>
    %807 = arith.mulf %804, %783 : vector<8x32xf32>
    %808 = arith.mulf %803, %806 : vector<8x32xf32>
    %809 = arith.addf %807, %808 : vector<8x32xf32>
    %810 = math.tanh %809 : vector<8x32xf32>
    %811 = arith.mulf %805, %810 : vector<8x32xf32>
    %812 = arith.index_cast %789 : i32 to index
    %c0_283 = arith.constant 0 : index
    %813 = vector.load %arg21[%812, %c0_283] : memref<64x32xf32, #tpu.memory_space<vmem>>, vector<8x32xf32>
    tpu.vector_store %arg21[%812, %c0_283], %811 {strides = array<i32>} : memref<64x32xf32, #tpu.memory_space<vmem>>, vector<8x32xf32>,
    %c5_i32_284 = arith.constant 5 : i32
    %c8_i32_285 = arith.constant 8 : i32
    %814 = arith.muli %c5_i32_284, %c8_i32_285 : i32
    %815 = tpu.assume_multiple %814, 8 : i32
    %816 = arith.index_cast %815 : i32 to index
    %c0_286 = arith.constant 0 : index
    %817 = vector.load %arg22[%816, %c0_286] : memref<64x128xf32, #tpu.memory_space<vmem>>, vector<8x128xf32>
    %818 = arith.truncf %811 : vector<8x32xf32> to vector<8x32xbf16>
    %cst_287 = arith.constant dense<0.000000e+00> : vector<8x128xf32>
    %819 = tpu.matmul %818, %681, %cst_287 {dimension_numbers = #tpu.dot_dimension_numbers<[1], [0], [0], [1], [0, 0, 1, 1], [], []>} : vector<8x32xbf16>, vector<32x128xbf16>, vector<8x128xf32> -> vector<8x128xf32>
    %820 = arith.addf %817, %819 : vector<8x128xf32>
    %cst_288 = arith.constant 5.000000e-01 : f32
    %821 = vector.broadcast %cst_288 : f32 to vector<8x128xf32>
    %822 = arith.mulf %821, %820 : vector<8x128xf32>
    %823 = math.tanh %822 : vector<8x128xf32>
    %cst_289 = arith.constant 5.000000e-01 : f32
    %824 = vector.broadcast %cst_289 : f32 to vector<8x128xf32>
    %825 = arith.mulf %824, %823 : vector<8x128xf32>
    %cst_290 = arith.constant 5.000000e-01 : f32
    %826 = vector.broadcast %cst_290 : f32 to vector<8x128xf32>
    %827 = arith.addf %825, %826 : vector<8x128xf32>
    %828 = math.tanh %820 : vector<8x128xf32>
    %829 = vector.extract_strided_slice %827 {offsets = [0, 0], sizes = [8, 32], strides = [1, 1]} : vector<8x128xf32> to vector<8x32xf32>
    %830 = vector.extract_strided_slice %827 {offsets = [0, 32], sizes = [8, 32], strides = [1, 1]} : vector<8x128xf32> to vector<8x32xf32>
    %831 = vector.extract_strided_slice %827 {offsets = [0, 96], sizes = [8, 32], strides = [1, 1]} : vector<8x128xf32> to vector<8x32xf32>
    %832 = vector.extract_strided_slice %828 {offsets = [0, 64], sizes = [8, 32], strides = [1, 1]} : vector<8x128xf32> to vector<8x32xf32>
    %833 = arith.mulf %830, %809 : vector<8x32xf32>
    %834 = arith.mulf %829, %832 : vector<8x32xf32>
    %835 = arith.addf %833, %834 : vector<8x32xf32>
    %836 = math.tanh %835 : vector<8x32xf32>
    %837 = arith.mulf %831, %836 : vector<8x32xf32>
    %838 = arith.index_cast %815 : i32 to index
    %c0_291 = arith.constant 0 : index
    %839 = vector.load %arg21[%838, %c0_291] : memref<64x32xf32, #tpu.memory_space<vmem>>, vector<8x32xf32>
    tpu.vector_store %arg21[%838, %c0_291], %837 {strides = array<i32>} : memref<64x32xf32, #tpu.memory_space<vmem>>, vector<8x32xf32>,
    %c6_i32_292 = arith.constant 6 : i32
    %c8_i32_293 = arith.constant 8 : i32
    %840 = arith.muli %c6_i32_292, %c8_i32_293 : i32
    %841 = tpu.assume_multiple %840, 8 : i32
    %842 = arith.index_cast %841 : i32 to index
    %c0_294 = arith.constant 0 : index
    %843 = vector.load %arg22[%842, %c0_294] : memref<64x128xf32, #tpu.memory_space<vmem>>, vector<8x128xf32>
    %844 = arith.truncf %837 : vector<8x32xf32> to vector<8x32xbf16>
    %cst_295 = arith.constant dense<0.000000e+00> : vector<8x128xf32>
    %845 = tpu.matmul %844, %681, %cst_295 {dimension_numbers = #tpu.dot_dimension_numbers<[1], [0], [0], [1], [0, 0, 1, 1], [], []>} : vector<8x32xbf16>, vector<32x128xbf16>, vector<8x128xf32> -> vector<8x128xf32>
    %846 = arith.addf %843, %845 : vector<8x128xf32>
    %cst_296 = arith.constant 5.000000e-01 : f32
    %847 = vector.broadcast %cst_296 : f32 to vector<8x128xf32>
    %848 = arith.mulf %847, %846 : vector<8x128xf32>
    %849 = math.tanh %848 : vector<8x128xf32>
    %cst_297 = arith.constant 5.000000e-01 : f32
    %850 = vector.broadcast %cst_297 : f32 to vector<8x128xf32>
    %851 = arith.mulf %850, %849 : vector<8x128xf32>
    %cst_298 = arith.constant 5.000000e-01 : f32
    %852 = vector.broadcast %cst_298 : f32 to vector<8x128xf32>
    %853 = arith.addf %851, %852 : vector<8x128xf32>
    %854 = math.tanh %846 : vector<8x128xf32>
    %855 = vector.extract_strided_slice %853 {offsets = [0, 0], sizes = [8, 32], strides = [1, 1]} : vector<8x128xf32> to vector<8x32xf32>
    %856 = vector.extract_strided_slice %853 {offsets = [0, 32], sizes = [8, 32], strides = [1, 1]} : vector<8x128xf32> to vector<8x32xf32>
    %857 = vector.extract_strided_slice %853 {offsets = [0, 96], sizes = [8, 32], strides = [1, 1]} : vector<8x128xf32> to vector<8x32xf32>
    %858 = vector.extract_strided_slice %854 {offsets = [0, 64], sizes = [8, 32], strides = [1, 1]} : vector<8x128xf32> to vector<8x32xf32>
    %859 = arith.mulf %856, %835 : vector<8x32xf32>
    %860 = arith.mulf %855, %858 : vector<8x32xf32>
    %861 = arith.addf %859, %860 : vector<8x32xf32>
    %862 = math.tanh %861 : vector<8x32xf32>
    %863 = arith.mulf %857, %862 : vector<8x32xf32>
    %864 = arith.index_cast %841 : i32 to index
    %c0_299 = arith.constant 0 : index
    %865 = vector.load %arg21[%864, %c0_299] : memref<64x32xf32, #tpu.memory_space<vmem>>, vector<8x32xf32>
    tpu.vector_store %arg21[%864, %c0_299], %863 {strides = array<i32>} : memref<64x32xf32, #tpu.memory_space<vmem>>, vector<8x32xf32>,
    %c7_i32_300 = arith.constant 7 : i32
    %c8_i32_301 = arith.constant 8 : i32
    %866 = arith.muli %c7_i32_300, %c8_i32_301 : i32
    %867 = tpu.assume_multiple %866, 8 : i32
    %868 = arith.index_cast %867 : i32 to index
    %c0_302 = arith.constant 0 : index
    %869 = vector.load %arg22[%868, %c0_302] : memref<64x128xf32, #tpu.memory_space<vmem>>, vector<8x128xf32>
    %870 = arith.truncf %863 : vector<8x32xf32> to vector<8x32xbf16>
    %cst_303 = arith.constant dense<0.000000e+00> : vector<8x128xf32>
    %871 = tpu.matmul %870, %681, %cst_303 {dimension_numbers = #tpu.dot_dimension_numbers<[1], [0], [0], [1], [0, 0, 1, 1], [], []>} : vector<8x32xbf16>, vector<32x128xbf16>, vector<8x128xf32> -> vector<8x128xf32>
    %872 = arith.addf %869, %871 : vector<8x128xf32>
    %cst_304 = arith.constant 5.000000e-01 : f32
    %873 = vector.broadcast %cst_304 : f32 to vector<8x128xf32>
    %874 = arith.mulf %873, %872 : vector<8x128xf32>
    %875 = math.tanh %874 : vector<8x128xf32>
    %cst_305 = arith.constant 5.000000e-01 : f32
    %876 = vector.broadcast %cst_305 : f32 to vector<8x128xf32>
    %877 = arith.mulf %876, %875 : vector<8x128xf32>
    %cst_306 = arith.constant 5.000000e-01 : f32
    %878 = vector.broadcast %cst_306 : f32 to vector<8x128xf32>
    %879 = arith.addf %877, %878 : vector<8x128xf32>
    %880 = math.tanh %872 : vector<8x128xf32>
    %881 = vector.extract_strided_slice %879 {offsets = [0, 0], sizes = [8, 32], strides = [1, 1]} : vector<8x128xf32> to vector<8x32xf32>
    %882 = vector.extract_strided_slice %879 {offsets = [0, 32], sizes = [8, 32], strides = [1, 1]} : vector<8x128xf32> to vector<8x32xf32>
    %883 = vector.extract_strided_slice %879 {offsets = [0, 96], sizes = [8, 32], strides = [1, 1]} : vector<8x128xf32> to vector<8x32xf32>
    %884 = vector.extract_strided_slice %880 {offsets = [0, 64], sizes = [8, 32], strides = [1, 1]} : vector<8x128xf32> to vector<8x32xf32>
    %885 = arith.mulf %882, %861 : vector<8x32xf32>
    %886 = arith.mulf %881, %884 : vector<8x32xf32>
    %887 = arith.addf %885, %886 : vector<8x32xf32>
    %888 = math.tanh %887 : vector<8x32xf32>
    %889 = arith.mulf %883, %888 : vector<8x32xf32>
    %890 = arith.index_cast %867 : i32 to index
    %c0_307 = arith.constant 0 : index
    %891 = vector.load %arg21[%890, %c0_307] : memref<64x32xf32, #tpu.memory_space<vmem>>, vector<8x32xf32>
    tpu.vector_store %arg21[%890, %c0_307], %889 {strides = array<i32>} : memref<64x32xf32, #tpu.memory_space<vmem>>, vector<8x32xf32>,
    %c8_i32_308 = arith.constant 8 : i32
    %c0_309 = arith.constant 0 : index
    %c0_310 = arith.constant 0 : index
    %892 = vector.load %arg21[%c0_309, %c0_310] : memref<64x32xf32, #tpu.memory_space<vmem>>, vector<64x32xf32>
    %893 = arith.truncf %892 : vector<64x32xf32> to vector<64x32xbf16>
    %c0_311 = arith.constant 0 : index
    %c0_312 = arith.constant 0 : index
    %894 = vector.load %arg18[%c0_311, %c0_312] : memref<32x128xbf16, #tpu.memory_space<vmem>>, vector<32x128xbf16>
    %cst_313 = arith.constant dense<0.000000e+00> : vector<64x128xf32>
    %895 = tpu.matmul %893, %894, %cst_313 {dimension_numbers = #tpu.dot_dimension_numbers<[1], [0], [0], [1], [0, 0, 1, 1], [], []>} : vector<64x32xbf16>, vector<32x128xbf16>, vector<64x128xf32> -> vector<64x128xf32>
    %c0_314 = arith.constant 0 : index
    %c0_315 = arith.constant 0 : index
    %896 = vector.load %arg19[%c0_314, %c0_315] : memref<1x128xf32, #tpu.memory_space<vmem>>, vector<1x128xf32>
    %897 = vector.broadcast %896 : vector<1x128xf32> to vector<64x128xf32>
    %898 = arith.addf %895, %897 : vector<64x128xf32>
    %cst_316 = arith.constant dense<0xFF800000> : vector<64xf32>
    %899 = vector.multi_reduction <maximumf>, %898, %cst_316 [1] : vector<64x128xf32> to vector<64xf32>
    %900 = vector.shape_cast %899 : vector<64xf32> to vector<64x1xf32>
    %901 = vector.broadcast %900 : vector<64x1xf32> to vector<64x128xf32>
    %902 = arith.subf %898, %901 : vector<64x128xf32>
    %903 = math.exp %902 : vector<64x128xf32>
    %cst_317 = arith.constant dense<0.000000e+00> : vector<64xf32>
    %904 = vector.multi_reduction <add>, %903, %cst_317 [1] : vector<64x128xf32> to vector<64xf32>
    %905 = vector.shape_cast %904 : vector<64xf32> to vector<64x1xf32>
    %906 = math.log %905 : vector<64x1xf32>
    %907 = arith.addf %900, %906 : vector<64x1xf32>
    %908 = tpu.iota {dimensions = array<i32: 1>} : vector<64x128xi32>
    %c0_318 = arith.constant 0 : index
    %c0_319 = arith.constant 0 : index
    %909 = vector.load %arg3[%c0_318, %c0_319] : memref<64x1xi32, #tpu.memory_space<vmem>>, vector<64x1xi32>
    %910 = vector.broadcast %909 : vector<64x1xi32> to vector<64x128xi32>
    %911 = arith.cmpi eq, %908, %910 : vector<64x128xi32>
    %cst_320 = arith.constant 0.000000e+00 : f32
    %912 = vector.broadcast %cst_320 : f32 to vector<64x128xf32>
    %913 = arith.select %911, %898, %912 : vector<64x128xi1>, vector<64x128xf32>
    %cst_321 = arith.constant dense<0.000000e+00> : vector<64xf32>
    %914 = vector.multi_reduction <add>, %913, %cst_321 [1] : vector<64x128xf32> to vector<64xf32>
    %915 = vector.shape_cast %914 : vector<64xf32> to vector<64x1xf32>
    %916 = arith.subf %907, %915 : vector<64x1xf32>
    %c0_322 = arith.constant 0 : index
    %c0_323 = arith.constant 0 : index
    %917 = vector.load %arg4[%c0_322, %c0_323] : memref<64x1xf32, #tpu.memory_space<vmem>>, vector<64x1xf32>
    %918 = arith.mulf %916, %917 : vector<64x1xf32>
    %919 = vector.shape_cast %918 : vector<64x1xf32> to vector<1x64x1xf32>
    %cst_324 = arith.constant dense<0.000000e+00> : vector<1xf32>
    %920 = vector.multi_reduction <add>, %919, %cst_324 [1, 2] : vector<1x64x1xf32> to vector<1xf32>
    %921 = vector.shape_cast %920 : vector<1xf32> to vector<1x1x1xf32>
    %922 = vector.extract %921[0, 0, 0] : f32 from vector<1x1x1xf32>
    %cst_325 = arith.constant 0.000000e+00 : f32
    %923 = arith.addf %cst_325, %922 : f32
    %c0_326 = arith.constant 0 : index
    %c0_327 = arith.constant 0 : index
    %924 = vector.load %arg4[%c0_326, %c0_327] : memref<64x1xf32, #tpu.memory_space<vmem>>, vector<64x1xf32>
    %925 = vector.shape_cast %924 : vector<64x1xf32> to vector<1x64x1xf32>
    %cst_328 = arith.constant dense<0.000000e+00> : vector<1xf32>
    %926 = vector.multi_reduction <add>, %925, %cst_328 [1, 2] : vector<1x64x1xf32> to vector<1xf32>
    %927 = vector.shape_cast %926 : vector<1xf32> to vector<1x1x1xf32>
    %928 = vector.extract %927[0, 0, 0] : f32 from vector<1x1x1xf32>
    %cst_329 = arith.constant 1.000000e+00 : f32
    %929 = arith.maximumf %928, %cst_329 : f32
    %930 = arith.divf %923, %929 : f32
    %c0_330 = arith.constant 0 : index
    %c0_331 = arith.constant 0 : index
    %931 = memref.load %arg20[%c0_330, %c0_331] : memref<1x1xf32, #tpu.memory_space<smem>>
    memref.store %930, %arg20[%c0_330, %c0_331] : memref<1x1xf32, #tpu.memory_space<smem>>
    return
  }
}

</mosaic_0001>

<bundles_post_ra>
// kernel: seq2seq_forward.1
= control target key start
LH: loop header
LB: loop body
LE: loop exit
PB: predicated region body
PF: predicated region fallthrough
CT: control target
= control target key end

     0   :  { %s3786_s0 = inlined_call_operand.vmem [shape: bf16[64,32], index: 0, kind: input, shape index: {}]   ;;  %s3787_s1 = inlined_call_operand.vmem [shape: bf16[64,32], index: 1, kind: input, shape index: {}]   ;;  %s3788_s2 = inlined_call_operand.vmem [shape: s32[8,1], index: 2, kind: input, shape index: {}]   ;;  %s3789_s3 = inlined_call_operand.vmem [shape: s32[64,1], index: 3, kind: input, shape index: {}]   ;;  %s3790_s4 = inlined_call_operand.vmem [shape: f32[64,1], index: 4, kind: input, shape index: {}]   ;;  %s3791_s5 = inlined_call_operand.vmem [shape: bf16[32,128], index: 5, kind: input, shape index: {}]   ;;  %s3792_s6 = inlined_call_operand.vmem [shape: bf16[32,128], index: 6, kind: input, shape index: {}]   ;;  %s3793_s7 = inlined_call_operand.vmem [shape: f32[1,128], index: 7, kind: input, shape index: {}]   ;;  %s3794_s8 = inlined_call_operand.vmem [shape: bf16[32,128], index: 8, kind: input, shape index: {}]   ;;  %s3795_s9 = inlined_call_operand.vmem [shape: bf16[32,128], index: 9, kind: input, shape index: {}]   ;;  %s3796_s10 = inlined_call_operand.vmem [shape: f32[1,128], index: 10, kind: input, shape index: {}]   ;;  %s3797_s11 = inlined_call_operand.vmem [shape: bf16[32,128], index: 11, kind: input, shape index: {}]   ;;  %s3798_s12 = inlined_call_operand.vmem [shape: bf16[32,128], index: 12, kind: input, shape index: {}]   ;;  %s3799_s13 = inlined_call_operand.vmem [shape: bf16[32,128], index: 13, kind: input, shape index: {}]   ;;  %s3800_s14 = inlined_call_operand.vmem [shape: f32[1,128], index: 14, kind: input, shape index: {}]   ;;  %s3801_s15 = inlined_call_operand.vmem [shape: bf16[32,128], index: 15, kind: input, shape index: {}]   ;;  %s3802_s16 = inlined_call_operand.vmem [shape: bf16[32,128], index: 16, kind: input, shape index: {}]   ;;  %s3803_s17 = inlined_call_operand.vmem [shape: f32[1,128], index: 17, kind: input, shape index: {}]   ;;  %s3804_s18 = inlined_call_operand.vmem [shape: bf16[32,128], index: 18, kind: input, shape index: {}]   ;;  %s3805_s19 = inlined_call_operand.vmem [shape: f32[1,128], index: 19, kind: input, shape index: {}]   ;;  %s3806_s20 = inlined_call_operand.hbm [shape: f32[1,1], index: 20, kind: output, shape index: {}]  }
   0x1   :  { %3811 = sst [smem:[#allocation7_spill]] %s3786_s0 }
   0x2   :  { %3812 = sst [smem:[#allocation8_spill]] %s3787_s1 }
   0x3   :  { %3813 = sst [smem:[#allocation9_spill]] %s3788_s2 }
   0x4   :  { %3814 = sst [smem:[#allocation10_spill]] %s3789_s3 }
   0x5   :  { %3815 = sst [smem:[#allocation11_spill]] %s3790_s4 }
   0x6   :  { %v2619_v0 = vld [vmem:[%s3791_s5 + $0x8] sm:$0xff]  ;;  %v2618_v2 = vld [vmem:[%s3791_s5] sm:$0xff]  ;;  %v2904_v3 = vmov 0  }
   0x7   :  { %v2621_v1 = vld [vmem:[%s3792_s6 + $0x8] sm:$0xff]  ;;  %2656 = vset.pattern.permute.xlu0 %v2904_v3  ;;  %2657 = vset.pattern.permute.xlu1 %v2904_v3  ;;  %v2620_v4 = vld [vmem:[%s3792_s6] sm:$0xff] }
   0x8   :  { %134 = vmatpush.bf16.msra.mxu0 %v2619_v0  ;;  %191 = vmatpush.bf16.msra.mxu1 %v2621_v1 }
   0x9   :  { %241 = vmatpush.bf16.msra.mxu2 %v2621_v1  ;;  %292 = vmatpush.bf16.msra.mxu3 %v2621_v1 }
   0xa   :  { %25 = vsyncpa [#allocation5], 0  ;;  %2658 = vset.pattern.permute.xlu2 %v2904_v3  ;;  %s3816_s4 = sld [smem:[#allocation7_spill]]  ;;  %vm115_vm0 = vcmask 261120   ;;  %v3038_v6 = vld [vmem:[%s3793_s7] ss:$0 sm:$0xff] }
   0xb   :  { %s2905_s29 = smov 64   ;;  %s2906_s7 = smov 32   ;;  %vm1087_vm2 = vcmask 523264   ;;  %vm2366_vm11 = vcmask 7168  }
   0xc   :  { %135 = vmatpush.bf16.msra.mxu0 %v2618_v2  ;;  %192 = vmatpush.bf16.msra.mxu1 %v2620_v4  ;;  %s3817_s6 = sld [smem:[#allocation9_spill]]  ;;  %s2909_s30 = smov [#allocation4]  }
   0xd   :  { %242 = vmatpush.bf16.msra.mxu2 %v2620_v4  ;;  %293 = vmatpush.bf16.msra.mxu3 %v2620_v4  ;;  %s3818_s3 = sld [smem:[#allocation8_spill]] }
   0xe   :  { %s3819_s27 = sld [smem:[#allocation10_spill]] }
   0xf   :  { %193 = vmatmul.bf16.vlgmr.msra.gmra.mxu1 %v2904_v3  ;;  %s3820_s23 = sld [smem:[#allocation11_spill]] }
  0x10   :  { %v2614_v5 = vld [vmem:[%s3816_s4] sm:$0xff]  ;;  %343 = vmatpush.bf16.msrb.mxu1 %v2621_v1  ;;  %v2615_v43 = vld [vmem:[%s3816_s4 + $0x8] sm:$0xff] }
  0x11   :  { %394 = vmatpush.bf16.msrb.mxu2 %v2621_v1  ;;  %2475 = vmatmul.msk.bf16.vlgmr.msra.gmra.mxu0 %vm115_vm0, %v2614_v5 }
  0x12   :  { %445 = vmatpush.bf16.msrb.mxu3 %v2621_v1 }
  0x14   :  { %344 = vmatpush.bf16.msrb.mxu1 %v2620_v4 }
  0x15   :  { %395 = vmatpush.bf16.msrb.mxu2 %v2620_v4 }
  0x16   :  { %446 = vmatpush.bf16.msrb.mxu3 %v2620_v4 }
  0x18   :  { %496 = vmatpush.bf16.msra.mxu1 %v2621_v1 }
  0x1c   :  { %497 = vmatpush.bf16.msra.mxu1 %v2620_v4 }
  0x21   :  { %2476 = vmatmul.msk.bf16.gmra.mxu0 %vm115_vm0, %v2615_v43 }
  0x8c   :  { %v194_v8 = vpop.f32.mrf.mxu1 }
  0x8e   :  { %v137_v7 = vpop.f32.mrf.mxu0 }
  0x8f   :  { %v138_v9 = vadd.f32 %v3038_v6, %v137_v7 }
  0x91   :  { %v198_v10 = vadd.f32 %v194_v8, %v138_v9 }
  0x93   :  { %2664 = vtanh.f32 %v198_v10  ;;  %v199_v13 = vmul.f32 0.5, %v198_v10 }
  0x94   :  { %v196_v11 = vpop.f32.mrf.mxu1 }
  0x95   :  { %2666 = vtanh.f32 %v199_v13 }
  0x96   :  { %v139_v27 = vpop.f32.mrf.mxu0 }
  0x97   :  { %v140_v28 = vadd.f32 %v3038_v6, %v139_v27 }
  0x99   :  { %v2665_v12 = vpop.eup %2664 }
  0x9a   :  { %206 = vrot.lane.b32.xlu0 %v2665_v12, %s2905_s29 }
  0x9b   :  { %v2667_v14 = vpop.eup %2666 }
  0x9c   :  { %v201_v15 = vmul.f32 0.5, %v2667_v14 }
  0x9e   :  { %v202_v16 = vadd.f32 0.5, %v201_v15  ;;  %v142_v48 = vpop.f32.mrf.mxu0 }
  0x9f   :  { %v143_v49 = vadd.f32 %v3038_v6, %v142_v48 }
  0xa0   :  { %v204_v19 = vmul.f32 0.0, %v202_v16 }
  0xa6   :  { %v144_v5 = vpop.f32.mrf.mxu0 }
  0xa7   :  { %v145_v7 = vadd.f32 %v3038_v6, %v144_v5 }
 0x10c   :  { %v207_v17 = vpop.permute.xlu0 %206 }
 0x10d   :  { %v209_v18 = vmul.f32 %v207_v17, %v202_v16 }
 0x10f   :  { %211 = vrot.lane.b32.xlu0 %v209_v18, %s2906_s7 }
 0x181   :  { %v212_v20 = vpop.permute.xlu0 %211 }
 0x182   :  { %v214_v21 = vadd.f32 %v212_v20, %v204_v19 }
 0x184   :  { %2668 = vtanh.f32 %v214_v21 }
 0x18a   :  { %v2669_v22 = vpop.eup %2668 }
 0x18b   :  { %217 = vrot.lane.b32.xlu1 %v2669_v22, %s2905_s29  ;;  %v2616_v22 = vld [vmem:[%s3816_s4 + $0x10] sm:$0xff] }
 0x18c   :  { %2477 = vmatmul.msk.bf16.gmra.mxu0 %vm115_vm0, %v2616_v22  ;;  %v3156_v22 = vld [vmem:[%s3796_s10] ss:$0 sm:$0xff]  ;;  %s2441_s10 = sshll.u32 %s3806_s20, 4  ;;  %s2442_s10 = int_to_ptr.hbm [resolvable:$true] %s2441_s10 }
 0x1fd   :  { %v218_v23 = vpop.permute.xlu1 %217 }
 0x1fe   :  { %v3044_v24 = vmul.f32 %v218_v23, %v202_v16 }
 0x200   :  { %v228_v25 = vpack.c.bf16 %v3044_v24, %v3044_v24 }
 0x202   :  { %230 = vrot.lane.b32.xlu1 %v228_v25, %s2906_s7 }
 0x274   :  { %v231_v26 = vpop.permute.xlu1 %230 }
 0x275   :  { %2487 = vmatmul.msk.bf16.vlgmr.msra.gmra.mxu2 %vm115_vm0, %v231_v26 }
 0x276   :  { %547 = vmatpush.bf16.msra.mxu2 %v2621_v1 }
 0x27a   :  { %548 = vmatpush.bf16.msra.mxu2 %v2620_v4 }
 0x2f8   :  { %v244_v29 = vpop.f32.mrf.mxu2 }
 0x2f9   :  { %v248_v30 = vadd.f32 %v244_v29, %v140_v28  ;;  %v147_v28 = vpop.f32.mrf.mxu0 }
 0x2fa   :  { %v148_v29 = vadd.f32 %v3038_v6, %v147_v28 }
 0x2fb   :  { %2670 = vtanh.f32 %v248_v30  ;;  %v249_v33 = vmul.f32 0.5, %v248_v30 }
 0x2fd   :  { %2672 = vtanh.f32 %v249_v33 }
 0x300   :  { %v246_v31 = vpop.f32.mrf.mxu2 }
 0x301   :  { %v2671_v32 = vpop.eup %2670 }
 0x302   :  { %256 = vrot.lane.b32.xlu2 %v2671_v32, %s2905_s29 }
 0x303   :  { %v2673_v34 = vpop.eup %2672 }
 0x304   :  { %v251_v35 = vmul.f32 0.5, %v2673_v34 }
 0x306   :  { %v252_v36 = vadd.f32 0.5, %v251_v35 }
 0x308   :  { %v254_v39 = vmul.f32 %v252_v36, %v214_v21 }
 0x35c   :  { %v257_v37 = vpop.permute.xlu2 %256 }
 0x35d   :  { %v259_v38 = vmul.f32 %v257_v37, %v252_v36 }
 0x35f   :  { %261 = vrot.lane.b32.xlu2 %v259_v38, %s2906_s7 }
 0x3b9   :  { %v262_v40 = vpop.permute.xlu2 %261 }
 0x3ba   :  { %v264_v41 = vadd.f32 %v262_v40, %v254_v39 }
 0x3bc   :  { %2674 = vtanh.f32 %v264_v41 }
 0x3c2   :  { %v2675_v42 = vpop.eup %2674 }
 0x3c3   :  { %267 = vrot.lane.b32.xlu0 %v2675_v42, %s2905_s29 }
 0x435   :  { %v268_v44 = vpop.permute.xlu0 %267 }
 0x436   :  { %v3058_v45 = vmul.f32 %v268_v44, %v252_v36 }
 0x438   :  { %v279_v46 = vpack.c.bf16 %v3058_v45, %v3058_v45 }
 0x43a   :  { %281 = vrot.lane.b32.xlu1 %v279_v46, %s2906_s7 }
 0x4ac   :  { %v282_v47 = vpop.permute.xlu1 %281 }
 0x4ad   :  { %2488 = vmatmul.msk.bf16.vlgmr.msra.gmra.mxu3 %vm115_vm0, %v282_v47 }
 0x530   :  { %v295_v50 = vpop.f32.mrf.mxu3 }
 0x531   :  { %v299_v51 = vadd.f32 %v295_v50, %v143_v49  ;;  %v149_v49 = vpop.f32.mrf.mxu0 }
 0x532   :  { %v150_v50 = vadd.f32 %v3038_v6, %v149_v49 }
 0x533   :  { %2676 = vtanh.f32 %v299_v51  ;;  %v300_v54 = vmul.f32 0.5, %v299_v51 }
 0x535   :  { %2678 = vtanh.f32 %v300_v54 }
 0x538   :  { %v297_v52 = vpop.f32.mrf.mxu3 }
 0x539   :  { %v2677_v53 = vpop.eup %2676 }
 0x53a   :  { %307 = vrot.lane.b32.xlu2 %v2677_v53, %s2905_s29 }
 0x53b   :  { %v2679_v55 = vpop.eup %2678 }
 0x53c   :  { %v302_v56 = vmul.f32 0.5, %v2679_v55 }
 0x53e   :  { %v303_v57 = vadd.f32 0.5, %v302_v56 }
 0x540   :  { %v305_v60 = vmul.f32 %v303_v57, %v264_v41 }
 0x594   :  { %v308_v58 = vpop.permute.xlu2 %307 }
 0x595   :  { %v310_v59 = vmul.f32 %v308_v58, %v303_v57 }
 0x597   :  { %312 = vrot.lane.b32.xlu0 %v310_v59, %s2906_s7 }
 0x609   :  { %v313_v61 = vpop.permute.xlu0 %312 }
 0x60a   :  { %v315_v62 = vadd.f32 %v313_v61, %v305_v60 }
 0x60c   :  { %2680 = vtanh.f32 %v315_v62 }
 0x612   :  { %v2681_v63 = vpop.eup %2680 }
 0x613   :  { %318 = vrot.lane.b32.xlu1 %v2681_v63, %s2905_s29 }
 0x685   :  { %v319_v0 = vpop.permute.xlu1 %318 }
 0x686   :  { %v3068_v1 = vmul.f32 %v319_v0, %v303_v57 }
 0x688   :  { %v330_v2 = vpack.c.bf16 %v3068_v1, %v3068_v1 }
 0x68a   :  { %332 = vrot.lane.b32.xlu2 %v330_v2, %s2906_s7 }
 0x6e4   :  { %v333_v4 = vpop.permute.xlu2 %332 }
 0x6e5   :  { %2489 = vmatmul.msk.bf16.vlgmr.msrb.gmra.mxu1 %vm115_vm0, %v333_v4 }
 0x762   :  { %v346_v8 = vpop.f32.mrf.mxu1 }
 0x763   :  { %v350_v9 = vadd.f32 %v346_v8, %v145_v7 }
 0x765   :  { %2682 = vtanh.f32 %v350_v9  ;;  %v351_v12 = vmul.f32 0.5, %v350_v9 }
 0x767   :  { %2684 = vtanh.f32 %v351_v12  ;;  %v2617_v12 = vld [vmem:[%s3816_s4 + $0x18] sm:$0xff] }
 0x768   :  { %2478 = vmatmul.msk.bf16.gmra.mxu0 %vm115_vm0, %v2617_v12 }
 0x76a   :  { %v348_v10 = vpop.f32.mrf.mxu1 }
 0x76b   :  { %v2683_v11 = vpop.eup %2682 }
 0x76c   :  { %358 = vrot.lane.b32.xlu0 %v2683_v11, %s2905_s29 }
 0x76d   :  { %v2685_v13 = vpop.eup %2684 }
 0x76e   :  { %v353_v14 = vmul.f32 0.5, %v2685_v13  ;;  %v3130_v13 = vld [vmem:[%s3795_s9 + $0x8] sm:$0xff] }
 0x76f   :  { %687 = vmatpush.bf16.msrb.mxu1 %v3130_v13  ;;  %785 = vmatpush.bf16.msrb.mxu0 %v3130_v13 }
 0x770   :  { %v354_v15 = vadd.f32 0.5, %v353_v14  ;;  %v3136_v14 = vld [vmem:[%s3795_s9] sm:$0xff]  ;;  %s2908_s9 = smov 1.0  }
 0x772   :  { %v356_v18 = vmul.f32 %v354_v15, %v315_v62  ;;  %v2623_v62 = vld [vmem:[%s3794_s8 + $0x8] sm:$0xff] }
 0x773   :  { %633 = vmatpush.bf16.msra.mxu3 %v2623_v62  ;;  %688 = vmatpush.bf16.msrb.mxu1 %v3136_v14 }
 0x774   :  { %786 = vmatpush.bf16.msrb.mxu0 %v3136_v14 }
 0x778   :  { %932 = vmatpush.bf16.msra.mxu0 %v3130_v13 }
 0x77c   :  { %933 = vmatpush.bf16.msra.mxu0 %v3136_v14 }
 0x7de   :  { %v359_v16 = vpop.permute.xlu0 %358 }
 0x7df   :  { %v361_v17 = vmul.f32 %v359_v16, %v354_v15 }
 0x7e1   :  { %363 = vrot.lane.b32.xlu1 %v361_v17, %s2906_s7 }
 0x7e5   :  { %v152_v16 = vpop.f32.mrf.mxu0 }
 0x7e6   :  { %v153_v17 = vadd.f32 %v3038_v6, %v152_v16 }
 0x853   :  { %v364_v19 = vpop.permute.xlu1 %363 }
 0x854   :  { %v366_v20 = vadd.f32 %v364_v19, %v356_v18 }
 0x856   :  { %2686 = vtanh.f32 %v366_v20 }
 0x85c   :  { %v2687_v21 = vpop.eup %2686 }
 0x85d   :  { %369 = vrot.lane.b32.xlu2 %v2687_v21, %s2905_s29 }
 0x8b7   :  { %v370_v23 = vpop.permute.xlu2 %369 }
 0x8b8   :  { %v3082_v25 = vmul.f32 %v370_v23, %v354_v15 }
 0x8ba   :  { %v381_v26 = vpack.c.bf16 %v3082_v25, %v3082_v25 }
 0x8bc   :  { %383 = vrot.lane.b32.xlu0 %v381_v26, %s2906_s7 }
 0x92e   :  { %v384_v27 = vpop.permute.xlu0 %383 }
 0x92f   :  { %2490 = vmatmul.msk.bf16.vlgmr.msrb.gmra.mxu2 %vm115_vm0, %v384_v27 }
 0x930   :  { %736 = vmatpush.bf16.msrb.mxu2 %v3130_v13 }
 0x934   :  { %737 = vmatpush.bf16.msrb.mxu2 %v3136_v14 }
 0x9b2   :  { %v397_v30 = vpop.f32.mrf.mxu2 }
 0x9b3   :  { %v401_v31 = vadd.f32 %v397_v30, %v148_v29 }
 0x9b5   :  { %2688 = vtanh.f32 %v401_v31  ;;  %v402_v34 = vmul.f32 0.5, %v401_v31 }
 0x9b7   :  { %2690 = vtanh.f32 %v402_v34 }
 0x9ba   :  { %v399_v32 = vpop.f32.mrf.mxu2 }
 0x9bb   :  { %v2689_v33 = vpop.eup %2688 }
 0x9bc   :  { %409 = vrot.lane.b32.xlu1 %v2689_v33, %s2905_s29 }
 0x9bd   :  { %v2691_v35 = vpop.eup %2690 }
 0x9be   :  { %v404_v36 = vmul.f32 0.5, %v2691_v35 }
 0x9c0   :  { %v405_v37 = vadd.f32 0.5, %v404_v36 }
 0x9c2   :  { %v407_v40 = vmul.f32 %v405_v37, %v366_v20 }
 0xa2e   :  { %v410_v38 = vpop.permute.xlu1 %409 }
 0xa2f   :  { %v412_v39 = vmul.f32 %v410_v38, %v405_v37 }
 0xa31   :  { %414 = vrot.lane.b32.xlu2 %v412_v39, %s2906_s7 }
 0xa8b   :  { %v415_v41 = vpop.permute.xlu2 %414 }
 0xa8c   :  { %v417_v42 = vadd.f32 %v415_v41, %v407_v40 }
 0xa8e   :  { %2692 = vtanh.f32 %v417_v42 }
 0xa94   :  { %v2693_v43 = vpop.eup %2692 }
 0xa95   :  { %420 = vrot.lane.b32.xlu0 %v2693_v43, %s2905_s29 }
 0xb07   :  { %v421_v44 = vpop.permute.xlu0 %420 }
 0xb08   :  { %v3092_v46 = vmul.f32 %v421_v44, %v405_v37 }
 0xb0a   :  { %v432_v47 = vpack.c.bf16 %v3092_v46, %v3092_v46 }
 0xb0c   :  { %434 = vrot.lane.b32.xlu1 %v432_v47, %s2906_s7 }
 0xb7e   :  { %v435_v48 = vpop.permute.xlu1 %434 }
 0xb7f   :  { %2491 = vmatmul.msk.bf16.vlgmr.msrb.gmra.mxu3 %vm115_vm0, %v435_v48 }
 0xc02   :  { %v448_v51 = vpop.f32.mrf.mxu3 }
 0xc03   :  { %v452_v52 = vadd.f32 %v448_v51, %v150_v50 }
 0xc05   :  { %2694 = vtanh.f32 %v452_v52  ;;  %v453_v55 = vmul.f32 0.5, %v452_v52 }
 0xc07   :  { %2696 = vtanh.f32 %v453_v55 }
 0xc0a   :  { %v450_v53 = vpop.f32.mrf.mxu3 }
 0xc0b   :  { %v2695_v54 = vpop.eup %2694 }
 0xc0c   :  { %460 = vrot.lane.b32.xlu2 %v2695_v54, %s2905_s29 }
 0xc0d   :  { %v2697_v56 = vpop.eup %2696 }
 0xc0e   :  { %v455_v57 = vmul.f32 0.5, %v2697_v56 }
 0xc10   :  { %v456_v58 = vadd.f32 0.5, %v455_v57 }
 0xc12   :  { %v458_v63 = vmul.f32 %v456_v58, %v417_v42 }
 0xc14   :  { %222 = vrot.lane.b32.xlu2 %v3044_v24, %s2906_s7  ;;  %v2622_v24 = vld [vmem:[%s3794_s8] sm:$0xff] }
 0xc15   :  { %634 = vmatpush.bf16.msra.mxu3 %v2622_v24 }
 0xc66   :  { %v461_v59 = vpop.permute.xlu2 %460 }
 0xc67   :  { %v463_v60 = vmul.f32 %v461_v59, %v456_v58 }
 0xc69   :  { %465 = vrot.lane.b32.xlu0 %v463_v60, %s2906_s7 }
 0xc6e   :  { %v223_v61 = vpop.permute.xlu2 %222 }
 0xc6f   :  { %225 = vst.msk [vmem:[#allocation2] sm:$0xff] %vm115_vm0, %v223_v61 }
 0xc71   :  { %272 = vrot.lane.b32.xlu0 %v3058_v45, %s2906_s7 }
 0xc76   :  { %v583_v45 = vld [vmem:[#allocation2] sm:$0xff] }
 0xcdb   :  { %v466_v0 = vpop.permute.xlu0 %465 }
 0xcdc   :  { %v3112_v2 = vadd.f32 %v466_v0, %v458_v63 }
 0xcde   :  { %2698 = vtanh.f32 %v3112_v2 }
 0xce3   :  { %v273_v4 = vpop.permute.xlu0 %272 }
 0xce4   :  { %v2699_v5 = vpop.eup %2698  ;;  %276 = vst.msk [vmem:[#allocation2 + $0x8] sm:$0xff] %vm115_vm0, %v273_v4 }
 0xce5   :  { %471 = vrot.lane.b32.xlu1 %v2699_v5, %s2905_s29 }
 0xceb   :  { %v584_v7 = vld [vmem:[#allocation2 + $0x8] sm:$0xff] }
 0xcec   :  { %v591_v8 = vpack.c.bf16 %v584_v7, %v583_v45 }
 0xcee   :  { %2502 = vmatmul.msk.bf16.vlgmr.msra.gmra.mxu3 %vm115_vm0, %v591_v8 }
 0xd57   :  { %v472_v9 = vpop.permute.xlu1 %471 }
 0xd58   :  { %v3118_v10 = vmul.f32 %v472_v9, %v456_v58 }
 0xd5a   :  { %v483_v11 = vpack.c.bf16 %v3118_v10, %v3118_v10 }
 0xd5c   :  { %485 = vrot.lane.b32.xlu1 %v483_v11, %s2906_s7 }
 0xd71   :  { %v636_v23 = vpop.f32.mrf.mxu3 }
 0xd72   :  { %v637_v26 = vadd.f32 %v3156_v22, %v636_v23 }
 0xd79   :  { %v638_v24 = vpop.f32.mrf.mxu3 }
 0xd7a   :  { %v639_v63 = vadd.f32 %v3156_v22, %v638_v24 }
 0xdce   :  { %v486_v15 = vpop.permute.xlu1 %485 }
 0xdcf   :  { %2492 = vmatmul.msk.bf16.vlgmr.msra.gmra.mxu1 %vm115_vm0, %v486_v15 }
 0xdd0   :  { %834 = vmatpush.bf16.msra.mxu1 %v3130_v13 }
 0xdd4   :  { %835 = vmatpush.bf16.msra.mxu1 %v3136_v14 }
 0xddf   :  { %689 = vmatmul.bf16.vlgmr.msrb.gmra.mxu1 %v2904_v3 }
 0xde0   :  { %981 = vmatpush.bf16.msrb.mxu1 %v3130_v13 }
 0xde4   :  { %982 = vmatpush.bf16.msrb.mxu1 %v3136_v14 }
 0xe4c   :  { %v499_v18 = vpop.f32.mrf.mxu1 }
 0xe4d   :  { %v503_v19 = vadd.f32 %v499_v18, %v153_v17 }
 0xe4f   :  { %2700 = vtanh.f32 %v503_v19  ;;  %v504_v31 = vmul.f32 0.5, %v503_v19 }
 0xe54   :  { %v501_v20 = vpop.f32.mrf.mxu1 }
 0xe55   :  { %v2701_v21 = vpop.eup %2700 }
 0xe56   :  { %511 = vrot.lane.b32.xlu2 %v2701_v21, %s2905_s29 }
 0xe5c   :  { %v690_v27 = vpop.f32.mrf.mxu1 }
 0xe5d   :  { %v694_v28 = vadd.f32 %v690_v27, %v637_v26  ;;  %v3203_v27 = vpop.f32.mrf.mxu0 }
 0xe5f   :  { %2702 = vtanh.f32 %v694_v28  ;;  %v695_v37 = vmul.f32 0.5, %v694_v28 }
 0xe60   :  { %2704 = vtanh.f32 %v504_v31 }
 0xe61   :  { %2706 = vtanh.f32 %v695_v37 }
 0xe64   :  { %v692_v29 = vpop.f32.mrf.mxu1 }
 0xe65   :  { %v2703_v30 = vpop.eup %2702 }
 0xe66   :  { %702 = vrot.lane.b32.xlu0 %v2703_v30, %s2905_s29  ;;  %v2705_v32 = vpop.eup %2704 }
 0xe67   :  { %v506_v33 = vmul.f32 0.5, %v2705_v32  ;;  %v2707_v38 = vpop.eup %2706 }
 0xe68   :  { %v697_v39 = vmul.f32 0.5, %v2707_v38 }
 0xe69   :  { %v507_v34 = vadd.f32 0.5, %v506_v33 }
 0xe6a   :  { %v698_v40 = vadd.f32 0.5, %v697_v39 }
 0xe6b   :  { %v509_v43 = vmul.f32 %v507_v34, %v3112_v2 }
 0xe6c   :  { %v700_v49 = vmul.f32 0.0, %v698_v40 }
 0xeb0   :  { %v512_v35 = vpop.permute.xlu2 %511 }
 0xeb1   :  { %v514_v36 = vmul.f32 %v512_v35, %v507_v34 }
 0xeb3   :  { %516 = vrot.lane.b32.xlu1 %v514_v36, %s2906_s7 }
 0xed8   :  { %v703_v41 = vpop.permute.xlu0 %702 }
 0xed9   :  { %v705_v42 = vmul.f32 %v703_v41, %v698_v40 }
 0xedb   :  { %707 = vrot.lane.b32.xlu2 %v705_v42, %s2906_s7 }
 0xf25   :  { %v517_v44 = vpop.permute.xlu1 %516 }
 0xf26   :  { %v3163_v47 = vadd.f32 %v517_v44, %v509_v43 }
 0xf28   :  { %2708 = vtanh.f32 %v3163_v47 }
 0xf2e   :  { %v2709_v48 = vpop.eup %2708 }
 0xf2f   :  { %522 = vrot.lane.b32.xlu0 %v2709_v48, %s2905_s29 }
 0xf35   :  { %v708_v50 = vpop.permute.xlu2 %707 }
 0xf36   :  { %v710_v51 = vadd.f32 %v708_v50, %v700_v49 }
 0xf38   :  { %2710 = vtanh.f32 %v710_v51 }
 0xf3e   :  { %v2711_v52 = vpop.eup %2710 }
 0xf3f   :  { %713 = vrot.lane.b32.xlu1 %v2711_v52, %s2905_s29 }
 0xfa1   :  { %v523_v53 = vpop.permute.xlu0 %522 }
 0xfa2   :  { %v3168_v54 = vmul.f32 %v523_v53, %v507_v34 }
 0xfa4   :  { %v534_v55 = vpack.c.bf16 %v3168_v54, %v3168_v54 }
 0xfa6   :  { %536 = vrot.lane.b32.xlu2 %v534_v55, %s2906_s7 }
 0xfb1   :  { %v714_v56 = vpop.permute.xlu1 %713 }
 0xfb2   :  { %v3173_v57 = vmul.f32 %v714_v56, %v698_v40 }
 0xfb4   :  { %v723_v58 = vpack.c.bf16 %v3173_v57, %v3173_v57 }
 0xfb6   :  { %725 = vrot.lane.b32.xlu0 %v723_v58, %s2906_s7 }
0x1000   :  { %v537_v59 = vpop.permute.xlu2 %536 }
0x1001   :  { %2493 = vmatmul.msk.bf16.vlgmr.msra.gmra.mxu2 %vm115_vm0, %v537_v59 }
0x1002   :  { %883 = vmatpush.bf16.msra.mxu2 %v3130_v13 }
0x1006   :  { %884 = vmatpush.bf16.msra.mxu2 %v3136_v14 }
0x1028   :  { %v726_v60 = vpop.permute.xlu0 %725 }
0x1029   :  { %2514 = vmatmul.msk.bf16.vlgmr.msrb.gmra.mxu2 %vm115_vm0, %v726_v60 }
0x102a   :  { %1030 = vmatpush.bf16.msrb.mxu2 %v3130_v13 }
0x102e   :  { %1031 = vmatpush.bf16.msrb.mxu2 %v3136_v14 }
0x1084   :  { %v3184_v61 = vpop.f32.mrf.mxu2 }
0x108c   :  { %v552_v62 = vpop.f32.mrf.mxu2 }
0x10ac   :  { %v739_v0 = vpop.f32.mrf.mxu2 }
0x10ad   :  { %v743_v2 = vadd.f32 %v739_v0, %v639_v63 }
0x10af   :  { %2712 = vtanh.f32 %v743_v2  ;;  %v744_v45 = vmul.f32 0.5, %v743_v2 }
0x10b1   :  { %2714 = vtanh.f32 %v744_v45 }
0x10b4   :  { %v741_v4 = vpop.f32.mrf.mxu2 }
0x10b5   :  { %v2713_v5 = vpop.eup %2712 }
0x10b6   :  { %751 = vrot.lane.b32.xlu1 %v2713_v5, %s2905_s29 }
0x10b7   :  { %v2715_v7 = vpop.eup %2714 }
0x10b8   :  { %v746_v8 = vmul.f32 0.5, %v2715_v7 }
0x10ba   :  { %v747_v9 = vadd.f32 0.5, %v746_v8 }
0x10bc   :  { %v749_v14 = vmul.f32 %v747_v9, %v710_v51 }
0x10be   :  { %323 = vrot.lane.b32.xlu1 %v3068_v1, %s2906_s7 }
0x1128   :  { %v752_v11 = vpop.permute.xlu1 %751 }
0x1129   :  { %v754_v12 = vmul.f32 %v752_v11, %v747_v9 }
0x112b   :  { %756 = vrot.lane.b32.xlu2 %v754_v12, %s2906_s7 }
0x1130   :  { %v324_v13 = vpop.permute.xlu1 %323 }
0x1131   :  { %327 = vst.msk [vmem:[#allocation2 + $0x10] sm:$0xff] %vm115_vm0, %v324_v13 }
0x1133   :  { %374 = vrot.lane.b32.xlu2 %v3082_v25, %s2906_s7 }
0x1138   :  { %v585_v18 = vld [vmem:[#allocation2 + $0x10] sm:$0xff] }
0x1185   :  { %v757_v15 = vpop.permute.xlu2 %756 }
0x1186   :  { %v759_v16 = vadd.f32 %v757_v15, %v749_v14 }
0x1188   :  { %2716 = vtanh.f32 %v759_v16 }
0x118d   :  { %v375_v1 = vpop.permute.xlu2 %374 }
0x118e   :  { %v2717_v17 = vpop.eup %2716  ;;  %378 = vst.msk [vmem:[#allocation2 + $0x18] sm:$0xff] %vm115_vm0, %v375_v1 }
0x118f   :  { %762 = vrot.lane.b32.xlu0 %v2717_v17, %s2905_s29 }
0x1195   :  { %v586_v19 = vld [vmem:[#allocation2 + $0x18] sm:$0xff] }
0x1196   :  { %v592_v20 = vpack.c.bf16 %v586_v19, %v585_v18 }
0x1198   :  { %2503 = vmatmul.msk.bf16.gmra.mxu3 %vm115_vm0, %v592_v20 }
0x1201   :  { %v763_v21 = vpop.permute.xlu0 %762 }
0x1202   :  { %v3197_v23 = vmul.f32 %v763_v21, %v747_v9 }
0x1204   :  { %v772_v25 = vpack.c.bf16 %v3197_v23, %v3197_v23 }
0x1206   :  { %774 = vrot.lane.b32.xlu0 %v772_v25, %s2906_s7 }
0x121b   :  { %v641_v28 = vpop.f32.mrf.mxu3 }
0x121c   :  { %v642_v29 = vadd.f32 %v3156_v22, %v641_v28 }
0x1223   :  { %v643_v51 = vpop.f32.mrf.mxu3 }
0x1224   :  { %v644_v52 = vadd.f32 %v3156_v22, %v643_v51 }
0x1278   :  { %v775_v26 = vpop.permute.xlu0 %774 }
0x1279   :  { %2515 = vmatmul.msk.bf16.vlgmr.msrb.gmra.mxu0 %vm115_vm0, %v775_v26  ;;  %v155_v26 = vadd.f32 %v3038_v6, %v3203_v27 }
0x12f6   :  { %v788_v30 = vpop.f32.mrf.mxu0 }
0x12f7   :  { %v792_v31 = vadd.f32 %v788_v30, %v642_v29  ;;  %v554_v29 = vadd.f32 %v3184_v61, %v155_v26 }
0x12f9   :  { %2718 = vtanh.f32 %v792_v31  ;;  %v793_v34 = vmul.f32 0.5, %v792_v31 }
0x12fb   :  { %2720 = vtanh.f32 %v793_v34 }
0x12fe   :  { %v790_v32 = vpop.f32.mrf.mxu0 }
0x12ff   :  { %v2719_v33 = vpop.eup %2718 }
0x1300   :  { %800 = vrot.lane.b32.xlu1 %v2719_v33, %s2905_s29 }
0x1301   :  { %v2721_v35 = vpop.eup %2720 }
0x1302   :  { %v795_v36 = vmul.f32 0.5, %v2721_v35 }
0x1304   :  { %v796_v37 = vadd.f32 0.5, %v795_v36 }
0x1306   :  { %v798_v40 = vmul.f32 %v796_v37, %v759_v16 }
0x1372   :  { %v801_v38 = vpop.permute.xlu1 %800 }
0x1373   :  { %v803_v39 = vmul.f32 %v801_v38, %v796_v37 }
0x1375   :  { %805 = vrot.lane.b32.xlu2 %v803_v39, %s2906_s7 }
0x13cf   :  { %v806_v41 = vpop.permute.xlu2 %805 }
0x13d0   :  { %v808_v42 = vadd.f32 %v806_v41, %v798_v40 }
0x13d2   :  { %2722 = vtanh.f32 %v808_v42 }
0x13d8   :  { %v2723_v43 = vpop.eup %2722 }
0x13d9   :  { %811 = vrot.lane.b32.xlu0 %v2723_v43, %s2905_s29 }
0x144b   :  { %v812_v44 = vpop.permute.xlu0 %811 }
0x144c   :  { %v3209_v48 = vmul.f32 %v812_v44, %v796_v37  ;;  %v555_v37 = vmul.f32 0.5, %v554_v29 }
0x144e   :  { %v821_v49 = vpack.c.bf16 %v3209_v48, %v3209_v48 }
0x1450   :  { %823 = vrot.lane.b32.xlu1 %v821_v49, %s2906_s7 }
0x14c2   :  { %v824_v50 = vpop.permute.xlu1 %823 }
0x14c3   :  { %2516 = vmatmul.msk.bf16.vlgmr.msra.gmra.mxu1 %vm115_vm0, %v824_v50 }
0x1540   :  { %v837_v53 = vpop.f32.mrf.mxu1 }
0x1541   :  { %v841_v55 = vadd.f32 %v837_v53, %v644_v52 }
0x1543   :  { %2724 = vtanh.f32 %v841_v55  ;;  %v842_v59 = vmul.f32 0.5, %v841_v55 }
0x1545   :  { %2726 = vtanh.f32 %v842_v59 }
0x1548   :  { %v839_v56 = vpop.f32.mrf.mxu1 }
0x1549   :  { %v2725_v58 = vpop.eup %2724 }
0x154a   :  { %849 = vrot.lane.b32.xlu2 %v2725_v58, %s2905_s29 }
0x154b   :  { %v2727_v60 = vpop.eup %2726 }
0x154c   :  { %v844_v62 = vmul.f32 0.5, %v2727_v60 }
0x154e   :  { %v845_v24 = vadd.f32 0.5, %v844_v62 }
0x1550   :  { %v847_v4 = vmul.f32 %v845_v24, %v808_v42 }
0x1552   :  { %425 = vrot.lane.b32.xlu2 %v3092_v46, %s2906_s7 }
0x15a4   :  { %v850_v63 = vpop.permute.xlu2 %849 }
0x15a5   :  { %v852_v0 = vmul.f32 %v850_v63, %v845_v24 }
0x15a7   :  { %854 = vrot.lane.b32.xlu0 %v852_v0, %s2906_s7 }
0x15ac   :  { %v426_v2 = vpop.permute.xlu2 %425 }
0x15ad   :  { %429 = vst.msk [vmem:[#allocation2 + $0x20] sm:$0xff] %vm115_vm0, %v426_v2 }
0x15af   :  { %476 = vrot.lane.b32.xlu0 %v3118_v10, %s2906_s7 }
0x15b4   :  { %v587_v8 = vld [vmem:[#allocation2 + $0x20] sm:$0xff] }
0x1619   :  { %v855_v5 = vpop.permute.xlu0 %854 }
0x161a   :  { %v857_v45 = vadd.f32 %v855_v5, %v847_v4 }
0x161c   :  { %2728 = vtanh.f32 %v857_v45 }
0x1621   :  { %v477_v46 = vpop.permute.xlu0 %476 }
0x1622   :  { %v2729_v7 = vpop.eup %2728  ;;  %480 = vst.msk [vmem:[#allocation2 + $0x28] sm:$0xff] %vm115_vm0, %v477_v46 }
0x1623   :  { %860 = vrot.lane.b32.xlu1 %v2729_v7, %s2905_s29 }
0x1629   :  { %v588_v9 = vld [vmem:[#allocation2 + $0x28] sm:$0xff] }
0x162a   :  { %v593_v11 = vpack.c.bf16 %v588_v9, %v587_v8 }
0x162c   :  { %2504 = vmatmul.msk.bf16.gmra.mxu3 %vm115_vm0, %v593_v11 }
0x1695   :  { %v861_v12 = vpop.permute.xlu1 %860 }
0x1696   :  { %v3226_v13 = vmul.f32 %v861_v12, %v845_v24 }
0x1698   :  { %v870_v10 = vpack.c.bf16 %v3226_v13, %v3226_v13 }
0x169a   :  { %872 = vrot.lane.b32.xlu1 %v870_v10, %s2906_s7 }
0x16af   :  { %v646_v15 = vpop.f32.mrf.mxu3 }
0x16b0   :  { %v647_v16 = vadd.f32 %v3156_v22, %v646_v15 }
0x16b7   :  { %v648_v44 = vpop.f32.mrf.mxu3 }
0x16b8   :  { %v649_v49 = vadd.f32 %v3156_v22, %v648_v44 }
0x170c   :  { %v873_v14 = vpop.permute.xlu1 %872 }
0x170d   :  { %2517 = vmatmul.msk.bf16.vlgmr.msra.gmra.mxu2 %vm115_vm0, %v873_v14 }
0x1790   :  { %v886_v1 = vpop.f32.mrf.mxu2 }
0x1791   :  { %v890_v17 = vadd.f32 %v886_v1, %v647_v16 }
0x1793   :  { %2730 = vtanh.f32 %v890_v17  ;;  %v891_v20 = vmul.f32 0.5, %v890_v17 }
0x1795   :  { %2732 = vtanh.f32 %v891_v20 }
0x1796   :  { %2734 = vtanh.f32 %v554_v29 }
0x1798   :  { %v888_v18 = vpop.f32.mrf.mxu2 }
0x1799   :  { %v2731_v19 = vpop.eup %2730 }
0x179a   :  { %898 = vrot.lane.b32.xlu2 %v2731_v19, %s2905_s29 }
0x179b   :  { %v2733_v21 = vpop.eup %2732 }
0x179c   :  { %v893_v25 = vmul.f32 0.5, %v2733_v21  ;;  %v2735_v32 = vpop.eup %2734 }
0x179e   :  { %v894_v28 = vadd.f32 0.5, %v893_v25 }
0x17a0   :  { %v896_v33 = vmul.f32 %v894_v28, %v857_v45 }
0x17f4   :  { %v899_v30 = vpop.permute.xlu2 %898 }
0x17f5   :  { %v901_v31 = vmul.f32 %v899_v30, %v894_v28 }
0x17f7   :  { %903 = vrot.lane.b32.xlu0 %v901_v31, %s2906_s7 }
0x17ff   :  { %562 = vrot.lane.b32.xlu0 %v2735_v32, %s2905_s29 }
0x1869   :  { %v904_v34 = vpop.permute.xlu0 %903 }
0x186a   :  { %v906_v35 = vadd.f32 %v904_v34, %v896_v33 }
0x186c   :  { %2736 = vtanh.f32 %v906_v35 }
0x186d   :  { %2738 = vtanh.f32 %v555_v37 }
0x1871   :  { %v563_v40 = vpop.permute.xlu0 %562 }
0x1872   :  { %v2737_v36 = vpop.eup %2736 }
0x1873   :  { %909 = vrot.lane.b32.xlu1 %v2737_v36, %s2905_s29  ;;  %v2739_v61 = vpop.eup %2738 }
0x1874   :  { %v557_v39 = vmul.f32 0.5, %v2739_v61 }
0x1876   :  { %v558_v41 = vadd.f32 0.5, %v557_v39 }
0x1878   :  { %v565_v42 = vmul.f32 %v563_v40, %v558_v41  ;;  %v560_v53 = vmul.f32 %v558_v41, %v3163_v47 }
0x18e5   :  { %v910_v6 = vpop.permute.xlu1 %909 }
0x18e6   :  { %v3240_v27 = vmul.f32 %v910_v6, %v894_v28 }
0x18e8   :  { %v919_v38 = vpack.c.bf16 %v3240_v27, %v3240_v27 }
0x18ea   :  { %921 = vrot.lane.b32.xlu2 %v919_v38, %s2906_s7 }
0x18f2   :  { %567 = vrot.lane.b32.xlu2 %v565_v42, %s2906_s7 }
0x1944   :  { %v922_v43 = vpop.permute.xlu2 %921 }
0x1945   :  { %2518 = vmatmul.msk.bf16.vlgmr.msra.gmra.mxu0 %vm115_vm0, %v922_v43 }
0x194c   :  { %v568_v52 = vpop.permute.xlu2 %567 }
0x194d   :  { %v570_v55 = vadd.f32 %v568_v52, %v560_v53 }
0x19c2   :  { %v935_v50 = vpop.f32.mrf.mxu0 }
0x19c3   :  { %v939_v51 = vadd.f32 %v935_v50, %v649_v49 }
0x19c5   :  { %2740 = vtanh.f32 %v939_v51  ;;  %v940_v60 = vmul.f32 0.5, %v939_v51 }
0x19c6   :  { %2742 = vtanh.f32 %v570_v55 }
0x19c7   :  { %2744 = vtanh.f32 %v940_v60 }
0x19ca   :  { %v937_v56 = vpop.f32.mrf.mxu0 }
0x19cb   :  { %v2741_v58 = vpop.eup %2740 }
0x19cc   :  { %947 = vrot.lane.b32.xlu1 %v2741_v58, %s2905_s29  ;;  %v2743_v59 = vpop.eup %2742 }
0x19cd   :  { %v2745_v62 = vpop.eup %2744 }
0x19ce   :  { %v942_v24 = vmul.f32 0.5, %v2745_v62  ;;  %v1067_v62 = vld [vmem:[%s3817_s6] sm:$0xff] }
0x19d0   :  { %v943_v63 = vadd.f32 0.5, %v942_v24 }
0x19d2   :  { %v945_v5 = vmul.f32 %v943_v63, %v906_v35 }
0x19d4   :  { %573 = vrot.lane.b32.xlu1 %v2743_v59, %s2905_s29 }
0x1a3e   :  { %v948_v0 = vpop.permute.xlu1 %947 }
0x1a3f   :  { %v950_v2 = vmul.f32 %v948_v0, %v943_v63 }
0x1a41   :  { %952 = vrot.lane.b32.xlu0 %v950_v2, %s2906_s7 }
0x1a46   :  { %v574_v4 = vpop.permute.xlu1 %573 }
0x1a47   :  { %v576_v47 = vmul.f32 %v574_v4, %v558_v41  ;;  %v2632_v4 = vld [vmem:[%s3798_s12] sm:$0xff] }
0x1a49   :  { %527 = vrot.lane.b32.xlu0 %v3168_v54, %s2906_s7  ;;  %578 = vrot.lane.b32.xlu1 %v576_v47, %s2906_s7  ;;  %v2630_v47 = vld [vmem:[%s3818_s3 + $0x10] sm:$0xff] }
0x1ab3   :  { %v953_v45 = vpop.permute.xlu0 %952 }
0x1ab4   :  { %v955_v46 = vadd.f32 %v953_v45, %v945_v5  ;;  %v2628_v5 = vld [vmem:[%s3818_s3] sm:$0xff] }
0x1ab5   :  { %v3317_v45 = vld [vmem:[%s3799_s13] sm:$0xff] }
0x1ab6   :  { %2746 = vtanh.f32 %v955_v46 }
0x1abb   :  { %v528_v7 = vpop.permute.xlu0 %527  ;;  %v579_v8 = vpop.permute.xlu1 %578 }
0x1abc   :  { %v2747_v9 = vpop.eup %2746  ;;  %531 = vst.msk [vmem:[#allocation2 + $0x30] sm:$0xff] %vm115_vm0, %v528_v7 }
0x1abd   :  { %582 = vst.msk [vmem:[#allocation2 + $0x38] sm:$0xff] %vm115_vm0, %v579_v8  ;;  %958 = vrot.lane.b32.xlu2 %v2747_v9, %s2905_s29 }
0x1ac3   :  { %v589_v11 = vld [vmem:[#allocation2 + $0x30] sm:$0xff] }
0x1ac4   :  { %v590_v12 = vld [vmem:[#allocation2 + $0x38] sm:$0xff] }
0x1ac5   :  { %v594_v10 = vpack.c.bf16 %v590_v12, %v589_v11 }
0x1ac7   :  { %2505 = vmatmul.msk.bf16.gmra.mxu3 %vm115_vm0, %v594_v10 }
0x1b17   :  { %v959_v54 = vpop.permute.xlu2 %958 }
0x1b18   :  { %v961_v14 = vmul.f32 %v959_v54, %v943_v63  ;;  %v1065_v54 = vlaneseq }
0x1b1a   :  { %v968_v15 = vpack.c.bf16 %v961_v14, %v961_v14 }
0x1b1c   :  { %970 = vrot.lane.b32.xlu2 %v968_v15, %s2906_s7 }
0x1b4a   :  { %v651_v1 = vpop.f32.mrf.mxu3 }
0x1b4b   :  { %v652_v17 = vadd.f32 %v3156_v22, %v651_v1 }
0x1b52   :  { %v653_v38 = vpop.f32.mrf.mxu3 }
0x1b53   :  { %v654_v39 = vadd.f32 %v3156_v22, %v653_v38 }
0x1b76   :  { %v971_v16 = vpop.permute.xlu2 %970 }
0x1b77   :  { %2519 = vmatmul.msk.bf16.vlgmr.msrb.gmra.mxu1 %vm115_vm0, %v971_v16 }
0x1bf4   :  { %v984_v18 = vpop.f32.mrf.mxu1 }
0x1bf5   :  { %v988_v19 = vadd.f32 %v984_v18, %v652_v17  ;;  %v3330_v17 = vand.u32 127, %v1065_v54 }
0x1bf7   :  { %2748 = vtanh.f32 %v988_v19  ;;  %v989_v25 = vmul.f32 0.5, %v988_v19 }
0x1bf9   :  { %2750 = vtanh.f32 %v989_v25  ;;  %v2907_v25 = vmov 0.0  }
0x1bfc   :  { %v986_v20 = vpop.f32.mrf.mxu1 }
0x1bfd   :  { %v2749_v21 = vpop.eup %2748  ;;  %v2631_v20 = vld [vmem:[%s3818_s3 + $0x18] sm:$0xff] }
0x1bfe   :  { %996 = vrot.lane.b32.xlu0 %v2749_v21, %s2905_s29  ;;  %v2629_v21 = vld [vmem:[%s3818_s3 + $0x8] sm:$0xff] }
0x1bff   :  { %v2751_v26 = vpop.eup %2750 }
0x1c00   :  { %v991_v28 = vmul.f32 0.5, %v2751_v26 }
0x1c02   :  { %v992_v29 = vadd.f32 0.5, %v991_v28 }
0x1c04   :  { %v994_v32 = vmul.f32 %v992_v29, %v955_v46  ;;  %v2626_v46 = vld [vmem:[%s3797_s11] sm:$0xff] }
0x1c70   :  { %v997_v30 = vpop.permute.xlu0 %996 }
0x1c71   :  { %v999_v31 = vmul.f32 %v997_v30, %v992_v29 }
0x1c73   :  { %1001 = vrot.lane.b32.xlu1 %v999_v31, %s2906_s7 }
0x1ce5   :  { %v1002_v33 = vpop.permute.xlu1 %1001 }
0x1ce6   :  { %v1004_v34 = vadd.f32 %v1002_v33, %v994_v32  ;;  %v2661_v32 = vld [vmem:[%s3800_s14] ss:$0 sm:$0xff] }
0x1ce8   :  { %2752 = vtanh.f32 %v1004_v34 }
0x1cee   :  { %v2753_v35 = vpop.eup %2752 }
0x1cef   :  { %1007 = vrot.lane.b32.xlu2 %v2753_v35, %s2905_s29 }
0x1d49   :  { %v1008_v36 = vpop.permute.xlu2 %1007 }
0x1d4a   :  { %v1010_v37 = vmul.f32 %v1008_v36, %v992_v29 }
0x1d4c   :  { %v1017_v6 = vpack.c.bf16 %v1010_v37, %v1010_v37 }
0x1d4e   :  { %1019 = vrot.lane.b32.xlu0 %v1017_v6, %s2906_s7 }
0x1dc0   :  { %v1020_v61 = vpop.permute.xlu0 %1019 }
0x1dc1   :  { %2520 = vmatmul.msk.bf16.vlgmr.msrb.gmra.mxu2 %vm115_vm0, %v1020_v61 }
0x1e44   :  { %v1033_v40 = vpop.f32.mrf.mxu2 }
0x1e45   :  { %v1037_v41 = vadd.f32 %v1033_v40, %v654_v39 }
0x1e47   :  { %2754 = vtanh.f32 %v1037_v41  ;;  %v1038_v44 = vmul.f32 0.5, %v1037_v41 }
0x1e49   :  { %2756 = vtanh.f32 %v1038_v44 }
0x1e4c   :  { %v1035_v42 = vpop.f32.mrf.mxu2 }
0x1e4d   :  { %v2755_v43 = vpop.eup %2754 }
0x1e4e   :  { %1045 = vrot.lane.b32.xlu1 %v2755_v43, %s2905_s29 }
0x1e4f   :  { %v2757_v49 = vpop.eup %2756 }
0x1e50   :  { %v1040_v50 = vmul.f32 0.5, %v2757_v49 }
0x1e52   :  { %v1041_v51 = vadd.f32 0.5, %v1040_v50 }
0x1e54   :  { %v1043_v58 = vmul.f32 %v1041_v51, %v1004_v34 }
0x1e56   :  { %1012 = vrot.lane.b32.xlu1 %v1010_v37, %s2906_s7 }
0x1e5e   :  { %963 = vrot.lane.b32.xlu1 %v961_v14, %s2906_s7 }
0x1e66   :  { %718 = vrot.lane.b32.xlu1 %v3173_v57, %s2906_s7 }
0x1ec0   :  { %v1046_v22 = vpop.permute.xlu1 %1045 }
0x1ec1   :  { %v1048_v52 = vmul.f32 %v1046_v22, %v1041_v51 }
0x1ec3   :  { %1050 = vrot.lane.b32.xlu2 %v1048_v52, %s2906_s7 }
0x1ec8   :  { %v1013_v53 = vpop.permute.xlu1 %1012 }
0x1ec9   :  { %1015 = vst.msk [vmem:[#allocation2 + $0x30] sm:$0xff] %vm115_vm0, %v1013_v53 }
0x1ed0   :  { %v964_v55 = vpop.permute.xlu1 %963  ;;  %v1081_v8 = vld [vmem:[#allocation2 + $0x30] sm:$0xff] }
0x1ed1   :  { %966 = vst.msk [vmem:[#allocation2 + $0x28] sm:$0xff] %vm115_vm0, %v964_v55 }
0x1ed8   :  { %v719_v56 = vpop.permute.xlu1 %718  ;;  %v1080_v10 = vld [vmem:[#allocation2 + $0x28] sm:$0xff] }
0x1ed9   :  { %721 = vst.msk [vmem:[#allocation2] sm:$0xff] %vm115_vm0, %v719_v56 }
0x1ee0   :  { %v1075_v28 = vld [vmem:[#allocation2] sm:$0xff] }
0x1f1d   :  { %v1051_v57 = vpop.permute.xlu2 %1050 }
0x1f1e   :  { %v1053_v59 = vadd.f32 %v1051_v57, %v1043_v58 }
0x1f20   :  { %2758 = vtanh.f32 %v1053_v59 }
0x1f26   :  { %v2759_v60 = vpop.eup %2758 }
0x1f27   :  { %1056 = vrot.lane.b32.xlu0 %v2759_v60, %s2905_s29 }
0x1f2f   :  { %914 = vrot.lane.b32.xlu0 %v3240_v27, %s2906_s7 }
0x1f37   :  { %865 = vrot.lane.b32.xlu0 %v3226_v13, %s2906_s7  ;;  %v2633_v13 = vld [vmem:[%s3798_s12 + $0x8] sm:$0xff] }
0x1f38   :  { %2642 = vmatpush.bf16.msrb.mxu3 %v2633_v13  ;;  %1203 = vmatpush.bf16.msra.mxu2 %v2633_v13 }
0x1f3c   :  { %2643 = vmatpush.bf16.msrb.mxu3 %v2632_v4  ;;  %1204 = vmatpush.bf16.msra.mxu2 %v2632_v4 }
0x1f3f   :  { %1069 = vperm.xlu0 %2656, %v1067_v62   ;;  %2558 = vmatmul.msk.bf16.vlgmr.msrb.gmra.mxu3 %vm115_vm0, %v2630_v47 }
0x1f40   :  { %2556 = vmatmul.msk.bf16.vlgmr.msra.gmra.mxu2 %vm115_vm0, %v2628_v5 }
0x1f4f   :  { %2559 = vmatmul.msk.bf16.gmra.mxu3 %vm115_vm0, %v2631_v20 }
0x1f50   :  { %2557 = vmatmul.msk.bf16.gmra.mxu2 %vm115_vm0, %v2629_v21 }
0x1f99   :  { %v1057_v24 = vpop.permute.xlu0 %1056 }
0x1f9a   :  { %v1059_v63 = vmul.f32 %v1057_v24, %v1041_v51 }
0x1f9c   :  { %1061 = vrot.lane.b32.xlu2 %v1059_v63, %s2906_s7 }
0x1fa1   :  { %v915_v0 = vpop.permute.xlu0 %914 }
0x1fa2   :  { %917 = vst.msk [vmem:[#allocation2 + $0x20] sm:$0xff] %vm115_vm0, %v915_v0 }
0x1fa4   :  { %816 = vrot.lane.b32.xlu2 %v3209_v48, %s2906_s7  ;;  %v2627_v48 = vld [vmem:[%s3797_s11 + $0x8] sm:$0xff] }
0x1fa5   :  { %1130 = vmatpush.bf16.msra.mxu1 %v2627_v48 }
0x1fa9   :  { %v866_v2 = vpop.permute.xlu0 %865  ;;  %1131 = vmatpush.bf16.msra.mxu1 %v2626_v46  ;;  %v1079_v12 = vld [vmem:[#allocation2 + $0x20] sm:$0xff] }
0x1faa   :  { %868 = vst.msk [vmem:[#allocation2 + $0x18] sm:$0xff] %vm115_vm0, %v866_v2  ;;  %v1085_v14 = vpack.c.bf16 %v1080_v10, %v1079_v12 }
0x1fac   :  { %767 = vrot.lane.b32.xlu2 %v3197_v23, %s2906_s7  ;;  %v3305_v23 = vld [vmem:[%s3799_s13 + $0x8] sm:$0xff] }
0x1fad   :  { %1265 = vmatpush.bf16.msra.mxu3 %v3305_v23  ;;  %1363 = vmatpush.bf16.msrb.mxu1 %v3305_v23 }
0x1fb1   :  { %1266 = vmatpush.bf16.msra.mxu3 %v3317_v45  ;;  %1364 = vmatpush.bf16.msrb.mxu1 %v3317_v45  ;;  %v1078_v1 = vld [vmem:[#allocation2 + $0x18] sm:$0xff]  ;;  %v1070_v19 = vpop.permute.xlu0 %1069 }
0x1fb2   :  { %vm1071_vm1 = vcmp.eq.s32.totalorder %v3330_v17, %v1070_v19 }
0x1fb3   :  { %v2521_v26 = vsel %vm1071_vm1, 1.0, %v2907_v25 }
0x1fb4   :  { %v1074_v31 = vpack.c.bf16 %v2521_v26, %v2521_v26  ;;  %1267 = vmatmul.bf16.vlgmr.msra.gmra.mxu3 %v2904_v3 }
0x1fb5   :  { %1412 = vmatpush.bf16.msrb.mxu3 %v3305_v23 }
0x1fb9   :  { %1413 = vmatpush.bf16.msrb.mxu3 %v3317_v45 }
0x1fbd   :  { %1559 = vmatpush.bf16.msra.mxu3 %v3305_v23 }
0x1fc1   :  { %1560 = vmatpush.bf16.msra.mxu3 %v3317_v45 }
0x1fc2   :  { %v1216_v33 = vpop.f32.mrf.mxu3 }
0x1fc3   :  { %v1217_v34 = vadd.f32 %v2661_v32, %v1216_v33  ;;  %v1206_v44 = vpop.f32.mrf.mxu2 }
0x1fc4   :  { %v1207_v22 = vadd.f32 %v2661_v32, %v1206_v44 }
0x1fca   :  { %v1218_v35 = vpop.f32.mrf.mxu3 }
0x1fcb   :  { %v1219_v36 = vadd.f32 %v2661_v32, %v1218_v35  ;;  %v1208_v49 = vpop.f32.mrf.mxu2 }
0x1fcc   :  { %v1209_v52 = vadd.f32 %v2661_v32, %v1208_v49 }
0x1fd2   :  { %v1221_v37 = vpop.f32.mrf.mxu3 }
0x1fd3   :  { %v1222_v61 = vadd.f32 %v2661_v32, %v1221_v37  ;;  %v1211_v50 = vpop.f32.mrf.mxu2 }
0x1fd4   :  { %v1212_v53 = vadd.f32 %v2661_v32, %v1211_v50 }
0x1fda   :  { %v1223_v39 = vpop.f32.mrf.mxu3 }
0x1fdb   :  { %v1224_v41 = vadd.f32 %v2661_v32, %v1223_v39  ;;  %v1213_v51 = vpop.f32.mrf.mxu2 }
0x1fdc   :  { %v1214_v55 = vadd.f32 %v2661_v32, %v1213_v51 }
0x1ff6   :  { %v1062_v27 = vpop.permute.xlu2 %1061 }
0x1ff7   :  { %1064 = vst.msk [vmem:[#allocation2 + $0x38] sm:$0xff] %vm115_vm0, %v1062_v27 }
0x1ffe   :  { %v817_v7 = vpop.permute.xlu2 %816  ;;  %v1082_v9 = vld [vmem:[#allocation2 + $0x38] sm:$0xff] }
0x1fff   :  { %819 = vst.msk [vmem:[#allocation2 + $0x10] sm:$0xff] %vm115_vm0, %v817_v7  ;;  %v1086_v11 = vpack.c.bf16 %v1082_v9, %v1081_v8 }
0x2001   :  { %1095 = vmatpush.bf16.msrb.mxu0 %v1086_v11 }
0x2005   :  { %1096 = vmatpush.bf16.msrb.mxu0 %v1085_v14 }
0x2006   :  { %v768_v15 = vpop.permute.xlu2 %767  ;;  %v1077_v16 = vld [vmem:[#allocation2 + $0x10] sm:$0xff] }
0x2007   :  { %770 = vst.msk [vmem:[#allocation2 + $0x8] sm:$0xff] %vm115_vm0, %v768_v15  ;;  %v1084_v18 = vpack.c.bf16 %v1078_v1, %v1077_v16 }
0x2009   :  { %1097 = vmatpush.bf16.msrb.mxu0 %v1084_v18 }
0x200e   :  { %v1076_v29 = vld [vmem:[#allocation2 + $0x8] sm:$0xff] }
0x200f   :  { %v1083_v30 = vpack.c.bf16 %v1076_v29, %v1075_v28 }
0x2011   :  { %1098 = vmatpush.bf16.msrb.mxu0 %v1083_v30 }
0x2014   :  { %2522 = vmatmul.msk.bf16.vlgmr.msrb.gmra.mxu0 %vm1087_vm2, %v1074_v31 }
0x2015   :  { %1314 = vmatpush.bf16.msra.mxu0 %v3305_v23 }
0x2019   :  { %1315 = vmatpush.bf16.msra.mxu0 %v3317_v45 }
0x201d   :  { %1461 = vmatpush.bf16.msrb.mxu0 %v3305_v23 }
0x2021   :  { %1462 = vmatpush.bf16.msrb.mxu0 %v3317_v45 }
0x2037   :  { %v1268_v42 = vpop.f32.mrf.mxu3 }
0x203f   :  { %v1270_v43 = vpop.f32.mrf.mxu3 }
0x2091   :  { %v1100_v6 = vpop.f32.mrf.mxu0 }
0x2092   :  { %v1104_v38 = vpack.c.bf16 %v1100_v6, %v1100_v6 }
0x2094   :  { %2531 = vmatmul.msk.bf16.vlgmr.msra.gmra.mxu1 %vm115_vm0, %v1104_v38 }
0x2095   :  { %1510 = vmatpush.bf16.msra.mxu1 %v3305_v23 }
0x2099   :  { %v1102_v40 = vpop.f32.mrf.mxu0  ;;  %1511 = vmatpush.bf16.msra.mxu1 %v3317_v45 }
0x2111   :  { %v1133_v56 = vpop.f32.mrf.mxu1 }
0x2112   :  { %v1226_v58 = vadd.f32 %v1207_v22, %v1133_v56  ;;  %v1227_v57 = vadd.f32 %v1209_v52, %v1133_v56  ;;  %v1228_v59 = vadd.f32 %v1212_v53, %v1133_v56  ;;  %v3355_v60 = vadd.f32 %v1214_v55, %v1133_v56 }
0x2113   :  { %v3357_v62 = vadd.f32 %v1217_v34, %v1133_v56  ;;  %v3359_v24 = vadd.f32 %v1219_v36, %v1133_v56  ;;  %v3361_v63 = vadd.f32 %v1222_v61, %v1133_v56  ;;  %v3363_v0 = vadd.f32 %v1224_v41, %v1133_v56 }
0x2114   :  { %v1272_v2 = vadd.f32 %v1268_v42, %v1226_v58 }
0x2116   :  { %2760 = vtanh.f32 %v1272_v2  ;;  %v1273_v4 = vmul.f32 0.5, %v1272_v2 }
0x2118   :  { %2762 = vtanh.f32 %v1273_v4 }
0x2119   :  { %v1135_v13 = vpop.f32.mrf.mxu1 }
0x211c   :  { %v2761_v27 = vpop.eup %2760 }
0x211d   :  { %1280 = vrot.lane.b32.xlu1 %v2761_v27, %s2905_s29 }
0x211e   :  { %v2763_v48 = vpop.eup %2762 }
0x211f   :  { %v1275_v47 = vmul.f32 0.5, %v2763_v48 }
0x2121   :  { %v1276_v5 = vadd.f32 0.5, %v1275_v47 }
0x2123   :  { %v1278_v8 = vmul.f32 0.0, %v1276_v5 }
0x218f   :  { %v1281_v46 = vpop.permute.xlu1 %1280 }
0x2190   :  { %v1283_v7 = vmul.f32 %v1281_v46, %v1276_v5 }
0x2192   :  { %1285 = vrot.lane.b32.xlu2 %v1283_v7, %s2906_s7 }
0x21ec   :  { %v1286_v9 = vpop.permute.xlu2 %1285 }
0x21ed   :  { %v1288_v11 = vadd.f32 %v1286_v9, %v1278_v8 }
0x21ef   :  { %2764 = vtanh.f32 %v1288_v11 }
0x21f5   :  { %v2765_v12 = vpop.eup %2764 }
0x21f6   :  { %1291 = vrot.lane.b32.xlu1 %v2765_v12, %s2905_s29 }
0x2268   :  { %v1292_v10 = vpop.permute.xlu1 %1291 }
0x2269   :  { %v3368_v54 = vmul.f32 %v1292_v10, %v1276_v5 }
0x226b   :  { %v1301_v14 = vpack.c.bf16 %v3368_v54, %v3368_v54 }
0x226d   :  { %1303 = vrot.lane.b32.xlu2 %v1301_v14, %s2906_s7 }
0x22c7   :  { %v1304_v15 = vpop.permute.xlu2 %1303 }
0x22c8   :  { %2568 = vmatmul.msk.bf16.vlgmr.msra.gmra.mxu0 %vm115_vm0, %v1304_v15 }
0x22c9   :  { %1608 = vmatpush.bf16.msra.mxu0 %v3305_v23 }
0x22cd   :  { %1609 = vmatpush.bf16.msra.mxu0 %v3317_v45 }
0x2345   :  { %v1317_v16 = vpop.f32.mrf.mxu0 }
0x2346   :  { %v1321_v1 = vadd.f32 %v1317_v16, %v1227_v57 }
0x2348   :  { %2766 = vtanh.f32 %v1321_v1  ;;  %v1322_v20 = vmul.f32 0.5, %v1321_v1 }
0x234a   :  { %2768 = vtanh.f32 %v1322_v20 }
0x234d   :  { %v1319_v18 = vpop.f32.mrf.mxu0 }
0x234e   :  { %v2767_v19 = vpop.eup %2766 }
0x234f   :  { %1329 = vrot.lane.b32.xlu0 %v2767_v19, %s2905_s29 }
0x2350   :  { %v2769_v21 = vpop.eup %2768 }
0x2351   :  { %v1324_v25 = vmul.f32 0.5, %v2769_v21 }
0x2353   :  { %v1325_v26 = vadd.f32 0.5, %v1324_v25 }
0x2355   :  { %v1327_v30 = vmul.f32 %v1325_v26, %v1288_v11 }
0x23c1   :  { %v1330_v28 = vpop.permute.xlu0 %1329 }
0x23c2   :  { %v1332_v29 = vmul.f32 %v1330_v28, %v1325_v26 }
0x23c4   :  { %1334 = vrot.lane.b32.xlu1 %v1332_v29, %s2906_s7 }
0x2436   :  { %v1335_v23 = vpop.permute.xlu1 %1334 }
0x2437   :  { %v1337_v31 = vadd.f32 %v1335_v23, %v1327_v30 }
0x2439   :  { %2770 = vtanh.f32 %v1337_v31 }
0x243f   :  { %v2771_v45 = vpop.eup %2770 }
0x2440   :  { %1340 = vrot.lane.b32.xlu2 %v2771_v45, %s2905_s29 }
0x249a   :  { %v1341_v32 = vpop.permute.xlu2 %1340 }
0x249b   :  { %v3379_v33 = vmul.f32 %v1341_v32, %v1325_v26 }
0x249d   :  { %v1350_v34 = vpack.c.bf16 %v3379_v33, %v3379_v33 }
0x249f   :  { %1352 = vrot.lane.b32.xlu0 %v1350_v34, %s2906_s7 }
0x2511   :  { %v1353_v35 = vpop.permute.xlu0 %1352 }
0x2512   :  { %2569 = vmatmul.msk.bf16.vlgmr.msrb.gmra.mxu1 %vm115_vm0, %v1353_v35 }
0x258f   :  { %v1366_v36 = vpop.f32.mrf.mxu1 }
0x2590   :  { %v1370_v37 = vadd.f32 %v1366_v36, %v1228_v59 }
0x2592   :  { %2772 = vtanh.f32 %v1370_v37  ;;  %v1371_v38 = vmul.f32 0.5, %v1370_v37 }
0x2594   :  { %2774 = vtanh.f32 %v1371_v38 }
0x2597   :  { %v1368_v6 = vpop.f32.mrf.mxu1 }
0x2598   :  { %v2773_v61 = vpop.eup %2772 }
0x2599   :  { %1378 = vrot.lane.b32.xlu1 %v2773_v61, %s2905_s29 }
0x259a   :  { %v2775_v39 = vpop.eup %2774 }
0x259b   :  { %v1373_v40 = vmul.f32 0.5, %v2775_v39 }
0x259d   :  { %v1374_v41 = vadd.f32 0.5, %v1373_v40 }
0x259f   :  { %v1376_v44 = vmul.f32 %v1374_v41, %v1337_v31 }
0x260b   :  { %v1379_v42 = vpop.permute.xlu1 %1378 }
0x260c   :  { %v1381_v43 = vmul.f32 %v1379_v42, %v1374_v41 }
0x260e   :  { %1383 = vrot.lane.b32.xlu2 %v1381_v43, %s2906_s7 }
0x2668   :  { %v1384_v49 = vpop.permute.xlu2 %1383 }
0x2669   :  { %v1386_v50 = vadd.f32 %v1384_v49, %v1376_v44  ;;  %v2637_v49 = vld [vmem:[%s3801_s15 + $0x8] sm:$0xff] }
0x266a   :  { %1693 = vmatpush.bf16.msrb.mxu1 %v2637_v49 }
0x266b   :  { %2776 = vtanh.f32 %v1386_v50 }
0x2671   :  { %v2777_v51 = vpop.eup %2776 }
0x2672   :  { %1389 = vrot.lane.b32.xlu0 %v2777_v51, %s2905_s29 }
0x26e4   :  { %v1390_v22 = vpop.permute.xlu0 %1389 }
0x26e5   :  { %v3388_v52 = vmul.f32 %v1390_v22, %v1374_v41 }
0x26e7   :  { %v1399_v53 = vpack.c.bf16 %v3388_v52, %v3388_v52 }
0x26e9   :  { %1401 = vrot.lane.b32.xlu1 %v1399_v53, %s2906_s7 }
0x275b   :  { %v1402_v55 = vpop.permute.xlu1 %1401 }
0x275c   :  { %2570 = vmatmul.msk.bf16.vlgmr.msrb.gmra.mxu3 %vm115_vm0, %v1402_v55 }
0x27df   :  { %v1415_v56 = vpop.f32.mrf.mxu3 }
0x27e0   :  { %v1419_v58 = vadd.f32 %v1415_v56, %v3355_v60 }
0x27e2   :  { %2778 = vtanh.f32 %v1419_v58  ;;  %v1420_v2 = vmul.f32 0.5, %v1419_v58  ;;  %v3442_v58 = vld [vmem:[%s3802_s16 + $0x8] sm:$0xff] }
0x27e3   :  { %1747 = vmatpush.bf16.msrb.mxu3 %v3442_v58  ;;  %1845 = vmatpush.bf16.msrb.mxu2 %v3442_v58 }
0x27e4   :  { %2780 = vtanh.f32 %v1420_v2 }
0x27e7   :  { %v1417_v57 = vpop.f32.mrf.mxu3 }
0x27e8   :  { %v2779_v59 = vpop.eup %2778  ;;  %v3448_v57 = vld [vmem:[%s3802_s16] sm:$0xff] }
0x27e9   :  { %1427 = vrot.lane.b32.xlu2 %v2779_v59, %s2905_s29  ;;  %1748 = vmatpush.bf16.msrb.mxu3 %v3448_v57 }
0x27ea   :  { %v2781_v13 = vpop.eup %2780  ;;  %1846 = vmatpush.bf16.msrb.mxu2 %v3448_v57 }
0x27eb   :  { %v1422_v27 = vmul.f32 0.5, %v2781_v13 }
0x27ed   :  { %v1423_v4 = vadd.f32 0.5, %v1422_v27 }
0x27ee   :  { %1992 = vmatpush.bf16.msra.mxu2 %v3442_v58 }
0x27ef   :  { %v1425_v5 = vmul.f32 %v1423_v4, %v1386_v50 }
0x27f2   :  { %1993 = vmatpush.bf16.msra.mxu2 %v3448_v57 }
0x2843   :  { %v1428_v48 = vpop.permute.xlu2 %1427 }
0x2844   :  { %v1430_v47 = vmul.f32 %v1428_v48, %v1423_v4  ;;  %v3468_v48 = vld [vmem:[%s3803_s17] ss:$0 sm:$0xff] }
0x2846   :  { %1432 = vrot.lane.b32.xlu0 %v1430_v47, %s2906_s7 }
0x28b8   :  { %v1433_v46 = vpop.permute.xlu0 %1432 }
0x28b9   :  { %v1435_v7 = vadd.f32 %v1433_v46, %v1425_v5 }
0x28bb   :  { %2782 = vtanh.f32 %v1435_v7 }
0x28c1   :  { %v2783_v8 = vpop.eup %2782 }
0x28c2   :  { %1438 = vrot.lane.b32.xlu1 %v2783_v8, %s2905_s29 }
0x2934   :  { %v1439_v60 = vpop.permute.xlu1 %1438 }
0x2935   :  { %v3398_v9 = vmul.f32 %v1439_v60, %v1423_v4 }
0x2937   :  { %v1448_v11 = vpack.c.bf16 %v3398_v9, %v3398_v9 }
0x2939   :  { %1450 = vrot.lane.b32.xlu2 %v1448_v11, %s2906_s7 }
0x2993   :  { %v1451_v12 = vpop.permute.xlu2 %1450 }
0x2994   :  { %2571 = vmatmul.msk.bf16.vlgmr.msrb.gmra.mxu0 %vm115_vm0, %v1451_v12 }
0x2995   :  { %1796 = vmatpush.bf16.msrb.mxu0 %v3442_v58 }
0x2999   :  { %1797 = vmatpush.bf16.msrb.mxu0 %v3448_v57 }
0x2a11   :  { %v1464_v10 = vpop.f32.mrf.mxu0 }
0x2a12   :  { %v1468_v14 = vadd.f32 %v1464_v10, %v3357_v62 }
0x2a14   :  { %2784 = vtanh.f32 %v1468_v14  ;;  %v1469_v1 = vmul.f32 0.5, %v1468_v14 }
0x2a16   :  { %2786 = vtanh.f32 %v1469_v1 }
0x2a19   :  { %v1466_v15 = vpop.f32.mrf.mxu0 }
0x2a1a   :  { %v2785_v16 = vpop.eup %2784 }
0x2a1b   :  { %1476 = vrot.lane.b32.xlu0 %v2785_v16, %s2905_s29 }
0x2a1c   :  { %v2787_v18 = vpop.eup %2786 }
0x2a1d   :  { %v1471_v19 = vmul.f32 0.5, %v2787_v18 }
0x2a1f   :  { %v1472_v20 = vadd.f32 0.5, %v1471_v19 }
0x2a21   :  { %v1474_v26 = vmul.f32 %v1472_v20, %v1435_v7 }
0x2a8d   :  { %v1477_v21 = vpop.permute.xlu0 %1476 }
0x2a8e   :  { %v1479_v25 = vmul.f32 %v1477_v21, %v1472_v20 }
0x2a90   :  { %1481 = vrot.lane.b32.xlu1 %v1479_v25, %s2906_s7 }
0x2b02   :  { %v1482_v28 = vpop.permute.xlu1 %1481 }
0x2b03   :  { %v1484_v29 = vadd.f32 %v1482_v28, %v1474_v26 }
0x2b05   :  { %2788 = vtanh.f32 %v1484_v29 }
0x2b0b   :  { %v2789_v30 = vpop.eup %2788 }
0x2b0c   :  { %1487 = vrot.lane.b32.xlu2 %v2789_v30, %s2905_s29 }
0x2b66   :  { %v1488_v62 = vpop.permute.xlu2 %1487 }
0x2b67   :  { %v3408_v23 = vmul.f32 %v1488_v62, %v1472_v20 }
0x2b69   :  { %v1497_v31 = vpack.c.bf16 %v3408_v23, %v3408_v23 }
0x2b6b   :  { %1499 = vrot.lane.b32.xlu0 %v1497_v31, %s2906_s7 }
0x2bdd   :  { %v1500_v45 = vpop.permute.xlu0 %1499 }
0x2bde   :  { %2572 = vmatmul.msk.bf16.vlgmr.msra.gmra.mxu1 %vm115_vm0, %v1500_v45 }
0x2c5b   :  { %v1513_v32 = vpop.f32.mrf.mxu1 }
0x2c5c   :  { %v1517_v34 = vadd.f32 %v1513_v32, %v3359_v24 }
0x2c5e   :  { %2790 = vtanh.f32 %v1517_v34  ;;  %v1518_v37 = vmul.f32 0.5, %v1517_v34 }
0x2c60   :  { %2792 = vtanh.f32 %v1518_v37 }
0x2c63   :  { %v1515_v35 = vpop.f32.mrf.mxu1 }
0x2c64   :  { %v2791_v36 = vpop.eup %2790 }
0x2c65   :  { %1525 = vrot.lane.b32.xlu1 %v2791_v36, %s2905_s29 }
0x2c66   :  { %v2793_v6 = vpop.eup %2792 }
0x2c67   :  { %v1520_v61 = vmul.f32 0.5, %v2793_v6 }
0x2c69   :  { %v1521_v38 = vadd.f32 0.5, %v1520_v61 }
0x2c6b   :  { %v1523_v41 = vmul.f32 %v1521_v38, %v1484_v29 }
0x2cd7   :  { %v1526_v39 = vpop.permute.xlu1 %1525 }
0x2cd8   :  { %v1528_v40 = vmul.f32 %v1526_v39, %v1521_v38 }
0x2cda   :  { %1530 = vrot.lane.b32.xlu2 %v1528_v40, %s2906_s7 }
0x2ce2   :  { %1296 = vrot.lane.b32.xlu2 %v3368_v54, %s2906_s7  ;;  %v2636_v54 = vld [vmem:[%s3801_s15] sm:$0xff] }
0x2ce3   :  { %1694 = vmatpush.bf16.msrb.mxu1 %v2636_v54 }
0x2d34   :  { %v1531_v42 = vpop.permute.xlu2 %1530 }
0x2d35   :  { %v3419_v24 = vadd.f32 %v1531_v42, %v1523_v41 }
0x2d37   :  { %2794 = vtanh.f32 %v3419_v24 }
0x2d3c   :  { %v1297_v43 = vpop.permute.xlu2 %1296 }
0x2d3d   :  { %v2795_v44 = vpop.eup %2794  ;;  %1299 = vst.msk [vmem:[#allocation2] sm:$0xff] %vm115_vm0, %v1297_v43 }
0x2d3e   :  { %1536 = vrot.lane.b32.xlu0 %v2795_v44, %s2905_s29 }
0x2d46   :  { %1345 = vrot.lane.b32.xlu0 %v3379_v33, %s2906_s7  ;;  %v1643_v33 = vld [vmem:[#allocation2] sm:$0xff] }
0x2db0   :  { %v1537_v50 = vpop.permute.xlu0 %1536 }
0x2db1   :  { %v3432_v51 = vmul.f32 %v1537_v50, %v1521_v38 }
0x2db3   :  { %v1546_v22 = vpack.c.bf16 %v3432_v51, %v3432_v51 }
0x2db5   :  { %1548 = vrot.lane.b32.xlu1 %v1546_v22, %s2906_s7 }
0x2db8   :  { %v1346_v53 = vpop.permute.xlu0 %1345 }
0x2db9   :  { %1348 = vst.msk [vmem:[#allocation2 + $0x8] sm:$0xff] %vm115_vm0, %v1346_v53 }
0x2dc0   :  { %v1644_v55 = vld [vmem:[#allocation2 + $0x8] sm:$0xff] }
0x2dc1   :  { %v1651_v56 = vpack.c.bf16 %v1644_v55, %v1643_v33 }
0x2dc3   :  { %2583 = vmatmul.msk.bf16.vlgmr.msrb.gmra.mxu1 %vm115_vm0, %v1651_v56 }
0x2e27   :  { %v1549_v59 = vpop.permute.xlu1 %1548 }
0x2e28   :  { %2573 = vmatmul.msk.bf16.vlgmr.msra.gmra.mxu3 %vm115_vm0, %v1549_v59 }
0x2e29   :  { %1894 = vmatpush.bf16.msra.mxu3 %v3442_v58 }
0x2e2d   :  { %1895 = vmatpush.bf16.msra.mxu3 %v3448_v57 }
0x2e38   :  { %1749 = vmatmul.bf16.vlgmr.msrb.gmra.mxu3 %v2904_v3 }
0x2e39   :  { %2041 = vmatpush.bf16.msrb.mxu3 %v3442_v58 }
0x2e3d   :  { %2042 = vmatpush.bf16.msrb.mxu3 %v3448_v57 }
0x2e40   :  { %v1696_v47 = vpop.f32.mrf.mxu1 }
0x2e41   :  { %v1697_v3 = vadd.f32 %v3468_v48, %v1696_v47 }
0x2e48   :  { %v1698_v41 = vpop.f32.mrf.mxu1 }
0x2e49   :  { %v1699_v42 = vadd.f32 %v3468_v48, %v1698_v41 }
0x2eab   :  { %v1562_v2 = vpop.f32.mrf.mxu3 }
0x2eac   :  { %v1566_v13 = vadd.f32 %v1562_v2, %v3361_v63 }
0x2eae   :  { %2796 = vtanh.f32 %v1566_v13  ;;  %v1567_v60 = vmul.f32 0.5, %v1566_v13 }
0x2eb3   :  { %v1564_v27 = vpop.f32.mrf.mxu3 }
0x2eb4   :  { %v2797_v4 = vpop.eup %2796 }
0x2eb5   :  { %1574 = vrot.lane.b32.xlu1 %v2797_v4, %s2905_s29 }
0x2ebb   :  { %v1750_v5 = vpop.f32.mrf.mxu3 }
0x2ebc   :  { %v1754_v46 = vadd.f32 %v1750_v5, %v1697_v3 }
0x2ebe   :  { %2798 = vtanh.f32 %v1754_v46  ;;  %v1755_v63 = vmul.f32 0.5, %v1754_v46 }
0x2ec0   :  { %2800 = vtanh.f32 %v1755_v63 }
0x2ec1   :  { %2802 = vtanh.f32 %v1567_v60 }
0x2ec3   :  { %v1752_v7 = vpop.f32.mrf.mxu3 }
0x2ec4   :  { %v2799_v8 = vpop.eup %2798 }
0x2ec5   :  { %1762 = vrot.lane.b32.xlu2 %v2799_v8, %s2905_s29 }
0x2ec6   :  { %v2801_v11 = vpop.eup %2800 }
0x2ec7   :  { %v1757_v12 = vmul.f32 0.5, %v2801_v11  ;;  %v2803_v14 = vpop.eup %2802 }
0x2ec8   :  { %v1569_v1 = vmul.f32 0.5, %v2803_v14 }
0x2ec9   :  { %v1758_v10 = vadd.f32 0.5, %v1757_v12 }
0x2eca   :  { %v1570_v18 = vadd.f32 0.5, %v1569_v1 }
0x2ecb   :  { %v1760_v21 = vmul.f32 0.0, %v1758_v10 }
0x2ecc   :  { %v1572_v28 = vmul.f32 %v1570_v18, %v3419_v24 }
0x2f1f   :  { %v1763_v15 = vpop.permute.xlu2 %1762 }
0x2f20   :  { %v1765_v16 = vmul.f32 %v1763_v15, %v1758_v10 }
0x2f22   :  { %1767 = vrot.lane.b32.xlu1 %v1765_v16, %s2906_s7 }
0x2f27   :  { %v1575_v19 = vpop.permute.xlu1 %1574 }
0x2f28   :  { %v1577_v20 = vmul.f32 %v1575_v19, %v1570_v18 }
0x2f2a   :  { %1579 = vrot.lane.b32.xlu0 %v1577_v20, %s2906_s7 }
0x2f94   :  { %v1768_v25 = vpop.permute.xlu1 %1767 }
0x2f95   :  { %v1770_v26 = vadd.f32 %v1768_v25, %v1760_v21 }
0x2f97   :  { %2804 = vtanh.f32 %v1770_v26 }
0x2f9c   :  { %v1580_v29 = vpop.permute.xlu0 %1579 }
0x2f9d   :  { %v2805_v30 = vpop.eup %2804  ;;  %v3475_v62 = vadd.f32 %v1580_v29, %v1572_v28 }
0x2f9e   :  { %1773 = vrot.lane.b32.xlu0 %v2805_v30, %s2905_s29 }
0x2f9f   :  { %2806 = vtanh.f32 %v3475_v62 }
0x2fa5   :  { %v2807_v31 = vpop.eup %2806 }
0x2fa6   :  { %1585 = vrot.lane.b32.xlu2 %v2807_v31, %s2905_s29 }
0x3000   :  { %v1586_v45 = vpop.permute.xlu2 %1585 }
0x3001   :  { %v3480_v32 = vmul.f32 %v1586_v45, %v1570_v18 }
0x3003   :  { %v1595_v34 = vpack.c.bf16 %v3480_v32, %v3480_v32 }
0x3005   :  { %1597 = vrot.lane.b32.xlu1 %v1595_v34, %s2906_s7 }
0x3010   :  { %v1774_v35 = vpop.permute.xlu0 %1773 }
0x3011   :  { %v3485_v36 = vmul.f32 %v1774_v35, %v1758_v10 }
0x3013   :  { %v1783_v37 = vpack.c.bf16 %v3485_v36, %v3485_v36 }
0x3015   :  { %1785 = vrot.lane.b32.xlu2 %v1783_v37, %s2906_s7 }
0x306f   :  { %v1786_v61 = vpop.permute.xlu2 %1785 }
0x3077   :  { %v1598_v6 = vpop.permute.xlu1 %1597 }
0x3078   :  { %2574 = vmatmul.msk.bf16.vlgmr.msra.gmra.mxu0 %vm115_vm0, %v1598_v6 }
0x3079   :  { %1943 = vmatpush.bf16.msra.mxu0 %v3442_v58 }
0x307d   :  { %1944 = vmatpush.bf16.msra.mxu0 %v3448_v57 }
0x3088   :  { %2595 = vmatmul.msk.bf16.vlgmr.msrb.gmra.mxu0 %vm115_vm0, %v1786_v61 }
0x3089   :  { %2090 = vmatpush.bf16.msrb.mxu0 %v3442_v58 }
0x308d   :  { %2091 = vmatpush.bf16.msrb.mxu0 %v3448_v57 }
0x30f5   :  { %v1611_v38 = vpop.f32.mrf.mxu0 }
0x30f6   :  { %v3497_v39 = vadd.f32 %v1611_v38, %v3363_v0 }
0x30fd   :  { %v1613_v40 = vpop.f32.mrf.mxu0 }
0x3105   :  { %v1799_v24 = vpop.f32.mrf.mxu0 }
0x3106   :  { %v1803_v43 = vadd.f32 %v1799_v24, %v1699_v42 }
0x3108   :  { %2808 = vtanh.f32 %v1803_v43  ;;  %v1804_v54 = vmul.f32 0.5, %v1803_v43 }
0x310a   :  { %2810 = vtanh.f32 %v1804_v54 }
0x310d   :  { %v1801_v44 = vpop.f32.mrf.mxu0 }
0x310e   :  { %v2809_v49 = vpop.eup %2808 }
0x310f   :  { %1811 = vrot.lane.b32.xlu0 %v2809_v49, %s2905_s29 }
0x3110   :  { %v2811_v50 = vpop.eup %2810 }
0x3111   :  { %v1806_v22 = vmul.f32 0.5, %v2811_v50 }
0x3113   :  { %v1807_v0 = vadd.f32 0.5, %v1806_v22 }
0x3115   :  { %v1809_v56 = vmul.f32 %v1807_v0, %v1770_v26 }
0x3117   :  { %1394 = vrot.lane.b32.xlu0 %v3388_v52, %s2906_s7 }
0x3181   :  { %v1812_v53 = vpop.permute.xlu0 %1811 }
0x3182   :  { %v1814_v33 = vmul.f32 %v1812_v53, %v1807_v0 }
0x3184   :  { %1816 = vrot.lane.b32.xlu1 %v1814_v33, %s2906_s7 }
0x3189   :  { %v1395_v55 = vpop.permute.xlu0 %1394 }
0x318a   :  { %1397 = vst.msk [vmem:[#allocation2 + $0x10] sm:$0xff] %vm115_vm0, %v1395_v55 }
0x318c   :  { %1443 = vrot.lane.b32.xlu1 %v3398_v9, %s2906_s7 }
0x3191   :  { %v1645_v2 = vld [vmem:[#allocation2 + $0x10] sm:$0xff] }
0x31f6   :  { %v1817_v58 = vpop.permute.xlu1 %1816 }
0x31f7   :  { %v1819_v57 = vadd.f32 %v1817_v58, %v1809_v56 }
0x31f9   :  { %2812 = vtanh.f32 %v1819_v57 }
0x31fe   :  { %v1444_v52 = vpop.permute.xlu1 %1443 }
0x31ff   :  { %v2813_v59 = vpop.eup %2812  ;;  %1446 = vst.msk [vmem:[#allocation2 + $0x18] sm:$0xff] %vm115_vm0, %v1444_v52 }
0x3200   :  { %1822 = vrot.lane.b32.xlu2 %v2813_v59, %s2905_s29 }
0x3206   :  { %v1646_v13 = vld [vmem:[#allocation2 + $0x18] sm:$0xff] }
0x3207   :  { %v1652_v27 = vpack.c.bf16 %v1646_v13, %v1645_v2 }
0x3209   :  { %2584 = vmatmul.msk.bf16.gmra.mxu1 %vm115_vm0, %v1652_v27 }
0x325a   :  { %v1823_v4 = vpop.permute.xlu2 %1822 }
0x325b   :  { %v3510_v47 = vmul.f32 %v1823_v4, %v1807_v0 }
0x325d   :  { %v1832_v9 = vpack.c.bf16 %v3510_v47, %v3510_v47 }
0x325f   :  { %1834 = vrot.lane.b32.xlu2 %v1832_v9, %s2906_s7 }
0x3286   :  { %v1701_v5 = vpop.f32.mrf.mxu1 }
0x3287   :  { %v1702_v46 = vadd.f32 %v3468_v48, %v1701_v5 }
0x328e   :  { %v1703_v29 = vpop.f32.mrf.mxu1 }
0x328f   :  { %v1704_v30 = vadd.f32 %v3468_v48, %v1703_v29 }
0x32b9   :  { %v1835_v3 = vpop.permute.xlu2 %1834 }
0x32ba   :  { %2596 = vmatmul.msk.bf16.vlgmr.msrb.gmra.mxu2 %vm115_vm0, %v1835_v3 }
0x333d   :  { %v1848_v7 = vpop.f32.mrf.mxu2 }
0x333e   :  { %v1852_v8 = vadd.f32 %v1848_v7, %v1702_v46 }
0x3340   :  { %2814 = vtanh.f32 %v1852_v8  ;;  %v1853_v11 = vmul.f32 0.5, %v1852_v8 }
0x3342   :  { %2816 = vtanh.f32 %v1853_v11 }
0x3345   :  { %v1850_v63 = vpop.f32.mrf.mxu2 }
0x3346   :  { %v2815_v60 = vpop.eup %2814 }
0x3347   :  { %1860 = vrot.lane.b32.xlu0 %v2815_v60, %s2905_s29  ;;  %v1616_v60 = vmul.f32 0.5, %v3497_v39 }
0x3348   :  { %v2817_v12 = vpop.eup %2816 }
0x3349   :  { %v1855_v10 = vmul.f32 0.5, %v2817_v12 }
0x334b   :  { %v1856_v14 = vadd.f32 0.5, %v1855_v10 }
0x334d   :  { %v1858_v1 = vmul.f32 %v1856_v14, %v1819_v57 }
0x33b9   :  { %v1861_v15 = vpop.permute.xlu0 %1860 }
0x33ba   :  { %v1863_v16 = vmul.f32 %v1861_v15, %v1856_v14 }
0x33bc   :  { %1865 = vrot.lane.b32.xlu1 %v1863_v16, %s2906_s7 }
0x342e   :  { %v1866_v18 = vpop.permute.xlu1 %1865 }
0x342f   :  { %v1868_v19 = vadd.f32 %v1866_v18, %v1858_v1 }
0x3431   :  { %2818 = vtanh.f32 %v1868_v19 }
0x3437   :  { %v2819_v20 = vpop.eup %2818 }
0x3438   :  { %1871 = vrot.lane.b32.xlu2 %v2819_v20, %s2905_s29 }
0x3492   :  { %v1872_v21 = vpop.permute.xlu2 %1871 }
0x3493   :  { %v3520_v25 = vmul.f32 %v1872_v21, %v1856_v14 }
0x3495   :  { %v1881_v26 = vpack.c.bf16 %v3520_v25, %v3520_v25 }
0x3497   :  { %1883 = vrot.lane.b32.xlu0 %v1881_v26, %s2906_s7 }
0x3509   :  { %v1884_v28 = vpop.permute.xlu0 %1883 }
0x350a   :  { %2597 = vmatmul.msk.bf16.vlgmr.msra.gmra.mxu3 %vm115_vm0, %v1884_v28 }
0x358d   :  { %v1897_v31 = vpop.f32.mrf.mxu3 }
0x358e   :  { %v1901_v45 = vadd.f32 %v1897_v31, %v1704_v30 }
0x3590   :  { %2820 = vtanh.f32 %v1901_v45  ;;  %v1902_v37 = vmul.f32 0.5, %v1901_v45 }
0x3592   :  { %2822 = vtanh.f32 %v1902_v37 }
0x3595   :  { %v1899_v34 = vpop.f32.mrf.mxu3 }
0x3596   :  { %v2821_v35 = vpop.eup %2820 }
0x3597   :  { %1909 = vrot.lane.b32.xlu1 %v2821_v35, %s2905_s29 }
0x3598   :  { %v2823_v6 = vpop.eup %2822 }
0x3599   :  { %v1904_v61 = vmul.f32 0.5, %v2823_v6 }
0x359b   :  { %v1905_v38 = vadd.f32 0.5, %v1904_v61 }
0x359d   :  { %v1907_v24 = vmul.f32 %v1905_v38, %v1868_v19 }
0x359f   :  { %1492 = vrot.lane.b32.xlu1 %v3408_v23, %s2906_s7 }
0x3609   :  { %v1910_v40 = vpop.permute.xlu1 %1909 }
0x360a   :  { %v1912_v41 = vmul.f32 %v1910_v40, %v1905_v38 }
0x360c   :  { %1914 = vrot.lane.b32.xlu2 %v1912_v41, %s2906_s7 }
0x3611   :  { %v1493_v42 = vpop.permute.xlu1 %1492 }
0x3612   :  { %1495 = vst.msk [vmem:[#allocation2 + $0x20] sm:$0xff] %vm115_vm0, %v1493_v42 }
0x3614   :  { %1541 = vrot.lane.b32.xlu2 %v3432_v51, %s2906_s7 }
0x3619   :  { %v1647_v54 = vld [vmem:[#allocation2 + $0x20] sm:$0xff] }
0x3666   :  { %v1915_v43 = vpop.permute.xlu2 %1914 }
0x3667   :  { %v1917_v44 = vadd.f32 %v1915_v43, %v1907_v24 }
0x3669   :  { %2824 = vtanh.f32 %v1917_v44 }
0x366e   :  { %v1542_v23 = vpop.permute.xlu2 %1541 }
0x366f   :  { %v2825_v49 = vpop.eup %2824  ;;  %1544 = vst.msk [vmem:[#allocation2 + $0x28] sm:$0xff] %vm115_vm0, %v1542_v23 }
0x3670   :  { %1920 = vrot.lane.b32.xlu0 %v2825_v49, %s2905_s29 }
0x3676   :  { %v1648_v50 = vld [vmem:[#allocation2 + $0x28] sm:$0xff] }
0x3677   :  { %v1653_v22 = vpack.c.bf16 %v1648_v50, %v1647_v54 }
0x3679   :  { %2585 = vmatmul.msk.bf16.gmra.mxu1 %vm115_vm0, %v1653_v22 }
0x36e2   :  { %v1921_v0 = vpop.permute.xlu0 %1920 }
0x36e3   :  { %v3537_v53 = vmul.f32 %v1921_v0, %v1905_v38 }
0x36e5   :  { %v1930_v51 = vpack.c.bf16 %v3537_v53, %v3537_v53 }
0x36e7   :  { %1932 = vrot.lane.b32.xlu0 %v1930_v51, %s2906_s7 }
0x36f6   :  { %v1706_v55 = vpop.f32.mrf.mxu1 }
0x36f7   :  { %v1707_v56 = vadd.f32 %v3468_v48, %v1706_v55 }
0x3759   :  { %v1933_v33 = vpop.permute.xlu0 %1932 }
0x375a   :  { %2598 = vmatmul.msk.bf16.vlgmr.msra.gmra.mxu0 %vm115_vm0, %v1933_v33 }
0x37d7   :  { %v1946_v58 = vpop.f32.mrf.mxu0 }
0x37d8   :  { %v1950_v57 = vadd.f32 %v1946_v58, %v1707_v56 }
0x37da   :  { %2826 = vtanh.f32 %v1950_v57  ;;  %v1951_v2 = vmul.f32 0.5, %v1950_v57 }
0x37dc   :  { %2828 = vtanh.f32 %v1951_v2 }
0x37dd   :  { %2830 = vtanh.f32 %v3497_v39  ;;  %v1708_v39 = vpop.f32.mrf.mxu1 }
0x37de   :  { %v1709_v20 = vadd.f32 %v3468_v48, %v1708_v39 }
0x37df   :  { %v1948_v52 = vpop.f32.mrf.mxu0 }
0x37e0   :  { %v2827_v59 = vpop.eup %2826 }
0x37e1   :  { %1958 = vrot.lane.b32.xlu1 %v2827_v59, %s2905_s29 }
0x37e2   :  { %v2829_v13 = vpop.eup %2828 }
0x37e3   :  { %v1953_v27 = vmul.f32 0.5, %v2829_v13  ;;  %v2831_v5 = vpop.eup %2830 }
0x37e5   :  { %v1954_v4 = vadd.f32 0.5, %v1953_v27 }
0x37e7   :  { %v1956_v46 = vmul.f32 %v1954_v4, %v1917_v44 }
0x3853   :  { %v1959_v9 = vpop.permute.xlu1 %1958 }
0x3854   :  { %v1961_v3 = vmul.f32 %v1959_v9, %v1954_v4 }
0x3856   :  { %1963 = vrot.lane.b32.xlu2 %v1961_v3, %s2906_s7 }
0x385e   :  { %1623 = vrot.lane.b32.xlu2 %v2831_v5, %s2905_s29 }
0x38b0   :  { %v1964_v7 = vpop.permute.xlu2 %1963 }
0x38b1   :  { %v1966_v8 = vadd.f32 %v1964_v7, %v1956_v46 }
0x38b3   :  { %2832 = vtanh.f32 %v1966_v8 }
0x38b4   :  { %2834 = vtanh.f32 %v1616_v60 }
0x38b8   :  { %v1624_v16 = vpop.permute.xlu2 %1623 }
0x38b9   :  { %v2833_v63 = vpop.eup %2832 }
0x38ba   :  { %1969 = vrot.lane.b32.xlu0 %v2833_v63, %s2905_s29  ;;  %v2835_v10 = vpop.eup %2834 }
0x38bb   :  { %v1618_v15 = vmul.f32 0.5, %v2835_v10 }
0x38bd   :  { %v1619_v1 = vadd.f32 0.5, %v1618_v15 }
0x38bf   :  { %v1626_v18 = vmul.f32 %v1624_v16, %v1619_v1  ;;  %v1621_v29 = vmul.f32 %v1619_v1, %v3475_v62 }
0x392c   :  { %v1970_v11 = vpop.permute.xlu0 %1969 }
0x392d   :  { %v3550_v12 = vmul.f32 %v1970_v11, %v1954_v4 }
0x392f   :  { %v1979_v14 = vpack.c.bf16 %v3550_v12, %v3550_v12 }
0x3931   :  { %1981 = vrot.lane.b32.xlu1 %v1979_v14, %s2906_s7 }
0x3939   :  { %1628 = vrot.lane.b32.xlu1 %v1626_v18, %s2906_s7 }
0x39a3   :  { %v1982_v19 = vpop.permute.xlu1 %1981 }
0x39a4   :  { %2599 = vmatmul.msk.bf16.vlgmr.msra.gmra.mxu2 %vm115_vm0, %v1982_v19 }
0x39ab   :  { %v1629_v28 = vpop.permute.xlu1 %1628 }
0x39ac   :  { %v1631_v30 = vadd.f32 %v1629_v28, %v1621_v29 }
0x3a27   :  { %v1995_v21 = vpop.f32.mrf.mxu2 }
0x3a28   :  { %v1999_v26 = vadd.f32 %v1995_v21, %v1709_v20  ;;  %v2641_v20 = vld [vmem:[%s3804_s18 + $0x8] sm:$0xff] }
0x3a29   :  { %2175 = vmatpush.bf16.msrb.mxu2 %v2641_v20  ;;  %v2284_v20 = vld [vmem:[%s3819_s27 + $0x30] sm:$0xff] }
0x3a2a   :  { %2836 = vtanh.f32 %v1999_v26  ;;  %v2000_v35 = vmul.f32 0.5, %v1999_v26 }
0x3a2b   :  { %2838 = vtanh.f32 %v1631_v30 }
0x3a2c   :  { %2840 = vtanh.f32 %v2000_v35 }
0x3a2f   :  { %v1997_v31 = vpop.f32.mrf.mxu2 }
0x3a30   :  { %v2837_v45 = vpop.eup %2836 }
0x3a31   :  { %2007 = vrot.lane.b32.xlu0 %v2837_v45, %s2905_s29  ;;  %v2839_v34 = vpop.eup %2838 }
0x3a32   :  { %v2841_v37 = vpop.eup %2840 }
0x3a33   :  { %v2002_v6 = vmul.f32 0.5, %v2841_v37 }
0x3a35   :  { %v2003_v61 = vadd.f32 0.5, %v2002_v6 }
0x3a37   :  { %v2005_v42 = vmul.f32 %v2003_v61, %v1966_v8 }
0x3a39   :  { %1634 = vrot.lane.b32.xlu0 %v2839_v34, %s2905_s29 }
0x3aa3   :  { %v2008_v38 = vpop.permute.xlu0 %2007 }
0x3aa4   :  { %v2010_v40 = vmul.f32 %v2008_v38, %v2003_v61 }
0x3aa6   :  { %2012 = vrot.lane.b32.xlu2 %v2010_v40, %s2906_s7 }
0x3aab   :  { %v1635_v41 = vpop.permute.xlu0 %1634 }
0x3aac   :  { %v1637_v62 = vmul.f32 %v1635_v41, %v1619_v1 }
0x3aae   :  { %1590 = vrot.lane.b32.xlu2 %v3480_v32, %s2906_s7  ;;  %1639 = vrot.lane.b32.xlu0 %v1637_v62, %s2906_s7 }
0x3b00   :  { %v2013_v24 = vpop.permute.xlu2 %2012 }
0x3b01   :  { %v2015_v43 = vadd.f32 %v2013_v24, %v2005_v42  ;;  %v2663_v24 = vld [vmem:[%s3805_s19] ss:$0 sm:$0xff] }
0x3b03   :  { %2842 = vtanh.f32 %v2015_v43 }
0x3b08   :  { %v1591_v44 = vpop.permute.xlu2 %1590 }
0x3b09   :  { %v2843_v23 = vpop.eup %2842  ;;  %1593 = vst.msk [vmem:[#allocation2 + $0x30] sm:$0xff] %vm115_vm0, %v1591_v44 }
0x3b0a   :  { %2018 = vrot.lane.b32.xlu1 %v2843_v23, %s2905_s29 }
0x3b10   :  { %v1649_v54 = vld [vmem:[#allocation2 + $0x30] sm:$0xff] }
0x3b20   :  { %v1640_v49 = vpop.permute.xlu0 %1639 }
0x3b21   :  { %1642 = vst.msk [vmem:[#allocation2 + $0x38] sm:$0xff] %vm115_vm0, %v1640_v49 }
0x3b28   :  { %v1650_v50 = vld [vmem:[#allocation2 + $0x38] sm:$0xff] }
0x3b29   :  { %v1654_v22 = vpack.c.bf16 %v1650_v50, %v1649_v54 }
0x3b2b   :  { %2586 = vmatmul.msk.bf16.gmra.mxu1 %vm115_vm0, %v1654_v22 }
0x3b7c   :  { %v2019_v32 = vpop.permute.xlu1 %2018 }
0x3b7d   :  { %v2021_v0 = vmul.f32 %v2019_v32, %v2003_v61 }
0x3b7f   :  { %v2028_v51 = vpack.c.bf16 %v2021_v0, %v2021_v0 }
0x3b81   :  { %2030 = vrot.lane.b32.xlu1 %v2028_v51, %s2906_s7 }
0x3ba8   :  { %v1711_v55 = vpop.f32.mrf.mxu1 }
0x3ba9   :  { %v1712_v56 = vadd.f32 %v3468_v48, %v1711_v55 }
0x3bb0   :  { %v1713_v1 = vpop.f32.mrf.mxu1 }
0x3bf3   :  { %v2031_v33 = vpop.permute.xlu1 %2030 }
0x3bf4   :  { %2600 = vmatmul.msk.bf16.vlgmr.msrb.gmra.mxu3 %vm115_vm0, %v2031_v33 }
0x3c77   :  { %v2044_v58 = vpop.f32.mrf.mxu3 }
0x3c78   :  { %v2048_v57 = vadd.f32 %v2044_v58, %v1712_v56  ;;  %v2279_v58 = vld [vmem:[%s3819_s27 + $0x8] sm:$0xff] }
0x3c7a   :  { %2844 = vtanh.f32 %v2048_v57  ;;  %v2049_v2 = vmul.f32 0.5, %v2048_v57  ;;  %v2282_v57 = vld [vmem:[%s3819_s27 + $0x20] sm:$0xff] }
0x3c7c   :  { %2846 = vtanh.f32 %v2049_v2 }
0x3c7f   :  { %v2046_v52 = vpop.f32.mrf.mxu3 }
0x3c80   :  { %v2845_v59 = vpop.eup %2844 }
0x3c81   :  { %2056 = vrot.lane.b32.xlu2 %v2845_v59, %s2905_s29 }
0x3c82   :  { %v2847_v13 = vpop.eup %2846 }
0x3c83   :  { %v2051_v27 = vmul.f32 0.5, %v2847_v13 }
0x3c85   :  { %v2052_v4 = vadd.f32 0.5, %v2051_v27 }
0x3c87   :  { %v2054_v5 = vmul.f32 %v2052_v4, %v2015_v43 }
0x3cdb   :  { %v2057_v9 = vpop.permute.xlu2 %2056 }
0x3cdc   :  { %v2059_v3 = vmul.f32 %v2057_v9, %v2052_v4 }
0x3cde   :  { %2061 = vrot.lane.b32.xlu0 %v2059_v3, %s2906_s7 }
0x3d50   :  { %v2062_v46 = vpop.permute.xlu0 %2061 }
0x3d51   :  { %v2064_v7 = vadd.f32 %v2062_v46, %v2054_v5  ;;  %v2280_v5 = vld [vmem:[%s3819_s27 + $0x10] sm:$0xff]  ;;  %v2278_v46 = vld [vmem:[%s3819_s27] sm:$0xff] }
0x3d53   :  { %2848 = vtanh.f32 %v2064_v7 }
0x3d59   :  { %v2849_v8 = vpop.eup %2848 }
0x3d5a   :  { %2067 = vrot.lane.b32.xlu1 %v2849_v8, %s2905_s29  ;;  %v2283_v8 = vld [vmem:[%s3819_s27 + $0x28] sm:$0xff] }
0x3dcc   :  { %v2068_v63 = vpop.permute.xlu1 %2067 }
0x3dcd   :  { %v2070_v60 = vmul.f32 %v2068_v63, %v2052_v4 }
0x3dcf   :  { %v2077_v11 = vpack.c.bf16 %v2070_v60, %v2070_v60 }
0x3dd1   :  { %2079 = vrot.lane.b32.xlu2 %v2077_v11, %s2906_s7 }
0x3dd9   :  { %1778 = vrot.lane.b32.xlu2 %v3485_v36, %s2906_s7  ;;  %v1714_v36 = vadd.f32 %v3468_v48, %v1713_v1  ;;  %v2640_v48 = vld [vmem:[%s3804_s18] sm:$0xff] }
0x3dda   :  { %2176 = vmatpush.bf16.msrb.mxu2 %v2640_v48 }
0x3de1   :  { %1876 = vrot.lane.b32.xlu2 %v3520_v25, %s2906_s7 }
0x3de9   :  { %2023 = vrot.lane.b32.xlu2 %v2021_v0, %s2906_s7 }
0x3e2b   :  { %v2080_v10 = vpop.permute.xlu2 %2079 }
0x3e2c   :  { %2601 = vmatmul.msk.bf16.vlgmr.msrb.gmra.mxu0 %vm115_vm0, %v2080_v10 }
0x3e33   :  { %v1779_v14 = vpop.permute.xlu2 %1778 }
0x3e34   :  { %1781 = vst.msk [vmem:[#allocation2] sm:$0xff] %vm115_vm0, %v1779_v14 }
0x3e3b   :  { %v1877_v15 = vpop.permute.xlu2 %1876  ;;  %v2125_v45 = vld [vmem:[#allocation2] sm:$0xff] }
0x3e3c   :  { %1879 = vst.msk [vmem:[#allocation2 + $0x10] sm:$0xff] %vm115_vm0, %v1877_v15 }
0x3e43   :  { %v2024_v16 = vpop.permute.xlu2 %2023  ;;  %v2127_v61 = vld [vmem:[#allocation2 + $0x10] sm:$0xff] }
0x3e44   :  { %2026 = vst.msk [vmem:[#allocation2 + $0x28] sm:$0xff] %vm115_vm0, %v2024_v16 }
0x3e4b   :  { %v2130_v33 = vld [vmem:[#allocation2 + $0x28] sm:$0xff] }
0x3ea9   :  { %v2093_v18 = vpop.f32.mrf.mxu0 }
0x3eaa   :  { %v2097_v19 = vadd.f32 %v2093_v18, %v1714_v36 }
0x3eac   :  { %2850 = vtanh.f32 %v2097_v19  ;;  %v2098_v21 = vmul.f32 0.5, %v2097_v19 }
0x3eae   :  { %2852 = vtanh.f32 %v2098_v21 }
0x3eb1   :  { %v2095_v25 = vpop.f32.mrf.mxu0 }
0x3eb2   :  { %v2851_v39 = vpop.eup %2850 }
0x3eb3   :  { %2105 = vrot.lane.b32.xlu0 %v2851_v39, %s2905_s29  ;;  %v2285_v39 = vld [vmem:[%s3819_s27 + $0x38] sm:$0xff] }
0x3eb4   :  { %v2853_v26 = vpop.eup %2852 }
0x3eb5   :  { %v2100_v28 = vmul.f32 0.5, %v2853_v26 }
0x3ebb   :  { %1827 = vrot.lane.b32.xlu0 %v3510_v47, %s2906_s7  ;;  %v2101_v47 = vadd.f32 0.5, %v2100_v28 }
0x3ebd   :  { %v2103_v40 = vmul.f32 %v2101_v47, %v2064_v7  ;;  %v2281_v7 = vld [vmem:[%s3819_s27 + $0x18] sm:$0xff] }
0x3ec3   :  { %1925 = vrot.lane.b32.xlu0 %v3537_v53, %s2906_s7 }
0x3ecb   :  { %2072 = vrot.lane.b32.xlu0 %v2070_v60, %s2906_s7 }
0x3f25   :  { %v2106_v29 = vpop.permute.xlu0 %2105 }
0x3f26   :  { %v2108_v30 = vmul.f32 %v2106_v29, %v2101_v47 }
0x3f28   :  { %2110 = vrot.lane.b32.xlu1 %v2108_v30, %s2906_s7 }
0x3f2d   :  { %v1828_v53 = vpop.permute.xlu0 %1827 }
0x3f2e   :  { %1830 = vst.msk [vmem:[#allocation2 + $0x8] sm:$0xff] %vm115_vm0, %v1828_v53 }
0x3f35   :  { %v1926_v31 = vpop.permute.xlu0 %1925  ;;  %v2126_v34 = vld [vmem:[#allocation2 + $0x8] sm:$0xff] }
0x3f36   :  { %1928 = vst.msk [vmem:[#allocation2 + $0x18] sm:$0xff] %vm115_vm0, %v1926_v31  ;;  %v2133_v35 = vpack.c.bf16 %v2126_v34, %v2125_v45 }
0x3f38   :  { %2610 = vmatmul.msk.bf16.vlgmr.msrb.gmra.mxu2 %vm115_vm0, %v2133_v35 }
0x3f3d   :  { %v2073_v37 = vpop.permute.xlu0 %2072  ;;  %v2128_v6 = vld [vmem:[#allocation2 + $0x18] sm:$0xff] }
0x3f3e   :  { %2075 = vst.msk [vmem:[#allocation2 + $0x30] sm:$0xff] %vm115_vm0, %v2073_v37  ;;  %v2134_v38 = vpack.c.bf16 %v2128_v6, %v2127_v61 }
0x3f45   :  { %v2131_v59 = vld [vmem:[#allocation2 + $0x30] sm:$0xff] }
0x3f48   :  { %2611 = vmatmul.msk.bf16.gmra.mxu2 %vm115_vm0, %v2134_v38 }
0x3f9a   :  { %v2111_v41 = vpop.permute.xlu1 %2110 }
0x3f9b   :  { %v2113_v62 = vadd.f32 %v2111_v41, %v2103_v40 }
0x3f9d   :  { %2854 = vtanh.f32 %v2113_v62 }
0x3fa3   :  { %v2855_v42 = vpop.eup %2854 }
0x3fa4   :  { %2116 = vrot.lane.b32.xlu1 %v2855_v42, %s2905_s29 }
0x3fac   :  { %1974 = vrot.lane.b32.xlu1 %v3550_v12, %s2906_s7 }
0x3fbb   :  { %v2178_v43 = vpop.f32.mrf.mxu2 }
0x3fbc   :  { %v3610_v44 = vadd.f32 %v2663_v24, %v2178_v43 }
0x3fbe   :  { %2198 = vmax.xlane.f32.xlu2 %v3610_v44 }
0x3fc3   :  { %v2180_v23 = vpop.f32.mrf.mxu2 }
0x3fc4   :  { %v3613_v49 = vadd.f32 %v2663_v24, %v2180_v23 }
0x3fc6   :  { %2200 = vmax.xlane.f32.xlu0 %v3613_v49 }
0x3fcb   :  { %v2183_v54 = vpop.f32.mrf.mxu2 }
0x3fcc   :  { %v3622_v56 = vadd.f32 %v2663_v24, %v2183_v54 }
0x3fd3   :  { %v2185_v50 = vpop.f32.mrf.mxu2 }
0x3fd4   :  { %v3616_v22 = vadd.f32 %v2663_v24, %v2185_v50 }
0x3fd6   :  { %2204 = vmax.xlane.f32.xlu2 %v3616_v22 }
0x4016   :  { %v2117_v12 = vpop.permute.xlu1 %2116 }
0x4017   :  { %v2119_v32 = vmul.f32 %v2117_v12, %v2101_v47 }
0x4019   :  { %2121 = vrot.lane.b32.xlu1 %v2119_v32, %s2906_s7 }
0x401e   :  { %v1975_v0 = vpop.permute.xlu1 %1974 }
0x401f   :  { %1977 = vst.msk [vmem:[#allocation2 + $0x20] sm:$0xff] %vm115_vm0, %v1975_v0 }
0x4026   :  { %v2129_v51 = vld [vmem:[#allocation2 + $0x20] sm:$0xff] }
0x4027   :  { %v2135_v55 = vpack.c.bf16 %v2130_v33, %v2129_v51 }
0x4029   :  { %2612 = vmatmul.msk.bf16.gmra.mxu2 %vm115_vm0, %v2135_v55 }
0x4031   :  { %v3651_v63 = vpop.xlane.xlu2 %2198 }
0x4032   :  { %v2214_v60 = vsub.f32 %v3610_v44, %v3651_v63 }
0x4034   :  { %v2222_v11 = vmul.f32 1.442695, %v2214_v60 }
0x4036   :  { %2856 = vpow2.f32 %v2222_v11 }
0x4039   :  { %v3671_v48 = vpop.xlane.xlu0 %2200 }
0x403a   :  { %v2215_v29 = vsub.f32 %v3613_v49, %v3671_v48 }
0x403c   :  { %v2857_v16 = vpop.eup %2856  ;;  %v2224_v53 = vmul.f32 1.442695, %v2215_v29  ;;  %v3757_v29 = vld [vmem:[%s3820_s23 + $0x38] sm:$0xff] }
0x4043   :  { %2202 = vmax.xlane.f32.xlu1 %v3622_v56 }
0x4049   :  { %v3655_v10 = vpop.xlane.xlu2 %2204 }
0x404a   :  { %v2217_v14 = vsub.f32 %v3616_v22, %v3655_v10 }
0x404c   :  { %v2228_v15 = vmul.f32 1.442695, %v2217_v14 }
0x404e   :  { %2858 = vpow2.f32 %v2228_v15 }
0x4054   :  { %v2859_v1 = vpop.eup %2858 }
0x405c   :  { %2290 = vperm.xlu1 %2657, %v2279_v58  }
0x4064   :  { %2299 = vperm.xlu1 %2657, %v2282_v57  }
0x408b   :  { %v2122_v52 = vpop.permute.xlu1 %2121 }
0x408c   :  { %2124 = vst.msk [vmem:[#allocation2 + $0x38] sm:$0xff] %vm115_vm0, %v2122_v52 }
0x4093   :  { %v2132_v2 = vld [vmem:[#allocation2 + $0x38] sm:$0xff] }
0x4094   :  { %v2136_v13 = vpack.c.bf16 %v2132_v2, %v2131_v59 }
0x4096   :  { %2613 = vmatmul.msk.bf16.gmra.mxu2 %vm115_vm0, %v2136_v13 }
0x40ac   :  { %v2188_v27 = vpop.f32.mrf.mxu2 }
0x40ad   :  { %v3633_v4 = vadd.f32 %v2663_v24, %v2188_v27  ;;  %v3714_v27 = vld [vmem:[%s3820_s23 + $0x8] sm:$0xff] }
0x40af   :  { %2206 = vmax.xlane.f32.xlu2 %v3633_v4 }
0x40b4   :  { %v2190_v9 = vpop.f32.mrf.mxu2 }
0x40b5   :  { %v3636_v3 = vadd.f32 %v2663_v24, %v2190_v9  ;;  %v2350_v9 = vld [vmem:[%s3820_s23] sm:$0xff] }
0x40b6   :  { %v3673_v21 = vpop.xlane.xlu1 %2202 }
0x40b7   :  { %2208 = vmax.xlane.f32.xlu0 %v3636_v3  ;;  %v2216_v26 = vsub.f32 %v3622_v56, %v3673_v21 }
0x40b9   :  { %v2226_v28 = vmul.f32 1.442695, %v2216_v26 }
0x40bb   :  { %2860 = vpow2.f32 %v2226_v28 }
0x40bc   :  { %2862 = vpow2.f32 %v2224_v53 }
0x40c1   :  { %v2861_v34 = vpop.eup %2860 }
0x40c2   :  { %v2863_v6 = vpop.eup %2862 }
0x40c7   :  { %2293 = vperm.xlu2 %2658, %v2280_v5   ;;  %v2352_v5 = vld [vmem:[%s3820_s23 + $0x10] sm:$0xff] }
0x40cb   :  { %2287 = vperm.xlu0 %2656, %v2278_v46  }
0x40ce   :  { %v2291_v40 = vpop.permute.xlu1 %2290 }
0x40cf   :  { %vm2311_vm3 = vcmp.eq.s32.totalorder %v3330_v17, %v2291_v40 }
0x40d0   :  { %v2319_v62 = vsel %vm2311_vm3, %v3613_v49, 0.0 }
0x40d3   :  { %2296 = vperm.xlu0 %2656, %v2281_v7   ;;  %v2395_v7 = vsel %vm2366_vm11, %v2352_v5, 0.0 }
0x40d6   :  { %v2300_v12 = vpop.permute.xlu1 %2299 }
0x40d7   :  { %vm2314_vm9 = vcmp.eq.s32.totalorder %v3330_v17, %v2300_v12 }
0x40d8   :  { %v2322_v52 = vsel %vm2314_vm9, %v3633_v4, 0.0 }
0x40db   :  { %2302 = vperm.xlu0 %2656, %v2283_v8   ;;  %v3729_v8 = vld [vmem:[%s3820_s23 + $0x18] sm:$0xff] }
0x40dc   :  { %v2397_v11 = vsel %vm2366_vm11, %v3729_v8, 0.0 }
0x4105   :  { %2238 = vadd.xlane.f32.xlu0 %v2857_v16  ;;  %v3736_v16 = vld [vmem:[%s3820_s23 + $0x28] sm:$0xff] }
0x410d   :  { %2244 = vadd.xlane.f32.xlu0 %v2859_v1  ;;  %v3741_v1 = vld [vmem:[%s3820_s23 + $0x20] sm:$0xff] }
0x4119   :  { %v2193_v36 = vpop.f32.mrf.mxu2 }
0x411a   :  { %v3659_v18 = vadd.f32 %v2663_v24, %v2193_v36 }
0x411c   :  { %2210 = vmax.xlane.f32.xlu1 %v3659_v18 }
0x4121   :  { %v2195_v19 = vpop.f32.mrf.mxu2 }
0x4122   :  { %v3662_v25 = vadd.f32 %v2663_v24, %v2195_v19  ;;  %v3683_v31 = vpop.xlane.xlu2 %2206  ;;  %v2399_v19 = vsel %vm2366_vm11, %v3741_v1, 0.0 }
0x4123   :  { %v2218_v35 = vsub.f32 %v3633_v4, %v3683_v31  ;;  %v2393_v4 = vsel %vm2366_vm11, %v3714_v27, 0.0 }
0x4124   :  { %2212 = vmax.xlane.f32.xlu2 %v3662_v25 }
0x4125   :  { %v2230_v37 = vmul.f32 1.442695, %v2218_v35 }
0x412a   :  { %v3677_v47 = vpop.xlane.xlu0 %2208  ;;  %v2294_v43 = vpop.permute.xlu2 %2293 }
0x412b   :  { %v2219_v30 = vsub.f32 %v3636_v3, %v3677_v47  ;;  %vm2312_vm6 = vcmp.eq.s32.totalorder %v3330_v17, %v2294_v43 }
0x412c   :  { %v2320_v54 = vsel %vm2312_vm6, %v3622_v56, 0.0 }
0x412d   :  { %v2232_v45 = vmul.f32 1.442695, %v2219_v30 }
0x412f   :  { %2864 = vpow2.f32 %v2232_v45 }
0x4130   :  { %2866 = vpow2.f32 %v2230_v37 }
0x4135   :  { %2308 = vperm.xlu1 %2657, %v2285_v39   ;;  %v2865_v61 = vpop.eup %2864 }
0x4136   :  { %v2867_v41 = vpop.eup %2866 }
0x413c   :  { %2305 = vperm.xlu2 %2658, %v2284_v20   ;;  %v3750_v20 = vld [vmem:[%s3820_s23 + $0x30] sm:$0xff] }
0x413d   :  { %v2288_v38 = vpop.permute.xlu0 %2287  ;;  %v2403_v26 = vsel %vm2366_vm11, %v3750_v20, 0.0 }
0x413e   :  { %vm2310_vm4 = vcmp.eq.s32.totalorder %v3330_v17, %v2288_v38 }
0x413f   :  { %v2318_v24 = vsel %vm2310_vm4, %v3610_v44, 0.0 }
0x4145   :  { %v2297_v42 = vpop.permute.xlu0 %2296 }
0x4146   :  { %vm2313_vm5 = vcmp.eq.s32.totalorder %v3330_v17, %v2297_v42 }
0x4147   :  { %v2321_v23 = vsel %vm2313_vm5, %v3616_v22, 0.0 }
0x414d   :  { %v2303_v50 = vpop.permute.xlu0 %2302 }
0x414e   :  { %vm2315_vm7 = vcmp.eq.s32.totalorder %v3330_v17, %v2303_v50 }
0x414f   :  { %v2323_v49 = vsel %vm2315_vm7, %v3636_v3, 0.0  ;;  %v2392_v3 = vsel %vm2366_vm11, %v2350_v9, 0.0 }
0x415f   :  { %2242 = vadd.xlane.f32.xlu1 %v2861_v34  ;;  %v2405_v34 = vsel %vm2366_vm11, %v3757_v29, 0.0 }
0x4165   :  { %2240 = vadd.xlane.f32.xlu2 %v2863_v6 }
0x4167   :  { %2248 = vadd.xlane.f32.xlu1 %v2865_v61 }
0x416d   :  { %2246 = vadd.xlane.f32.xlu2 %v2867_v41 }
0x416f   :  { %2328 = vadd.xlane.f32.xlu1 %v2319_v62 }
0x4175   :  { %2326 = vadd.xlane.f32.xlu2 %v2318_v24 }
0x4177   :  { %2332 = vadd.xlane.f32.xlu1 %v2321_v23 }
0x4178   :  { %v2239_v14 = vpop.xlane.xlu0 %2238 }
0x417d   :  { %2330 = vadd.xlane.f32.xlu2 %v2320_v54 }
0x4180   :  { %v2245_v53 = vpop.xlane.xlu0 %2244 }
0x4185   :  { %2336 = vadd.xlane.f32.xlu2 %v2323_v49 }
0x418f   :  { %v3697_v32 = vpop.xlane.xlu1 %2210 }
0x4190   :  { %v2220_v44 = vsub.f32 %v3659_v18, %v3697_v32 }
0x4192   :  { %v2234_v0 = vmul.f32 1.442695, %v2220_v44 }
0x4194   :  { %2868 = vpow2.f32 %v2234_v0 }
0x4197   :  { %v3701_v22 = vpop.xlane.xlu2 %2212 }
0x4198   :  { %v2221_v51 = vsub.f32 %v3662_v25, %v3701_v22 }
0x419a   :  { %v2869_v33 = vpop.eup %2868  ;;  %v2236_v55 = vmul.f32 1.442695, %v2221_v51 }
0x419b   :  { %2250 = vadd.xlane.f32.xlu0 %v2869_v33 }
0x419c   :  { %2870 = vpow2.f32 %v2236_v55 }
0x419d   :  { %2872 = vlog2.f32 %v2239_v14 }
0x419f   :  { %v2306_v56 = vpop.permute.xlu2 %2305 }
0x41a0   :  { %vm2316_vm8 = vcmp.eq.s32.totalorder %v3330_v17, %v2306_v56 }
0x41a1   :  { %v2324_v58 = vsel %vm2316_vm8, %v3659_v18, 0.0  ;;  %v2401_v18 = vsel %vm2366_vm11, %v3736_v16, 0.0 }
0x41a2   :  { %v2871_v57 = vpop.eup %2870  ;;  %2338 = vadd.xlane.f32.xlu1 %v2324_v58 }
0x41a3   :  { %2252 = vadd.xlane.f32.xlu0 %v2871_v57  ;;  %v2873_v35 = vpop.eup %2872 }
0x41a4   :  { %v2255_v38 = vmul.f32 0.6931472, %v2873_v35 }
0x41a6   :  { %v2270_v23 = vadd.f32 %v2255_v38, %v3651_v63 }
0x41a7   :  { %v2309_v59 = vpop.permute.xlu1 %2308 }
0x41a8   :  { %vm2317_vm10 = vcmp.eq.s32.totalorder %v3330_v17, %v2309_v59  ;;  %v2394_v17 = vadd.f32 %v2393_v4, %v2392_v3 }
0x41a9   :  { %v2325_v2 = vsel %vm2317_vm10, %v3662_v25, 0.0 }
0x41aa   :  { %v2396_v60 = vadd.f32 %v2395_v7, %v2394_v17 }
0x41ab   :  { %2334 = vadd.xlane.f32.xlu0 %v2322_v52 }
0x41ac   :  { %v2398_v36 = vadd.f32 %v2397_v11, %v2396_v60 }
0x41ae   :  { %v2400_v25 = vadd.f32 %v2399_v19, %v2398_v36 }
0x41b0   :  { %v2402_v28 = vadd.f32 %v2401_v18, %v2400_v25 }
0x41b2   :  { %v2404_v30 = vadd.f32 %v2403_v26, %v2402_v28 }
0x41b3   :  { %2340 = vadd.xlane.f32.xlu0 %v2325_v2 }
0x41b4   :  { %v2406_v37 = vadd.f32 %v2405_v34, %v2404_v30 }
0x41b6   :  { %2407 = vadd.xlane.f32.xlu1 %v2406_v37 }
0x41d2   :  { %v2243_v46 = vpop.xlane.xlu1 %2242 }
0x41d8   :  { %v2241_v13 = vpop.xlane.xlu2 %2240 }
0x41d9   :  { %2874 = vlog2.f32 %v2241_v13 }
0x41da   :  { %v2249_v39 = vpop.xlane.xlu1 %2248  ;;  %2876 = vlog2.f32 %v2243_v46 }
0x41db   :  { %2878 = vlog2.f32 %v2245_v53 }
0x41dc   :  { %2880 = vlog2.f32 %v2249_v39 }
0x41df   :  { %v2875_v6 = vpop.eup %2874 }
0x41e0   :  { %v2247_v15 = vpop.xlane.xlu2 %2246  ;;  %v2877_v61 = vpop.eup %2876  ;;  %v2257_v40 = vmul.f32 0.6931472, %v2875_v6 }
0x41e1   :  { %v2259_v62 = vmul.f32 0.6931472, %v2877_v61  ;;  %v2879_v24 = vpop.eup %2878  ;;  %2882 = vlog2.f32 %v2247_v15 }
0x41e2   :  { %v2329_v41 = vpop.xlane.xlu1 %2328  ;;  %v2271_v43 = vadd.f32 %v2257_v40, %v3671_v48  ;;  %v2261_v12 = vmul.f32 0.6931472, %v2879_v24  ;;  %v2881_v51 = vpop.eup %2880 }
0x41e3   :  { %v2272_v49 = vadd.f32 %v2259_v62, %v3673_v21  ;;  %v2265_v59 = vmul.f32 0.6931472, %v2881_v51 }
0x41e4   :  { %v2343_v44 = vsub.f32 %v2271_v43, %v2329_v41  ;;  %v2273_v57 = vadd.f32 %v2261_v12, %v3655_v10 }
0x41e5   :  { %v2275_v46 = vadd.f32 %v2265_v59, %v3677_v47 }
0x41e6   :  { %v2359_v48 = vmul.f32 %v3714_v27, %v2343_v44 }
0x41e7   :  { %v2883_v33 = vpop.eup %2882 }
0x41e8   :  { %v2327_v45 = vpop.xlane.xlu2 %2326  ;;  %v2263_v13 = vmul.f32 0.6931472, %v2883_v33  ;;  %v2368_v17 = vsel %vm2366_vm11, %v2359_v48, 0.0 }
0x41e9   :  { %v2342_v50 = vsub.f32 %v2270_v23, %v2327_v45 }
0x41ea   :  { %v2333_v56 = vpop.xlane.xlu1 %2332 }
0x41eb   :  { %v2358_v55 = vmul.f32 %v2350_v9, %v2342_v50  ;;  %v2345_v2 = vsub.f32 %v2273_v57, %v2333_v56 }
0x41ed   :  { %v2367_v21 = vsel %vm2366_vm11, %v2358_v55, 0.0  ;;  %v2361_v10 = vmul.f32 %v3729_v8, %v2345_v2 }
0x41ee   :  { %v2369_v7 = vadd.f32 %v2368_v17, %v2367_v21 }
0x41ef   :  { %v2372_v18 = vsel %vm2366_vm11, %v2361_v10, 0.0 }
0x41f0   :  { %v2331_v54 = vpop.xlane.xlu2 %2330 }
0x41f1   :  { %v2344_v0 = vsub.f32 %v2272_v49, %v2331_v54 }
0x41f3   :  { %v2360_v63 = vmul.f32 %v2352_v5, %v2344_v0  ;;  %v2274_v5 = vadd.f32 %v2263_v13, %v3683_v31 }
0x41f5   :  { %v2370_v9 = vsel %vm2366_vm11, %v2360_v63, 0.0 }
0x41f6   :  { %v2371_v14 = vadd.f32 %v2370_v9, %v2369_v7 }
0x41f8   :  { %v2337_v3 = vpop.xlane.xlu2 %2336  ;;  %v2373_v28 = vadd.f32 %v2372_v18, %v2371_v14 }
0x41f9   :  { %v2347_v60 = vsub.f32 %v2275_v46, %v2337_v3 }
0x41fb   :  { %v2363_v25 = vmul.f32 %v3736_v16, %v2347_v60 }
0x420e   :  { %v2251_v42 = vpop.xlane.xlu0 %2250 }
0x420f   :  { %2884 = vlog2.f32 %v2251_v42 }
0x4215   :  { %v2885_v58 = vpop.eup %2884  ;;  %v2339_v19 = vpop.xlane.xlu1 %2338 }
0x4216   :  { %v2253_v52 = vpop.xlane.xlu0 %2252  ;;  %v2267_v4 = vmul.f32 0.6931472, %v2885_v58 }
0x4217   :  { %2886 = vlog2.f32 %v2253_v52 }
0x4218   :  { %v2276_v27 = vadd.f32 %v2267_v4, %v3697_v32  ;;  %v2376_v32 = vsel %vm2366_vm11, %v2363_v25, 0.0 }
0x421a   :  { %v2348_v39 = vsub.f32 %v2276_v27, %v2339_v19 }
0x421c   :  { %v2364_v31 = vmul.f32 %v3750_v20, %v2348_v39 }
0x421d   :  { %v2887_v11 = vpop.eup %2886 }
0x421e   :  { %v2335_v15 = vpop.xlane.xlu0 %2334  ;;  %v2269_v26 = vmul.f32 0.6931472, %v2887_v11  ;;  %v2378_v37 = vsel %vm2366_vm11, %v2364_v31, 0.0 }
0x421f   :  { %v2346_v36 = vsub.f32 %v2274_v5, %v2335_v15 }
0x4220   :  { %v2277_v53 = vadd.f32 %v2269_v26, %v3701_v22 }
0x4221   :  { %v2362_v47 = vmul.f32 %v3741_v1, %v2346_v36 }
0x4223   :  { %v2374_v8 = vsel %vm2366_vm11, %v2362_v47, 0.0 }
0x4224   :  { %v2375_v30 = vadd.f32 %v2374_v8, %v2373_v28 }
0x4226   :  { %v2377_v45 = vadd.f32 %v2376_v32, %v2375_v30  ;;  %v2341_v34 = vpop.xlane.xlu0 %2340 }
0x4227   :  { %v2349_v35 = vsub.f32 %v2277_v53, %v2341_v34 }
0x4228   :  { %v2379_v6 = vadd.f32 %v2378_v37, %v2377_v45 }
0x4229   :  { %v2365_v16 = vmul.f32 %v3757_v29, %v2349_v35  ;;  %v2408_v38 = vpop.xlane.xlu1 %2407 }
0x422a   :  { %v2409_v40 = vrot.slane %v2408_v38, 4 }
0x422b   :  { %v2380_v1 = vsel %vm2366_vm11, %v2365_v16, 0.0 }
0x422c   :  { %v2381_v61 = vadd.f32 %v2380_v1, %v2379_v6  ;;  %v2410_v41 = vadd.f32 %v2409_v40, %v2408_v38 }
0x422e   :  { %2382 = vadd.xlane.f32.xlu2 %v2381_v61  ;;  %v2411_v62 = vrot.slane %v2410_v41, 2 }
0x4230   :  { %v2412_v22 = vadd.f32 %v2411_v62, %v2410_v41 }
0x4232   :  { %v2413_v54 = vrot.slane %v2412_v22, 1 }
0x4234   :  { %v2414_v12 = vadd.f32 %v2413_v54, %v2412_v22 }
0x42a1   :  { %v2383_v42 = vpop.xlane.xlu2 %2382 }
0x42a2   :  { %v2384_v20 = vrot.slane %v2383_v42, 4 }
0x42a4   :  { %v2385_v24 = vadd.f32 %v2384_v20, %v2383_v42 }
0x42a6   :  { %v2386_v43 = vrot.slane %v2385_v24, 2 }
0x42a8   :  { %v2387_v23 = vadd.f32 %v2386_v43, %v2385_v24 }
0x42aa   :  { %v2388_v50 = vrot.slane %v2387_v23, 1 }
0x42ac   :  { %v2389_v49 = vadd.f32 %v2388_v50, %v2387_v23 }
0x42ae   :  { %2644 = vpush %v2389_v49 }
0x42af   :  { %2646 = vpush %v2414_v12 }
0x42df   :  { %s2645_s28 = spop %2644 }
0x42e0   :  { %s2647_s7 = spop %2646 }
0x42e1   :  { %s2416_s4 = smax.f32 %s2908_s9, %s2647_s7 }
0x42e2   :  { %v2417_v29 = vstv %s2416_s4 }
0x42e3   :  { %2888 = vrcp.f32 %v2417_v29  ;;  %v2429_v33 = vand.u32 2147483648, %v2417_v29  ;;  %v2427_v56 = vand.u32 2147483647, %v2417_v29  ;;  %vm2423_vm13 = vweird.f32 %v2417_v29 }
0x42e5   :  { %v2430_v57 = vor.u32 1.1754944e-38, %v2429_v33  ;;  %vm2428_vm15 = vcmp.eq.f32.partialorder %v2427_v56, 8.507059e+37 }
0x42e9   :  { %v2889_v44 = vpop.eup %2888 }
0x42ea   :  { %v2419_v0 = vmul.f32 %v2889_v44, %v2417_v29  ;;  %vm2424_vm12 = vweird.f32 %v2889_v44 }
0x42eb   :  { %vm2425_vm14 = vmor %vm2423_vm13, %vm2424_vm12 }
0x42ec   :  { %v2420_v51 = vsub.f32 1.0, %v2419_v0 }
0x42ee   :  { %v2421_v55 = vmul.f32 %v2889_v44, %v2420_v51 }
0x42f0   :  { %v2422_v58 = vadd.f32 %v2889_v44, %v2421_v55 }
0x42f2   :  { %v2426_v52 = vsel %vm2425_vm14, %v2889_v44, %v2422_v58 }
0x42f3   :  { %v2431_v59 = vsel %vm2428_vm15, %v2430_v57, %v2426_v52 }
0x42f4   :  { %2648 = vpush %v2431_v59 }
0x4325   :  { %s2649_s5 = spop %2648 }
0x4326   :  { %s2433_s6 = smul.f32 %s2649_s5, %s2645_s28 }
0x4328   :  { %2435 = sst [smem:[#allocation4]] %s2433_s6 }
0x4329   :  { %2444 = dma.smem_to_hbm %s2909_s30, 16, %s2442_s10, [#allocation5]  }
0x432a   :  { %2902 = dma.done.wait [#allocation5], 16  }
0x432b   :  { %2903 = vsyncadd [#allocation5], 4294967280 }
0x432c   :  { %2449 = sfence }
0x432d   :  { %2450 = vsyncpa [#allocation5], 1 }

</bundles_post_ra>
